<compile_context>
chip_gen: v5e
topology: v5e:2x2
jax: 0.10.0
libtpu: 0.0.40
codegen_flags: <defaults>
</compile_context>

<pallas_src>
import jax
import jax.numpy as jnp
from jax.experimental import pallas as pl
from jax.experimental.pallas import tpu as pltpu


# --------------------------- fused Pallas kernel ---------------------------

def attention_rnn_kernel(win_ref, h0_ref, cw_ref, cb_ref,
                         wih_ref, whh_ref, bin_ref, bhn_ref,
                         wn_ref, bn_ref, wp_ref, lw_ref, lb_ref,
                         out_note_ref, norm_ref, vec_ref, probs_ref,
                         onbt_ref):
    """Fused Convolutional_Embedding + BiGRU + attention head + classifier.

    win_ref:  (T, B, L, fw*D) im2col windows of the zero-padded word embeddings
    h0_ref:   (2, B, H) initial hidden state
    cw_ref:   (fw*D, C) conv weight, cb_ref: (1, C) conv bias
    wih_ref:  (2, C, 3H)  fused input-gate weights   (gate order r, z, n)
    whh_ref:  (2, H, 3H)  fused hidden-gate weights
    bin_ref:  (2, 1, 3H)  [bih_r+bhh_r | bih_z+bhh_z | bih_n]
    bhn_ref:  (2, 1, H)   bhh_n (kept inside r*(hW+b) per PyTorch GRU)
    wn_ref:(2H,2H) bn_ref:(1,2H) wp_ref:(1,2H) lw_ref:(2H,n_cls) lb_ref:(1,n_cls)
    out_note_ref: (T, B, 2H)   norm_ref: (B, T)   vec_ref: (B, 2H)   probs_ref: (B, n_cls)
    onbt_ref: VMEM scratch (B, T, 2H) — (batch, time) layout used by the attention head
    """
    T, B, L, KD = win_ref.shape
    H = h0_ref.shape[2]
    bf16 = jnp.bfloat16

    # --- Convolutional_Embedding: one im2col matmul + tanh + max-pool over the word axis ---
    win = win_ref[...].astype(bf16).reshape(T * B * L, KD)
    conv = jnp.dot(win, cw_ref[...].astype(bf16), preferred_element_type=jnp.float32)
    y = jnp.tanh(conv + cb_ref[...]).reshape(T, B, L, -1)
    s = jnp.max(y, axis=2)                                            # (T, B, C)

    # --- BiGRU: input-side projections hoisted out of the recurrence (all 3 gates fused) ---
    C = s.shape[-1]
    s_flat = s.astype(bf16).reshape(T * B, C)
    xf = (jnp.dot(s_flat, wih_ref[0].astype(bf16), preferred_element_type=jnp.float32)
          + bin_ref[0]).reshape(T, B, 3 * H)
    xb = (jnp.dot(s_flat, wih_ref[1].astype(bf16), preferred_element_type=jnp.float32)
          + bin_ref[1]).reshape(T, B, 3 * H)
    whh_f = whh_ref[0].astype(bf16)
    whh_b = whh_ref[1].astype(bf16)
    bhn_f = bhn_ref[0]
    bhn_b = bhn_ref[1]

    def cell(xg, h, whh, bhn):
        hg = jnp.dot(h.astype(bf16), whh, preferred_element_type=jnp.float32)   # (B, 3H)
        r = jax.nn.sigmoid(xg[:, 0:H] + hg[:, 0:H])
        z = jax.nn.sigmoid(xg[:, H:2 * H] + hg[:, H:2 * H])
        n = jnp.tanh(xg[:, 2 * H:3 * H] + r * (hg[:, 2 * H:3 * H] + bhn))
        return (1.0 - z) * n + z * h

    hf = h0_ref[0]                           # hidden state carried in vregs, no VMEM round-trip
    hb = h0_ref[1]
    for t in range(T):                       # T is a trace-time constant; fwd/bwd interleaved
        tb = T - 1 - t
        hf = cell(xf[t], hf, whh_f, bhn_f)
        hb = cell(xb[tb], hb, whh_b, bhn_b)
        out_note_ref[t, :, 0:H] = hf         # two halves of one (T,B,2H) output
        out_note_ref[tb, :, H:2 * H] = hb
        onbt_ref[:, t, 0:H] = hf             # same values in (B,T,2H) layout for the attention
        onbt_ref[:, tb, H:2 * H] = hb

    # --- Attention head + classifier, on the (B, T, 2H) layout (lane-dense outputs) ---
    onbt = onbt_ref[...]                                              # (B, T, 2H)
    flat = onbt.astype(bf16).reshape(B * T, 2 * H)
    squish = jnp.tanh(jnp.dot(flat, wn_ref[...].astype(bf16),
                              preferred_element_type=jnp.float32) + bn_ref[...])
    attn = jnp.sum(squish.reshape(B, T, 2 * H) * wp_ref[...], axis=-1)   # (B, T)
    m = jnp.max(attn, axis=-1, keepdims=True)                            # softmax over notes
    e = jnp.exp(attn - m)
    norm = e * pl.reciprocal(jnp.sum(e, axis=-1, keepdims=True), approx=True)
    norm_ref[...] = norm                                                  # (B, T)
    vec = jnp.sum(norm[:, :, None] * onbt, axis=1)                        # attention_mul -> (B, 2H)
    vec_ref[...] = vec
    logits = jnp.dot(vec.astype(bf16), lw_ref[...].astype(bf16),
                     preferred_element_type=jnp.float32) + lb_ref[...]
    le = jnp.exp(logits - jnp.max(logits, axis=-1, keepdims=True))
    probs_ref[...] = le * pl.reciprocal(jnp.sum(le, axis=-1, keepdims=True), approx=True)


# --------------------------- parameters & wrapper ---------------------------

def init_params(key, cfg):
    D, C, fw = cfg['words_dim'], cfg['output_channel'], cfg['filter_width']
    V, H, n_cls = cfg['vocab_size'], cfg['note_gru_hidden'], cfg['target_class']
    ks = jax.random.split(key, 12)
    s = 0.1
    return {
        'embed':  jax.random.normal(ks[0], (V, D), jnp.float32) * s,
        'conv_w': jax.random.normal(ks[1], (fw, D, C), jnp.float32) * s,
        'conv_b': jax.random.normal(ks[2], (1, C), jnp.float32) * s,
        'wih':    jax.random.normal(ks[3], (2, 3, C, H), jnp.float32) * s,
        'whh':    jax.random.normal(ks[4], (2, 3, H, H), jnp.float32) * s,
        'bih':    jax.random.normal(ks[5], (2, 3, 1, H), jnp.float32) * s,
        'bhh':    jax.random.normal(ks[6], (2, 3, 1, H), jnp.float32) * s,
        'W_note': jax.random.normal(ks[7], (2 * H, 2 * H), jnp.float32) * s,
        'b_note': jax.random.normal(ks[8], (1, 2 * H), jnp.float32) * s,
        'w_proj': jax.random.normal(ks[9], (1, 2 * H), jnp.float32) * s,
        'lin_W':  jax.random.normal(ks[10], (2 * H, n_cls), jnp.float32) * s,
        'lin_b':  jax.random.normal(ks[11], (1, n_cls), jnp.float32) * s,
    }


def attention_rnn_forward(params, mini_batch, hidden_state, cfg):
    """mini_batch: (num_notes, num_words, batch) int ids; hidden_state: (2, batch, H)."""
    T, W, B = mini_batch.shape
    D, fw = cfg['words_dim'], cfg['filter_width']
    C, H, n_cls = cfg['output_channel'], cfg['note_gru_hidden'], cfg['target_class']
    L = W + fw - 1

    # glue: embedding gather + im2col windows for the conv (Conv2d padding=(fw-1, 0))
    ids = jnp.transpose(mini_batch, (0, 2, 1))                        # (T, B, W)
    emb = jnp.take(params['embed'], ids, axis=0)                      # (T, B, W, D)
    emb_pad = jnp.pad(emb, ((0, 0), (0, 0), (fw - 1, fw - 1), (0, 0)))
    win = jnp.concatenate([emb_pad[:, :, k:k + L, :] for k in range(fw)], axis=-1)  # (T,B,L,fw*D)

    # fuse GRU gate weights (PyTorch r, z, n order); pre-fold bih+bhh for r/z gates
    wih, whh, bih, bhh = params['wih'], params['whh'], params['bih'], params['bhh']
    wih_f = jnp.concatenate([wih[:, 0], wih[:, 1], wih[:, 2]], axis=-1)            # (2, C, 3H)
    whh_f = jnp.concatenate([whh[:, 0], whh[:, 1], whh[:, 2]], axis=-1)            # (2, H, 3H)
    b_in = jnp.concatenate([bih[:, 0] + bhh[:, 0], bih[:, 1] + bhh[:, 1], bih[:, 2]], axis=-1)
    b_hn = bhh[:, 2]                                                               # (2, 1, H)
    conv_w = params['conv_w'].reshape(fw * D, C)

    out_note, norm_bt, attn_vec, probs = pl.pallas_call(
        attention_rnn_kernel,
        out_shape=(jax.ShapeDtypeStruct((T, B, 2 * H), jnp.float32),
                   jax.ShapeDtypeStruct((B, T), jnp.float32),
                   jax.ShapeDtypeStruct((B, 2 * H), jnp.float32),
                   jax.ShapeDtypeStruct((B, n_cls), jnp.float32)),
        scratch_shapes=[pltpu.VMEM((B, T, 2 * H), jnp.float32)],
    )(win, hidden_state, conv_w, params['conv_b'],
      wih_f, whh_f, b_in, b_hn,
      params['W_note'], params['b_note'], params['w_proj'],
      params['lin_W'], params['lin_b'])

    return out_note, norm_bt, attn_vec, probs


# --------------------------- pure-JAX reference (for checking) ---------------------------

def reference_forward(params, mini_batch, hidden_state, cfg):
    T, W, B = mini_batch.shape
    fw, H = cfg['filter_width'], cfg['note_gru_hidden']
    ids = jnp.transpose(mini_batch, (0, 2, 1))
    emb = jnp.take(params['embed'], ids, axis=0)
    emb_pad = jnp.pad(emb, ((0, 0), (0, 0), (fw - 1, fw - 1), (0, 0)))
    L = W + fw - 1
    conv = jnp.zeros((T, B, L, cfg['output_channel']), jnp.float32)
    for k in range(fw):
        conv = conv + jnp.einsum('tbwd,dc->tbwc', emb_pad[:, :, k:k + L, :], params['conv_w'][k])
    s = jnp.max(jnp.tanh(conv + params['conv_b'][0]), axis=2)

    def cell(d, x_t, h):
        r = jax.nn.sigmoid(x_t @ params['wih'][d, 0] + params['bih'][d, 0]
                           + h @ params['whh'][d, 0] + params['bhh'][d, 0])
        z = jax.nn.sigmoid(x_t @ params['wih'][d, 1] + params['bih'][d, 1]
                           + h @ params['whh'][d, 1] + params['bhh'][d, 1])
        n = jnp.tanh(x_t @ params['wih'][d, 2] + params['bih'][d, 2]
                     + r * (h @ params['whh'][d, 2] + params['bhh'][d, 2]))
        return (1.0 - z) * n + z * h

    hf, hb = hidden_state[0], hidden_state[1]
    out_f, out_b = [], [None] * T
    for t in range(T):
        hf = cell(0, s[t], hf); out_f.append(hf)
    for i in range(T):
        t = T - 1 - i
        hb = cell(1, s[t], hb); out_b[t] = hb
    out_note = jnp.concatenate([jnp.stack(out_f, 0), jnp.stack(out_b, 0)], axis=-1)

    squish = jnp.tanh(jnp.einsum('tbh,hk->tbk', out_note, params['W_note']) + params['b_note'][0])
    attn = jnp.sum(squish * params['w_proj'][0], axis=-1)             # (T, B)
    norm = jax.nn.softmax(attn, axis=0)
    note_attn_norm = norm.T                                           # (B, T)
    vec = jnp.sum(norm[:, :, None] * out_note, axis=0)
    probs = jax.nn.softmax(vec @ params['lin_W'] + params['lin_b'][0], axis=-1)
    return out_note, note_attn_norm, vec, probs


# --------------------------- main ---------------------------

if __name__ == "__main__":
    cfg = dict(words_dim=16, embed_mode='random', output_channel=8, filter_width=3,
               vocab_size=50, dropout=0.0, attention=True, batch_size=2,
               target_class=5, note_gru_hidden=16, bidirection_gru=True)
    # TODO(synk): nn.Dropout is constructed in __init__ but never applied in forward, so it is omitted.
    T, W, B = 6, 10, cfg['batch_size']

    key = jax.random.PRNGKey(0)
    kp, kx = jax.random.split(key)
    params = init_params(kp, cfg)
    mini_batch = jax.random.randint(kx, (T, W, B), 0, cfg['vocab_size'], dtype=jnp.int32)
    hidden_state = jnp.zeros((2, B, cfg['note_gru_hidden']), jnp.float32)  # init_hidden()

    fwd = jax.jit(lambda mb, h: attention_rnn_forward(params, mb, h, cfg))
    outs = jax.block_until_ready(fwd(mini_batch, hidden_state))

    ref = reference_forward(params, mini_batch, hidden_state, cfg)
    # tolerance covers the intentional bf16 matmul operands + approx softmax reciprocal
    for a, b in zip(outs, ref):
        assert a.shape == b.shape
        assert jnp.allclose(a, b, rtol=5e-3, atol=5e-3)

    print("KERNEL_OK")
</pallas_src>

<mosaic_0001>
module attributes {stable_mosaic.version = 11 : i64} {
  func.func @attention_rnn_kernel(%arg0: memref<6x2x12x48xf32, #tpu.memory_space<vmem>>, %arg1: memref<2x2x16xf32, #tpu.memory_space<vmem>>, %arg2: memref<48x8xf32, #tpu.memory_space<vmem>>, %arg3: memref<1x8xf32, #tpu.memory_space<vmem>>, %arg4: memref<2x8x48xf32, #tpu.memory_space<vmem>>, %arg5: memref<2x16x48xf32, #tpu.memory_space<vmem>>, %arg6: memref<2x1x48xf32, #tpu.memory_space<vmem>>, %arg7: memref<2x1x16xf32, #tpu.memory_space<vmem>>, %arg8: memref<32x32xf32, #tpu.memory_space<vmem>>, %arg9: memref<1x32xf32, #tpu.memory_space<vmem>>, %arg10: memref<1x32xf32, #tpu.memory_space<vmem>>, %arg11: memref<32x5xf32, #tpu.memory_space<vmem>>, %arg12: memref<1x5xf32, #tpu.memory_space<vmem>>, %arg13: memref<6x2x32xf32, #tpu.memory_space<vmem>>, %arg14: memref<2x6xf32, #tpu.memory_space<vmem>>, %arg15: memref<2x32xf32, #tpu.memory_space<vmem>>, %arg16: memref<2x5xf32, #tpu.memory_space<vmem>>, %arg17: memref<2x6x32xf32, #tpu.memory_space<vmem>>) attributes {dimension_semantics = [], scalar_prefetch = 0 : i64, scratch_operands = 1 : i64, tpu.core_type = #tpu.core_type<tc>} {
    %c0 = arith.constant 0 : index
    %c0_0 = arith.constant 0 : index
    %c0_1 = arith.constant 0 : index
    %c0_2 = arith.constant 0 : index
    %0 = vector.load %arg0[%c0, %c0_0, %c0_1, %c0_2] : memref<6x2x12x48xf32, #tpu.memory_space<vmem>>, vector<6x2x12x48xf32>
    %1 = arith.truncf %0 : vector<6x2x12x48xf32> to vector<6x2x12x48xbf16>
    %2 = vector.shape_cast %1 : vector<6x2x12x48xbf16> to vector<144x48xbf16>
    %c0_3 = arith.constant 0 : index
    %c0_4 = arith.constant 0 : index
    %3 = vector.load %arg2[%c0_3, %c0_4] : memref<48x8xf32, #tpu.memory_space<vmem>>, vector<48x8xf32>
    %4 = arith.truncf %3 : vector<48x8xf32> to vector<48x8xbf16>
    %cst = arith.constant dense<0.000000e+00> : vector<144x8xf32>
    %5 = tpu.matmul %2, %4, %cst {dimension_numbers = #tpu.dot_dimension_numbers<[1], [0], [0], [1], [0, 0, 1, 1], [], []>} : vector<144x48xbf16>, vector<48x8xbf16>, vector<144x8xf32> -> vector<144x8xf32>
    %c0_5 = arith.constant 0 : index
    %c0_6 = arith.constant 0 : index
    %6 = vector.load %arg3[%c0_5, %c0_6] : memref<1x8xf32, #tpu.memory_space<vmem>>, vector<1x8xf32>
    %7 = vector.broadcast %6 : vector<1x8xf32> to vector<144x8xf32>
    %8 = arith.addf %5, %7 : vector<144x8xf32>
    %9 = math.tanh %8 : vector<144x8xf32>
    %10 = vector.shape_cast %9 : vector<144x8xf32> to vector<6x2x12x8xf32>
    %cst_7 = arith.constant dense<0xFF800000> : vector<6x2x8xf32>
    %11 = vector.multi_reduction <maximumf>, %10, %cst_7 [2] : vector<6x2x12x8xf32> to vector<6x2x8xf32>
    %12 = arith.truncf %11 : vector<6x2x8xf32> to vector<6x2x8xbf16>
    %13 = vector.shape_cast %12 : vector<6x2x8xbf16> to vector<12x8xbf16>
    %c0_8 = arith.constant 0 : index
    %c0_9 = arith.constant 0 : index
    %c0_10 = arith.constant 0 : index
    %14 = vector.load %arg4[%c0_8, %c0_9, %c0_10] : memref<2x8x48xf32, #tpu.memory_space<vmem>>, vector<1x8x48xf32>
    %15 = vector.shape_cast %14 : vector<1x8x48xf32> to vector<8x48xf32>
    %16 = arith.truncf %15 : vector<8x48xf32> to vector<8x48xbf16>
    %cst_11 = arith.constant dense<0.000000e+00> : vector<12x48xf32>
    %17 = tpu.matmul %13, %16, %cst_11 {dimension_numbers = #tpu.dot_dimension_numbers<[1], [0], [0], [1], [0, 0, 1, 1], [], []>} : vector<12x8xbf16>, vector<8x48xbf16>, vector<12x48xf32> -> vector<12x48xf32>
    %c0_12 = arith.constant 0 : index
    %c0_13 = arith.constant 0 : index
    %c0_14 = arith.constant 0 : index
    %18 = vector.load %arg6[%c0_12, %c0_13, %c0_14] : memref<2x1x48xf32, #tpu.memory_space<vmem>>, vector<1x1x48xf32>
    %19 = vector.shape_cast %18 : vector<1x1x48xf32> to vector<1x48xf32>
    %20 = vector.broadcast %19 : vector<1x48xf32> to vector<12x48xf32>
    %21 = arith.addf %17, %20 : vector<12x48xf32>
    %22 = vector.shape_cast %21 : vector<12x48xf32> to vector<6x2x48xf32>
    %c1 = arith.constant 1 : index
    %c0_15 = arith.constant 0 : index
    %c0_16 = arith.constant 0 : index
    %23 = vector.load %arg4[%c1, %c0_15, %c0_16] : memref<2x8x48xf32, #tpu.memory_space<vmem>>, vector<1x8x48xf32>
    %24 = vector.shape_cast %23 : vector<1x8x48xf32> to vector<8x48xf32>
    %25 = arith.truncf %24 : vector<8x48xf32> to vector<8x48xbf16>
    %cst_17 = arith.constant dense<0.000000e+00> : vector<12x48xf32>
    %26 = tpu.matmul %13, %25, %cst_17 {dimension_numbers = #tpu.dot_dimension_numbers<[1], [0], [0], [1], [0, 0, 1, 1], [], []>} : vector<12x8xbf16>, vector<8x48xbf16>, vector<12x48xf32> -> vector<12x48xf32>
    %c1_18 = arith.constant 1 : index
    %c0_19 = arith.constant 0 : index
    %c0_20 = arith.constant 0 : index
    %27 = vector.load %arg6[%c1_18, %c0_19, %c0_20] : memref<2x1x48xf32, #tpu.memory_space<vmem>>, vector<1x1x48xf32>
    %28 = vector.shape_cast %27 : vector<1x1x48xf32> to vector<1x48xf32>
    %29 = vector.broadcast %28 : vector<1x48xf32> to vector<12x48xf32>
    %30 = arith.addf %26, %29 : vector<12x48xf32>
    %31 = vector.shape_cast %30 : vector<12x48xf32> to vector<6x2x48xf32>
    %c0_21 = arith.constant 0 : index
    %c0_22 = arith.constant 0 : index
    %c0_23 = arith.constant 0 : index
    %32 = vector.load %arg5[%c0_21, %c0_22, %c0_23] : memref<2x16x48xf32, #tpu.memory_space<vmem>>, vector<1x16x48xf32>
    %33 = vector.shape_cast %32 : vector<1x16x48xf32> to vector<16x48xf32>
    %34 = arith.truncf %33 : vector<16x48xf32> to vector<16x48xbf16>
    %c1_24 = arith.constant 1 : index
    %c0_25 = arith.constant 0 : index
    %c0_26 = arith.constant 0 : index
    %35 = vector.load %arg5[%c1_24, %c0_25, %c0_26] : memref<2x16x48xf32, #tpu.memory_space<vmem>>, vector<1x16x48xf32>
    %36 = vector.shape_cast %35 : vector<1x16x48xf32> to vector<16x48xf32>
    %37 = arith.truncf %36 : vector<16x48xf32> to vector<16x48xbf16>
    %c0_27 = arith.constant 0 : index
    %c0_28 = arith.constant 0 : index
    %c0_29 = arith.constant 0 : index
    %38 = vector.load %arg7[%c0_27, %c0_28, %c0_29] : memref<2x1x16xf32, #tpu.memory_space<vmem>>, vector<1x1x16xf32>
    %39 = vector.shape_cast %38 : vector<1x1x16xf32> to vector<1x16xf32>
    %c1_30 = arith.constant 1 : index
    %c0_31 = arith.constant 0 : index
    %c0_32 = arith.constant 0 : index
    %40 = vector.load %arg7[%c1_30, %c0_31, %c0_32] : memref<2x1x16xf32, #tpu.memory_space<vmem>>, vector<1x1x16xf32>
    %41 = vector.shape_cast %40 : vector<1x1x16xf32> to vector<1x16xf32>
    %c0_33 = arith.constant 0 : index
    %c0_34 = arith.constant 0 : index
    %c0_35 = arith.constant 0 : index
    %42 = vector.load %arg1[%c0_33, %c0_34, %c0_35] : memref<2x2x16xf32, #tpu.memory_space<vmem>>, vector<1x2x16xf32>
    %43 = vector.shape_cast %42 : vector<1x2x16xf32> to vector<2x16xf32>
    %c1_36 = arith.constant 1 : index
    %c0_37 = arith.constant 0 : index
    %c0_38 = arith.constant 0 : index
    %44 = vector.load %arg1[%c1_36, %c0_37, %c0_38] : memref<2x2x16xf32, #tpu.memory_space<vmem>>, vector<1x2x16xf32>
    %45 = vector.shape_cast %44 : vector<1x2x16xf32> to vector<2x16xf32>
    %46 = vector.extract_strided_slice %22 {offsets = [0, 0, 0], sizes = [1, 2, 48], strides = [1, 1, 1]} : vector<6x2x48xf32> to vector<1x2x48xf32>
    %47 = vector.shape_cast %46 : vector<1x2x48xf32> to vector<2x48xf32>
    %48 = arith.truncf %43 : vector<2x16xf32> to vector<2x16xbf16>
    %cst_39 = arith.constant dense<0.000000e+00> : vector<2x48xf32>
    %49 = tpu.matmul %48, %34, %cst_39 {dimension_numbers = #tpu.dot_dimension_numbers<[1], [0], [0], [1], [0, 0, 1, 1], [], []>} : vector<2x16xbf16>, vector<16x48xbf16>, vector<2x48xf32> -> vector<2x48xf32>
    %50 = vector.extract_strided_slice %47 {offsets = [0, 0], sizes = [2, 16], strides = [1, 1]} : vector<2x48xf32> to vector<2x16xf32>
    %51 = vector.extract_strided_slice %49 {offsets = [0, 0], sizes = [2, 16], strides = [1, 1]} : vector<2x48xf32> to vector<2x16xf32>
    %52 = arith.addf %50, %51 : vector<2x16xf32>
    %53 = arith.negf %52 : vector<2x16xf32>
    %54 = math.exp %53 : vector<2x16xf32>
    %cst_40 = arith.constant 1.000000e+00 : f32
    %55 = vector.broadcast %cst_40 : f32 to vector<2x16xf32>
    %56 = arith.addf %55, %54 : vector<2x16xf32>
    %57 = arith.divf %55, %56 : vector<2x16xf32>
    %58 = vector.extract_strided_slice %47 {offsets = [0, 16], sizes = [2, 16], strides = [1, 1]} : vector<2x48xf32> to vector<2x16xf32>
    %59 = vector.extract_strided_slice %49 {offsets = [0, 16], sizes = [2, 16], strides = [1, 1]} : vector<2x48xf32> to vector<2x16xf32>
    %60 = arith.addf %58, %59 : vector<2x16xf32>
    %61 = arith.negf %60 : vector<2x16xf32>
    %62 = math.exp %61 : vector<2x16xf32>
    %cst_41 = arith.constant 1.000000e+00 : f32
    %63 = vector.broadcast %cst_41 : f32 to vector<2x16xf32>
    %64 = arith.addf %63, %62 : vector<2x16xf32>
    %65 = arith.divf %63, %64 : vector<2x16xf32>
    %66 = vector.extract_strided_slice %47 {offsets = [0, 32], sizes = [2, 16], strides = [1, 1]} : vector<2x48xf32> to vector<2x16xf32>
    %67 = vector.extract_strided_slice %49 {offsets = [0, 32], sizes = [2, 16], strides = [1, 1]} : vector<2x48xf32> to vector<2x16xf32>
    %68 = vector.broadcast %39 : vector<1x16xf32> to vector<2x16xf32>
    %69 = arith.addf %67, %68 : vector<2x16xf32>
    %70 = arith.mulf %57, %69 : vector<2x16xf32>
    %71 = arith.addf %66, %70 : vector<2x16xf32>
    %72 = math.tanh %71 : vector<2x16xf32>
    %cst_42 = arith.constant 1.000000e+00 : f32
    %73 = vector.broadcast %cst_42 : f32 to vector<2x16xf32>
    %74 = arith.subf %73, %65 : vector<2x16xf32>
    %75 = arith.mulf %74, %72 : vector<2x16xf32>
    %76 = arith.mulf %65, %43 : vector<2x16xf32>
    %77 = arith.addf %75, %76 : vector<2x16xf32>
    %78 = vector.extract_strided_slice %31 {offsets = [5, 0, 0], sizes = [1, 2, 48], strides = [1, 1, 1]} : vector<6x2x48xf32> to vector<1x2x48xf32>
    %79 = vector.shape_cast %78 : vector<1x2x48xf32> to vector<2x48xf32>
    %80 = arith.truncf %45 : vector<2x16xf32> to vector<2x16xbf16>
    %cst_43 = arith.constant dense<0.000000e+00> : vector<2x48xf32>
    %81 = tpu.matmul %80, %37, %cst_43 {dimension_numbers = #tpu.dot_dimension_numbers<[1], [0], [0], [1], [0, 0, 1, 1], [], []>} : vector<2x16xbf16>, vector<16x48xbf16>, vector<2x48xf32> -> vector<2x48xf32>
    %82 = vector.extract_strided_slice %79 {offsets = [0, 0], sizes = [2, 16], strides = [1, 1]} : vector<2x48xf32> to vector<2x16xf32>
    %83 = vector.extract_strided_slice %81 {offsets = [0, 0], sizes = [2, 16], strides = [1, 1]} : vector<2x48xf32> to vector<2x16xf32>
    %84 = arith.addf %82, %83 : vector<2x16xf32>
    %85 = arith.negf %84 : vector<2x16xf32>
    %86 = math.exp %85 : vector<2x16xf32>
    %cst_44 = arith.constant 1.000000e+00 : f32
    %87 = vector.broadcast %cst_44 : f32 to vector<2x16xf32>
    %88 = arith.addf %87, %86 : vector<2x16xf32>
    %89 = arith.divf %87, %88 : vector<2x16xf32>
    %90 = vector.extract_strided_slice %79 {offsets = [0, 16], sizes = [2, 16], strides = [1, 1]} : vector<2x48xf32> to vector<2x16xf32>
    %91 = vector.extract_strided_slice %81 {offsets = [0, 16], sizes = [2, 16], strides = [1, 1]} : vector<2x48xf32> to vector<2x16xf32>
    %92 = arith.addf %90, %91 : vector<2x16xf32>
    %93 = arith.negf %92 : vector<2x16xf32>
    %94 = math.exp %93 : vector<2x16xf32>
    %cst_45 = arith.constant 1.000000e+00 : f32
    %95 = vector.broadcast %cst_45 : f32 to vector<2x16xf32>
    %96 = arith.addf %95, %94 : vector<2x16xf32>
    %97 = arith.divf %95, %96 : vector<2x16xf32>
    %98 = vector.extract_strided_slice %79 {offsets = [0, 32], sizes = [2, 16], strides = [1, 1]} : vector<2x48xf32> to vector<2x16xf32>
    %99 = vector.extract_strided_slice %81 {offsets = [0, 32], sizes = [2, 16], strides = [1, 1]} : vector<2x48xf32> to vector<2x16xf32>
    %100 = vector.broadcast %41 : vector<1x16xf32> to vector<2x16xf32>
    %101 = arith.addf %99, %100 : vector<2x16xf32>
    %102 = arith.mulf %89, %101 : vector<2x16xf32>
    %103 = arith.addf %98, %102 : vector<2x16xf32>
    %104 = math.tanh %103 : vector<2x16xf32>
    %cst_46 = arith.constant 1.000000e+00 : f32
    %105 = vector.broadcast %cst_46 : f32 to vector<2x16xf32>
    %106 = arith.subf %105, %97 : vector<2x16xf32>
    %107 = arith.mulf %106, %104 : vector<2x16xf32>
    %108 = arith.mulf %97, %45 : vector<2x16xf32>
    %109 = arith.addf %107, %108 : vector<2x16xf32>
    %c0_47 = arith.constant 0 : index
    %c0_48 = arith.constant 0 : index
    %c0_49 = arith.constant 0 : index
    %110 = vector.load %arg13[%c0_47, %c0_48, %c0_49] : memref<6x2x32xf32, #tpu.memory_space<vmem>>, vector<1x2x16xf32>
    %111 = vector.shape_cast %110 : vector<1x2x16xf32> to vector<2x16xf32>
    %112 = vector.shape_cast %77 : vector<2x16xf32> to vector<1x2x16xf32>
    tpu.vector_store %arg13[%c0_47, %c0_48, %c0_49], %112 {strides = array<i32>} : memref<6x2x32xf32, #tpu.memory_space<vmem>>, vector<1x2x16xf32>,
    %c5 = arith.constant 5 : index
    %c0_50 = arith.constant 0 : index
    %c16 = arith.constant 16 : index
    %113 = vector.load %arg13[%c5, %c0_50, %c16] : memref<6x2x32xf32, #tpu.memory_space<vmem>>, vector<1x2x16xf32>
    %114 = vector.shape_cast %113 : vector<1x2x16xf32> to vector<2x16xf32>
    %115 = vector.shape_cast %109 : vector<2x16xf32> to vector<1x2x16xf32>
    tpu.vector_store %arg13[%c5, %c0_50, %c16], %115 {strides = array<i32>} : memref<6x2x32xf32, #tpu.memory_space<vmem>>, vector<1x2x16xf32>,
    %c0_51 = arith.constant 0 : index
    %c0_52 = arith.constant 0 : index
    %c0_53 = arith.constant 0 : index
    %116 = vector.load %arg17[%c0_51, %c0_52, %c0_53] : memref<2x6x32xf32, #tpu.memory_space<vmem>>, vector<2x1x16xf32>
    %117 = vector.shape_cast %116 : vector<2x1x16xf32> to vector<2x16xf32>
    %118 = vector.shape_cast %77 : vector<2x16xf32> to vector<2x1x16xf32>
    tpu.vector_store %arg17[%c0_51, %c0_52, %c0_53], %118 {strides = array<i32>} : memref<2x6x32xf32, #tpu.memory_space<vmem>>, vector<2x1x16xf32>,
    %c0_54 = arith.constant 0 : index
    %c5_55 = arith.constant 5 : index
    %c16_56 = arith.constant 16 : index
    %119 = vector.load %arg17[%c0_54, %c5_55, %c16_56] : memref<2x6x32xf32, #tpu.memory_space<vmem>>, vector<2x1x16xf32>
    %120 = vector.shape_cast %119 : vector<2x1x16xf32> to vector<2x16xf32>
    %121 = vector.shape_cast %109 : vector<2x16xf32> to vector<2x1x16xf32>
    tpu.vector_store %arg17[%c0_54, %c5_55, %c16_56], %121 {strides = array<i32>} : memref<2x6x32xf32, #tpu.memory_space<vmem>>, vector<2x1x16xf32>,
    %122 = vector.extract_strided_slice %22 {offsets = [1, 0, 0], sizes = [1, 2, 48], strides = [1, 1, 1]} : vector<6x2x48xf32> to vector<1x2x48xf32>
    %123 = vector.shape_cast %122 : vector<1x2x48xf32> to vector<2x48xf32>
    %124 = arith.truncf %77 : vector<2x16xf32> to vector<2x16xbf16>
    %cst_57 = arith.constant dense<0.000000e+00> : vector<2x48xf32>
    %125 = tpu.matmul %124, %34, %cst_57 {dimension_numbers = #tpu.dot_dimension_numbers<[1], [0], [0], [1], [0, 0, 1, 1], [], []>} : vector<2x16xbf16>, vector<16x48xbf16>, vector<2x48xf32> -> vector<2x48xf32>
    %126 = vector.extract_strided_slice %123 {offsets = [0, 0], sizes = [2, 16], strides = [1, 1]} : vector<2x48xf32> to vector<2x16xf32>
    %127 = vector.extract_strided_slice %125 {offsets = [0, 0], sizes = [2, 16], strides = [1, 1]} : vector<2x48xf32> to vector<2x16xf32>
    %128 = arith.addf %126, %127 : vector<2x16xf32>
    %129 = arith.negf %128 : vector<2x16xf32>
    %130 = math.exp %129 : vector<2x16xf32>
    %cst_58 = arith.constant 1.000000e+00 : f32
    %131 = vector.broadcast %cst_58 : f32 to vector<2x16xf32>
    %132 = arith.addf %131, %130 : vector<2x16xf32>
    %133 = arith.divf %131, %132 : vector<2x16xf32>
    %134 = vector.extract_strided_slice %123 {offsets = [0, 16], sizes = [2, 16], strides = [1, 1]} : vector<2x48xf32> to vector<2x16xf32>
    %135 = vector.extract_strided_slice %125 {offsets = [0, 16], sizes = [2, 16], strides = [1, 1]} : vector<2x48xf32> to vector<2x16xf32>
    %136 = arith.addf %134, %135 : vector<2x16xf32>
    %137 = arith.negf %136 : vector<2x16xf32>
    %138 = math.exp %137 : vector<2x16xf32>
    %cst_59 = arith.constant 1.000000e+00 : f32
    %139 = vector.broadcast %cst_59 : f32 to vector<2x16xf32>
    %140 = arith.addf %139, %138 : vector<2x16xf32>
    %141 = arith.divf %139, %140 : vector<2x16xf32>
    %142 = vector.extract_strided_slice %123 {offsets = [0, 32], sizes = [2, 16], strides = [1, 1]} : vector<2x48xf32> to vector<2x16xf32>
    %143 = vector.extract_strided_slice %125 {offsets = [0, 32], sizes = [2, 16], strides = [1, 1]} : vector<2x48xf32> to vector<2x16xf32>
    %144 = vector.broadcast %39 : vector<1x16xf32> to vector<2x16xf32>
    %145 = arith.addf %143, %144 : vector<2x16xf32>
    %146 = arith.mulf %133, %145 : vector<2x16xf32>
    %147 = arith.addf %142, %146 : vector<2x16xf32>
    %148 = math.tanh %147 : vector<2x16xf32>
    %cst_60 = arith.constant 1.000000e+00 : f32
    %149 = vector.broadcast %cst_60 : f32 to vector<2x16xf32>
    %150 = arith.subf %149, %141 : vector<2x16xf32>
    %151 = arith.mulf %150, %148 : vector<2x16xf32>
    %152 = arith.mulf %141, %77 : vector<2x16xf32>
    %153 = arith.addf %151, %152 : vector<2x16xf32>
    %154 = vector.extract_strided_slice %31 {offsets = [4, 0, 0], sizes = [1, 2, 48], strides = [1, 1, 1]} : vector<6x2x48xf32> to vector<1x2x48xf32>
    %155 = vector.shape_cast %154 : vector<1x2x48xf32> to vector<2x48xf32>
    %156 = arith.truncf %109 : vector<2x16xf32> to vector<2x16xbf16>
    %cst_61 = arith.constant dense<0.000000e+00> : vector<2x48xf32>
    %157 = tpu.matmul %156, %37, %cst_61 {dimension_numbers = #tpu.dot_dimension_numbers<[1], [0], [0], [1], [0, 0, 1, 1], [], []>} : vector<2x16xbf16>, vector<16x48xbf16>, vector<2x48xf32> -> vector<2x48xf32>
    %158 = vector.extract_strided_slice %155 {offsets = [0, 0], sizes = [2, 16], strides = [1, 1]} : vector<2x48xf32> to vector<2x16xf32>
    %159 = vector.extract_strided_slice %157 {offsets = [0, 0], sizes = [2, 16], strides = [1, 1]} : vector<2x48xf32> to vector<2x16xf32>
    %160 = arith.addf %158, %159 : vector<2x16xf32>
    %161 = arith.negf %160 : vector<2x16xf32>
    %162 = math.exp %161 : vector<2x16xf32>
    %cst_62 = arith.constant 1.000000e+00 : f32
    %163 = vector.broadcast %cst_62 : f32 to vector<2x16xf32>
    %164 = arith.addf %163, %162 : vector<2x16xf32>
    %165 = arith.divf %163, %164 : vector<2x16xf32>
    %166 = vector.extract_strided_slice %155 {offsets = [0, 16], sizes = [2, 16], strides = [1, 1]} : vector<2x48xf32> to vector<2x16xf32>
    %167 = vector.extract_strided_slice %157 {offsets = [0, 16], sizes = [2, 16], strides = [1, 1]} : vector<2x48xf32> to vector<2x16xf32>
    %168 = arith.addf %166, %167 : vector<2x16xf32>
    %169 = arith.negf %168 : vector<2x16xf32>
    %170 = math.exp %169 : vector<2x16xf32>
    %cst_63 = arith.constant 1.000000e+00 : f32
    %171 = vector.broadcast %cst_63 : f32 to vector<2x16xf32>
    %172 = arith.addf %171, %170 : vector<2x16xf32>
    %173 = arith.divf %171, %172 : vector<2x16xf32>
    %174 = vector.extract_strided_slice %155 {offsets = [0, 32], sizes = [2, 16], strides = [1, 1]} : vector<2x48xf32> to vector<2x16xf32>
    %175 = vector.extract_strided_slice %157 {offsets = [0, 32], sizes = [2, 16], strides = [1, 1]} : vector<2x48xf32> to vector<2x16xf32>
    %176 = vector.broadcast %41 : vector<1x16xf32> to vector<2x16xf32>
    %177 = arith.addf %175, %176 : vector<2x16xf32>
    %178 = arith.mulf %165, %177 : vector<2x16xf32>
    %179 = arith.addf %174, %178 : vector<2x16xf32>
    %180 = math.tanh %179 : vector<2x16xf32>
    %cst_64 = arith.constant 1.000000e+00 : f32
    %181 = vector.broadcast %cst_64 : f32 to vector<2x16xf32>
    %182 = arith.subf %181, %173 : vector<2x16xf32>
    %183 = arith.mulf %182, %180 : vector<2x16xf32>
    %184 = arith.mulf %173, %109 : vector<2x16xf32>
    %185 = arith.addf %183, %184 : vector<2x16xf32>
    %c1_65 = arith.constant 1 : index
    %c0_66 = arith.constant 0 : index
    %c0_67 = arith.constant 0 : index
    %186 = vector.load %arg13[%c1_65, %c0_66, %c0_67] : memref<6x2x32xf32, #tpu.memory_space<vmem>>, vector<1x2x16xf32>
    %187 = vector.shape_cast %186 : vector<1x2x16xf32> to vector<2x16xf32>
    %188 = vector.shape_cast %153 : vector<2x16xf32> to vector<1x2x16xf32>
    tpu.vector_store %arg13[%c1_65, %c0_66, %c0_67], %188 {strides = array<i32>} : memref<6x2x32xf32, #tpu.memory_space<vmem>>, vector<1x2x16xf32>,
    %c4 = arith.constant 4 : index
    %c0_68 = arith.constant 0 : index
    %c16_69 = arith.constant 16 : index
    %189 = vector.load %arg13[%c4, %c0_68, %c16_69] : memref<6x2x32xf32, #tpu.memory_space<vmem>>, vector<1x2x16xf32>
    %190 = vector.shape_cast %189 : vector<1x2x16xf32> to vector<2x16xf32>
    %191 = vector.shape_cast %185 : vector<2x16xf32> to vector<1x2x16xf32>
    tpu.vector_store %arg13[%c4, %c0_68, %c16_69], %191 {strides = array<i32>} : memref<6x2x32xf32, #tpu.memory_space<vmem>>, vector<1x2x16xf32>,
    %c0_70 = arith.constant 0 : index
    %c1_71 = arith.constant 1 : index
    %c0_72 = arith.constant 0 : index
    %192 = vector.load %arg17[%c0_70, %c1_71, %c0_72] : memref<2x6x32xf32, #tpu.memory_space<vmem>>, vector<2x1x16xf32>
    %193 = vector.shape_cast %192 : vector<2x1x16xf32> to vector<2x16xf32>
    %194 = vector.shape_cast %153 : vector<2x16xf32> to vector<2x1x16xf32>
    tpu.vector_store %arg17[%c0_70, %c1_71, %c0_72], %194 {strides = array<i32>} : memref<2x6x32xf32, #tpu.memory_space<vmem>>, vector<2x1x16xf32>,
    %c0_73 = arith.constant 0 : index
    %c4_74 = arith.constant 4 : index
    %c16_75 = arith.constant 16 : index
    %195 = vector.load %arg17[%c0_73, %c4_74, %c16_75] : memref<2x6x32xf32, #tpu.memory_space<vmem>>, vector<2x1x16xf32>
    %196 = vector.shape_cast %195 : vector<2x1x16xf32> to vector<2x16xf32>
    %197 = vector.shape_cast %185 : vector<2x16xf32> to vector<2x1x16xf32>
    tpu.vector_store %arg17[%c0_73, %c4_74, %c16_75], %197 {strides = array<i32>} : memref<2x6x32xf32, #tpu.memory_space<vmem>>, vector<2x1x16xf32>,
    %198 = vector.extract_strided_slice %22 {offsets = [2, 0, 0], sizes = [1, 2, 48], strides = [1, 1, 1]} : vector<6x2x48xf32> to vector<1x2x48xf32>
    %199 = vector.shape_cast %198 : vector<1x2x48xf32> to vector<2x48xf32>
    %200 = arith.truncf %153 : vector<2x16xf32> to vector<2x16xbf16>
    %cst_76 = arith.constant dense<0.000000e+00> : vector<2x48xf32>
    %201 = tpu.matmul %200, %34, %cst_76 {dimension_numbers = #tpu.dot_dimension_numbers<[1], [0], [0], [1], [0, 0, 1, 1], [], []>} : vector<2x16xbf16>, vector<16x48xbf16>, vector<2x48xf32> -> vector<2x48xf32>
    %202 = vector.extract_strided_slice %199 {offsets = [0, 0], sizes = [2, 16], strides = [1, 1]} : vector<2x48xf32> to vector<2x16xf32>
    %203 = vector.extract_strided_slice %201 {offsets = [0, 0], sizes = [2, 16], strides = [1, 1]} : vector<2x48xf32> to vector<2x16xf32>
    %204 = arith.addf %202, %203 : vector<2x16xf32>
    %205 = arith.negf %204 : vector<2x16xf32>
    %206 = math.exp %205 : vector<2x16xf32>
    %cst_77 = arith.constant 1.000000e+00 : f32
    %207 = vector.broadcast %cst_77 : f32 to vector<2x16xf32>
    %208 = arith.addf %207, %206 : vector<2x16xf32>
    %209 = arith.divf %207, %208 : vector<2x16xf32>
    %210 = vector.extract_strided_slice %199 {offsets = [0, 16], sizes = [2, 16], strides = [1, 1]} : vector<2x48xf32> to vector<2x16xf32>
    %211 = vector.extract_strided_slice %201 {offsets = [0, 16], sizes = [2, 16], strides = [1, 1]} : vector<2x48xf32> to vector<2x16xf32>
    %212 = arith.addf %210, %211 : vector<2x16xf32>
    %213 = arith.negf %212 : vector<2x16xf32>
    %214 = math.exp %213 : vector<2x16xf32>
    %cst_78 = arith.constant 1.000000e+00 : f32
    %215 = vector.broadcast %cst_78 : f32 to vector<2x16xf32>
    %216 = arith.addf %215, %214 : vector<2x16xf32>
    %217 = arith.divf %215, %216 : vector<2x16xf32>
    %218 = vector.extract_strided_slice %199 {offsets = [0, 32], sizes = [2, 16], strides = [1, 1]} : vector<2x48xf32> to vector<2x16xf32>
    %219 = vector.extract_strided_slice %201 {offsets = [0, 32], sizes = [2, 16], strides = [1, 1]} : vector<2x48xf32> to vector<2x16xf32>
    %220 = vector.broadcast %39 : vector<1x16xf32> to vector<2x16xf32>
    %221 = arith.addf %219, %220 : vector<2x16xf32>
    %222 = arith.mulf %209, %221 : vector<2x16xf32>
    %223 = arith.addf %218, %222 : vector<2x16xf32>
    %224 = math.tanh %223 : vector<2x16xf32>
    %cst_79 = arith.constant 1.000000e+00 : f32
    %225 = vector.broadcast %cst_79 : f32 to vector<2x16xf32>
    %226 = arith.subf %225, %217 : vector<2x16xf32>
    %227 = arith.mulf %226, %224 : vector<2x16xf32>
    %228 = arith.mulf %217, %153 : vector<2x16xf32>
    %229 = arith.addf %227, %228 : vector<2x16xf32>
    %230 = vector.extract_strided_slice %31 {offsets = [3, 0, 0], sizes = [1, 2, 48], strides = [1, 1, 1]} : vector<6x2x48xf32> to vector<1x2x48xf32>
    %231 = vector.shape_cast %230 : vector<1x2x48xf32> to vector<2x48xf32>
    %232 = arith.truncf %185 : vector<2x16xf32> to vector<2x16xbf16>
    %cst_80 = arith.constant dense<0.000000e+00> : vector<2x48xf32>
    %233 = tpu.matmul %232, %37, %cst_80 {dimension_numbers = #tpu.dot_dimension_numbers<[1], [0], [0], [1], [0, 0, 1, 1], [], []>} : vector<2x16xbf16>, vector<16x48xbf16>, vector<2x48xf32> -> vector<2x48xf32>
    %234 = vector.extract_strided_slice %231 {offsets = [0, 0], sizes = [2, 16], strides = [1, 1]} : vector<2x48xf32> to vector<2x16xf32>
    %235 = vector.extract_strided_slice %233 {offsets = [0, 0], sizes = [2, 16], strides = [1, 1]} : vector<2x48xf32> to vector<2x16xf32>
    %236 = arith.addf %234, %235 : vector<2x16xf32>
    %237 = arith.negf %236 : vector<2x16xf32>
    %238 = math.exp %237 : vector<2x16xf32>
    %cst_81 = arith.constant 1.000000e+00 : f32
    %239 = vector.broadcast %cst_81 : f32 to vector<2x16xf32>
    %240 = arith.addf %239, %238 : vector<2x16xf32>
    %241 = arith.divf %239, %240 : vector<2x16xf32>
    %242 = vector.extract_strided_slice %231 {offsets = [0, 16], sizes = [2, 16], strides = [1, 1]} : vector<2x48xf32> to vector<2x16xf32>
    %243 = vector.extract_strided_slice %233 {offsets = [0, 16], sizes = [2, 16], strides = [1, 1]} : vector<2x48xf32> to vector<2x16xf32>
    %244 = arith.addf %242, %243 : vector<2x16xf32>
    %245 = arith.negf %244 : vector<2x16xf32>
    %246 = math.exp %245 : vector<2x16xf32>
    %cst_82 = arith.constant 1.000000e+00 : f32
    %247 = vector.broadcast %cst_82 : f32 to vector<2x16xf32>
    %248 = arith.addf %247, %246 : vector<2x16xf32>
    %249 = arith.divf %247, %248 : vector<2x16xf32>
    %250 = vector.extract_strided_slice %231 {offsets = [0, 32], sizes = [2, 16], strides = [1, 1]} : vector<2x48xf32> to vector<2x16xf32>
    %251 = vector.extract_strided_slice %233 {offsets = [0, 32], sizes = [2, 16], strides = [1, 1]} : vector<2x48xf32> to vector<2x16xf32>
    %252 = vector.broadcast %41 : vector<1x16xf32> to vector<2x16xf32>
    %253 = arith.addf %251, %252 : vector<2x16xf32>
    %254 = arith.mulf %241, %253 : vector<2x16xf32>
    %255 = arith.addf %250, %254 : vector<2x16xf32>
    %256 = math.tanh %255 : vector<2x16xf32>
    %cst_83 = arith.constant 1.000000e+00 : f32
    %257 = vector.broadcast %cst_83 : f32 to vector<2x16xf32>
    %258 = arith.subf %257, %249 : vector<2x16xf32>
    %259 = arith.mulf %258, %256 : vector<2x16xf32>
    %260 = arith.mulf %249, %185 : vector<2x16xf32>
    %261 = arith.addf %259, %260 : vector<2x16xf32>
    %c2 = arith.constant 2 : index
    %c0_84 = arith.constant 0 : index
    %c0_85 = arith.constant 0 : index
    %262 = vector.load %arg13[%c2, %c0_84, %c0_85] : memref<6x2x32xf32, #tpu.memory_space<vmem>>, vector<1x2x16xf32>
    %263 = vector.shape_cast %262 : vector<1x2x16xf32> to vector<2x16xf32>
    %264 = vector.shape_cast %229 : vector<2x16xf32> to vector<1x2x16xf32>
    tpu.vector_store %arg13[%c2, %c0_84, %c0_85], %264 {strides = array<i32>} : memref<6x2x32xf32, #tpu.memory_space<vmem>>, vector<1x2x16xf32>,
    %c3 = arith.constant 3 : index
    %c0_86 = arith.constant 0 : index
    %c16_87 = arith.constant 16 : index
    %265 = vector.load %arg13[%c3, %c0_86, %c16_87] : memref<6x2x32xf32, #tpu.memory_space<vmem>>, vector<1x2x16xf32>
    %266 = vector.shape_cast %265 : vector<1x2x16xf32> to vector<2x16xf32>
    %267 = vector.shape_cast %261 : vector<2x16xf32> to vector<1x2x16xf32>
    tpu.vector_store %arg13[%c3, %c0_86, %c16_87], %267 {strides = array<i32>} : memref<6x2x32xf32, #tpu.memory_space<vmem>>, vector<1x2x16xf32>,
    %c0_88 = arith.constant 0 : index
    %c2_89 = arith.constant 2 : index
    %c0_90 = arith.constant 0 : index
    %268 = vector.load %arg17[%c0_88, %c2_89, %c0_90] : memref<2x6x32xf32, #tpu.memory_space<vmem>>, vector<2x1x16xf32>
    %269 = vector.shape_cast %268 : vector<2x1x16xf32> to vector<2x16xf32>
    %270 = vector.shape_cast %229 : vector<2x16xf32> to vector<2x1x16xf32>
    tpu.vector_store %arg17[%c0_88, %c2_89, %c0_90], %270 {strides = array<i32>} : memref<2x6x32xf32, #tpu.memory_space<vmem>>, vector<2x1x16xf32>,
    %c0_91 = arith.constant 0 : index
    %c3_92 = arith.constant 3 : index
    %c16_93 = arith.constant 16 : index
    %271 = vector.load %arg17[%c0_91, %c3_92, %c16_93] : memref<2x6x32xf32, #tpu.memory_space<vmem>>, vector<2x1x16xf32>
    %272 = vector.shape_cast %271 : vector<2x1x16xf32> to vector<2x16xf32>
    %273 = vector.shape_cast %261 : vector<2x16xf32> to vector<2x1x16xf32>
    tpu.vector_store %arg17[%c0_91, %c3_92, %c16_93], %273 {strides = array<i32>} : memref<2x6x32xf32, #tpu.memory_space<vmem>>, vector<2x1x16xf32>,
    %274 = vector.extract_strided_slice %22 {offsets = [3, 0, 0], sizes = [1, 2, 48], strides = [1, 1, 1]} : vector<6x2x48xf32> to vector<1x2x48xf32>
    %275 = vector.shape_cast %274 : vector<1x2x48xf32> to vector<2x48xf32>
    %276 = arith.truncf %229 : vector<2x16xf32> to vector<2x16xbf16>
    %cst_94 = arith.constant dense<0.000000e+00> : vector<2x48xf32>
    %277 = tpu.matmul %276, %34, %cst_94 {dimension_numbers = #tpu.dot_dimension_numbers<[1], [0], [0], [1], [0, 0, 1, 1], [], []>} : vector<2x16xbf16>, vector<16x48xbf16>, vector<2x48xf32> -> vector<2x48xf32>
    %278 = vector.extract_strided_slice %275 {offsets = [0, 0], sizes = [2, 16], strides = [1, 1]} : vector<2x48xf32> to vector<2x16xf32>
    %279 = vector.extract_strided_slice %277 {offsets = [0, 0], sizes = [2, 16], strides = [1, 1]} : vector<2x48xf32> to vector<2x16xf32>
    %280 = arith.addf %278, %279 : vector<2x16xf32>
    %281 = arith.negf %280 : vector<2x16xf32>
    %282 = math.exp %281 : vector<2x16xf32>
    %cst_95 = arith.constant 1.000000e+00 : f32
    %283 = vector.broadcast %cst_95 : f32 to vector<2x16xf32>
    %284 = arith.addf %283, %282 : vector<2x16xf32>
    %285 = arith.divf %283, %284 : vector<2x16xf32>
    %286 = vector.extract_strided_slice %275 {offsets = [0, 16], sizes = [2, 16], strides = [1, 1]} : vector<2x48xf32> to vector<2x16xf32>
    %287 = vector.extract_strided_slice %277 {offsets = [0, 16], sizes = [2, 16], strides = [1, 1]} : vector<2x48xf32> to vector<2x16xf32>
    %288 = arith.addf %286, %287 : vector<2x16xf32>
    %289 = arith.negf %288 : vector<2x16xf32>
    %290 = math.exp %289 : vector<2x16xf32>
    %cst_96 = arith.constant 1.000000e+00 : f32
    %291 = vector.broadcast %cst_96 : f32 to vector<2x16xf32>
    %292 = arith.addf %291, %290 : vector<2x16xf32>
    %293 = arith.divf %291, %292 : vector<2x16xf32>
    %294 = vector.extract_strided_slice %275 {offsets = [0, 32], sizes = [2, 16], strides = [1, 1]} : vector<2x48xf32> to vector<2x16xf32>
    %295 = vector.extract_strided_slice %277 {offsets = [0, 32], sizes = [2, 16], strides = [1, 1]} : vector<2x48xf32> to vector<2x16xf32>
    %296 = vector.broadcast %39 : vector<1x16xf32> to vector<2x16xf32>
    %297 = arith.addf %295, %296 : vector<2x16xf32>
    %298 = arith.mulf %285, %297 : vector<2x16xf32>
    %299 = arith.addf %294, %298 : vector<2x16xf32>
    %300 = math.tanh %299 : vector<2x16xf32>
    %cst_97 = arith.constant 1.000000e+00 : f32
    %301 = vector.broadcast %cst_97 : f32 to vector<2x16xf32>
    %302 = arith.subf %301, %293 : vector<2x16xf32>
    %303 = arith.mulf %302, %300 : vector<2x16xf32>
    %304 = arith.mulf %293, %229 : vector<2x16xf32>
    %305 = arith.addf %303, %304 : vector<2x16xf32>
    %306 = vector.extract_strided_slice %31 {offsets = [2, 0, 0], sizes = [1, 2, 48], strides = [1, 1, 1]} : vector<6x2x48xf32> to vector<1x2x48xf32>
    %307 = vector.shape_cast %306 : vector<1x2x48xf32> to vector<2x48xf32>
    %308 = arith.truncf %261 : vector<2x16xf32> to vector<2x16xbf16>
    %cst_98 = arith.constant dense<0.000000e+00> : vector<2x48xf32>
    %309 = tpu.matmul %308, %37, %cst_98 {dimension_numbers = #tpu.dot_dimension_numbers<[1], [0], [0], [1], [0, 0, 1, 1], [], []>} : vector<2x16xbf16>, vector<16x48xbf16>, vector<2x48xf32> -> vector<2x48xf32>
    %310 = vector.extract_strided_slice %307 {offsets = [0, 0], sizes = [2, 16], strides = [1, 1]} : vector<2x48xf32> to vector<2x16xf32>
    %311 = vector.extract_strided_slice %309 {offsets = [0, 0], sizes = [2, 16], strides = [1, 1]} : vector<2x48xf32> to vector<2x16xf32>
    %312 = arith.addf %310, %311 : vector<2x16xf32>
    %313 = arith.negf %312 : vector<2x16xf32>
    %314 = math.exp %313 : vector<2x16xf32>
    %cst_99 = arith.constant 1.000000e+00 : f32
    %315 = vector.broadcast %cst_99 : f32 to vector<2x16xf32>
    %316 = arith.addf %315, %314 : vector<2x16xf32>
    %317 = arith.divf %315, %316 : vector<2x16xf32>
    %318 = vector.extract_strided_slice %307 {offsets = [0, 16], sizes = [2, 16], strides = [1, 1]} : vector<2x48xf32> to vector<2x16xf32>
    %319 = vector.extract_strided_slice %309 {offsets = [0, 16], sizes = [2, 16], strides = [1, 1]} : vector<2x48xf32> to vector<2x16xf32>
    %320 = arith.addf %318, %319 : vector<2x16xf32>
    %321 = arith.negf %320 : vector<2x16xf32>
    %322 = math.exp %321 : vector<2x16xf32>
    %cst_100 = arith.constant 1.000000e+00 : f32
    %323 = vector.broadcast %cst_100 : f32 to vector<2x16xf32>
    %324 = arith.addf %323, %322 : vector<2x16xf32>
    %325 = arith.divf %323, %324 : vector<2x16xf32>
    %326 = vector.extract_strided_slice %307 {offsets = [0, 32], sizes = [2, 16], strides = [1, 1]} : vector<2x48xf32> to vector<2x16xf32>
    %327 = vector.extract_strided_slice %309 {offsets = [0, 32], sizes = [2, 16], strides = [1, 1]} : vector<2x48xf32> to vector<2x16xf32>
    %328 = vector.broadcast %41 : vector<1x16xf32> to vector<2x16xf32>
    %329 = arith.addf %327, %328 : vector<2x16xf32>
    %330 = arith.mulf %317, %329 : vector<2x16xf32>
    %331 = arith.addf %326, %330 : vector<2x16xf32>
    %332 = math.tanh %331 : vector<2x16xf32>
    %cst_101 = arith.constant 1.000000e+00 : f32
    %333 = vector.broadcast %cst_101 : f32 to vector<2x16xf32>
    %334 = arith.subf %333, %325 : vector<2x16xf32>
    %335 = arith.mulf %334, %332 : vector<2x16xf32>
    %336 = arith.mulf %325, %261 : vector<2x16xf32>
    %337 = arith.addf %335, %336 : vector<2x16xf32>
    %c3_102 = arith.constant 3 : index
    %c0_103 = arith.constant 0 : index
    %c0_104 = arith.constant 0 : index
    %338 = vector.load %arg13[%c3_102, %c0_103, %c0_104] : memref<6x2x32xf32, #tpu.memory_space<vmem>>, vector<1x2x16xf32>
    %339 = vector.shape_cast %338 : vector<1x2x16xf32> to vector<2x16xf32>
    %340 = vector.shape_cast %305 : vector<2x16xf32> to vector<1x2x16xf32>
    tpu.vector_store %arg13[%c3_102, %c0_103, %c0_104], %340 {strides = array<i32>} : memref<6x2x32xf32, #tpu.memory_space<vmem>>, vector<1x2x16xf32>,
    %c2_105 = arith.constant 2 : index
    %c0_106 = arith.constant 0 : index
    %c16_107 = arith.constant 16 : index
    %341 = vector.load %arg13[%c2_105, %c0_106, %c16_107] : memref<6x2x32xf32, #tpu.memory_space<vmem>>, vector<1x2x16xf32>
    %342 = vector.shape_cast %341 : vector<1x2x16xf32> to vector<2x16xf32>
    %343 = vector.shape_cast %337 : vector<2x16xf32> to vector<1x2x16xf32>
    tpu.vector_store %arg13[%c2_105, %c0_106, %c16_107], %343 {strides = array<i32>} : memref<6x2x32xf32, #tpu.memory_space<vmem>>, vector<1x2x16xf32>,
    %c0_108 = arith.constant 0 : index
    %c3_109 = arith.constant 3 : index
    %c0_110 = arith.constant 0 : index
    %344 = vector.load %arg17[%c0_108, %c3_109, %c0_110] : memref<2x6x32xf32, #tpu.memory_space<vmem>>, vector<2x1x16xf32>
    %345 = vector.shape_cast %344 : vector<2x1x16xf32> to vector<2x16xf32>
    %346 = vector.shape_cast %305 : vector<2x16xf32> to vector<2x1x16xf32>
    tpu.vector_store %arg17[%c0_108, %c3_109, %c0_110], %346 {strides = array<i32>} : memref<2x6x32xf32, #tpu.memory_space<vmem>>, vector<2x1x16xf32>,
    %c0_111 = arith.constant 0 : index
    %c2_112 = arith.constant 2 : index
    %c16_113 = arith.constant 16 : index
    %347 = vector.load %arg17[%c0_111, %c2_112, %c16_113] : memref<2x6x32xf32, #tpu.memory_space<vmem>>, vector<2x1x16xf32>
    %348 = vector.shape_cast %347 : vector<2x1x16xf32> to vector<2x16xf32>
    %349 = vector.shape_cast %337 : vector<2x16xf32> to vector<2x1x16xf32>
    tpu.vector_store %arg17[%c0_111, %c2_112, %c16_113], %349 {strides = array<i32>} : memref<2x6x32xf32, #tpu.memory_space<vmem>>, vector<2x1x16xf32>,
    %350 = vector.extract_strided_slice %22 {offsets = [4, 0, 0], sizes = [1, 2, 48], strides = [1, 1, 1]} : vector<6x2x48xf32> to vector<1x2x48xf32>
    %351 = vector.shape_cast %350 : vector<1x2x48xf32> to vector<2x48xf32>
    %352 = arith.truncf %305 : vector<2x16xf32> to vector<2x16xbf16>
    %cst_114 = arith.constant dense<0.000000e+00> : vector<2x48xf32>
    %353 = tpu.matmul %352, %34, %cst_114 {dimension_numbers = #tpu.dot_dimension_numbers<[1], [0], [0], [1], [0, 0, 1, 1], [], []>} : vector<2x16xbf16>, vector<16x48xbf16>, vector<2x48xf32> -> vector<2x48xf32>
    %354 = vector.extract_strided_slice %351 {offsets = [0, 0], sizes = [2, 16], strides = [1, 1]} : vector<2x48xf32> to vector<2x16xf32>
    %355 = vector.extract_strided_slice %353 {offsets = [0, 0], sizes = [2, 16], strides = [1, 1]} : vector<2x48xf32> to vector<2x16xf32>
    %356 = arith.addf %354, %355 : vector<2x16xf32>
    %357 = arith.negf %356 : vector<2x16xf32>
    %358 = math.exp %357 : vector<2x16xf32>
    %cst_115 = arith.constant 1.000000e+00 : f32
    %359 = vector.broadcast %cst_115 : f32 to vector<2x16xf32>
    %360 = arith.addf %359, %358 : vector<2x16xf32>
    %361 = arith.divf %359, %360 : vector<2x16xf32>
    %362 = vector.extract_strided_slice %351 {offsets = [0, 16], sizes = [2, 16], strides = [1, 1]} : vector<2x48xf32> to vector<2x16xf32>
    %363 = vector.extract_strided_slice %353 {offsets = [0, 16], sizes = [2, 16], strides = [1, 1]} : vector<2x48xf32> to vector<2x16xf32>
    %364 = arith.addf %362, %363 : vector<2x16xf32>
    %365 = arith.negf %364 : vector<2x16xf32>
    %366 = math.exp %365 : vector<2x16xf32>
    %cst_116 = arith.constant 1.000000e+00 : f32
    %367 = vector.broadcast %cst_116 : f32 to vector<2x16xf32>
    %368 = arith.addf %367, %366 : vector<2x16xf32>
    %369 = arith.divf %367, %368 : vector<2x16xf32>
    %370 = vector.extract_strided_slice %351 {offsets = [0, 32], sizes = [2, 16], strides = [1, 1]} : vector<2x48xf32> to vector<2x16xf32>
    %371 = vector.extract_strided_slice %353 {offsets = [0, 32], sizes = [2, 16], strides = [1, 1]} : vector<2x48xf32> to vector<2x16xf32>
    %372 = vector.broadcast %39 : vector<1x16xf32> to vector<2x16xf32>
    %373 = arith.addf %371, %372 : vector<2x16xf32>
    %374 = arith.mulf %361, %373 : vector<2x16xf32>
    %375 = arith.addf %370, %374 : vector<2x16xf32>
    %376 = math.tanh %375 : vector<2x16xf32>
    %cst_117 = arith.constant 1.000000e+00 : f32
    %377 = vector.broadcast %cst_117 : f32 to vector<2x16xf32>
    %378 = arith.subf %377, %369 : vector<2x16xf32>
    %379 = arith.mulf %378, %376 : vector<2x16xf32>
    %380 = arith.mulf %369, %305 : vector<2x16xf32>
    %381 = arith.addf %379, %380 : vector<2x16xf32>
    %382 = vector.extract_strided_slice %31 {offsets = [1, 0, 0], sizes = [1, 2, 48], strides = [1, 1, 1]} : vector<6x2x48xf32> to vector<1x2x48xf32>
    %383 = vector.shape_cast %382 : vector<1x2x48xf32> to vector<2x48xf32>
    %384 = arith.truncf %337 : vector<2x16xf32> to vector<2x16xbf16>
    %cst_118 = arith.constant dense<0.000000e+00> : vector<2x48xf32>
    %385 = tpu.matmul %384, %37, %cst_118 {dimension_numbers = #tpu.dot_dimension_numbers<[1], [0], [0], [1], [0, 0, 1, 1], [], []>} : vector<2x16xbf16>, vector<16x48xbf16>, vector<2x48xf32> -> vector<2x48xf32>
    %386 = vector.extract_strided_slice %383 {offsets = [0, 0], sizes = [2, 16], strides = [1, 1]} : vector<2x48xf32> to vector<2x16xf32>
    %387 = vector.extract_strided_slice %385 {offsets = [0, 0], sizes = [2, 16], strides = [1, 1]} : vector<2x48xf32> to vector<2x16xf32>
    %388 = arith.addf %386, %387 : vector<2x16xf32>
    %389 = arith.negf %388 : vector<2x16xf32>
    %390 = math.exp %389 : vector<2x16xf32>
    %cst_119 = arith.constant 1.000000e+00 : f32
    %391 = vector.broadcast %cst_119 : f32 to vector<2x16xf32>
    %392 = arith.addf %391, %390 : vector<2x16xf32>
    %393 = arith.divf %391, %392 : vector<2x16xf32>
    %394 = vector.extract_strided_slice %383 {offsets = [0, 16], sizes = [2, 16], strides = [1, 1]} : vector<2x48xf32> to vector<2x16xf32>
    %395 = vector.extract_strided_slice %385 {offsets = [0, 16], sizes = [2, 16], strides = [1, 1]} : vector<2x48xf32> to vector<2x16xf32>
    %396 = arith.addf %394, %395 : vector<2x16xf32>
    %397 = arith.negf %396 : vector<2x16xf32>
    %398 = math.exp %397 : vector<2x16xf32>
    %cst_120 = arith.constant 1.000000e+00 : f32
    %399 = vector.broadcast %cst_120 : f32 to vector<2x16xf32>
    %400 = arith.addf %399, %398 : vector<2x16xf32>
    %401 = arith.divf %399, %400 : vector<2x16xf32>
    %402 = vector.extract_strided_slice %383 {offsets = [0, 32], sizes = [2, 16], strides = [1, 1]} : vector<2x48xf32> to vector<2x16xf32>
    %403 = vector.extract_strided_slice %385 {offsets = [0, 32], sizes = [2, 16], strides = [1, 1]} : vector<2x48xf32> to vector<2x16xf32>
    %404 = vector.broadcast %41 : vector<1x16xf32> to vector<2x16xf32>
    %405 = arith.addf %403, %404 : vector<2x16xf32>
    %406 = arith.mulf %393, %405 : vector<2x16xf32>
    %407 = arith.addf %402, %406 : vector<2x16xf32>
    %408 = math.tanh %407 : vector<2x16xf32>
    %cst_121 = arith.constant 1.000000e+00 : f32
    %409 = vector.broadcast %cst_121 : f32 to vector<2x16xf32>
    %410 = arith.subf %409, %401 : vector<2x16xf32>
    %411 = arith.mulf %410, %408 : vector<2x16xf32>
    %412 = arith.mulf %401, %337 : vector<2x16xf32>
    %413 = arith.addf %411, %412 : vector<2x16xf32>
    %c4_122 = arith.constant 4 : index
    %c0_123 = arith.constant 0 : index
    %c0_124 = arith.constant 0 : index
    %414 = vector.load %arg13[%c4_122, %c0_123, %c0_124] : memref<6x2x32xf32, #tpu.memory_space<vmem>>, vector<1x2x16xf32>
    %415 = vector.shape_cast %414 : vector<1x2x16xf32> to vector<2x16xf32>
    %416 = vector.shape_cast %381 : vector<2x16xf32> to vector<1x2x16xf32>
    tpu.vector_store %arg13[%c4_122, %c0_123, %c0_124], %416 {strides = array<i32>} : memref<6x2x32xf32, #tpu.memory_space<vmem>>, vector<1x2x16xf32>,
    %c1_125 = arith.constant 1 : index
    %c0_126 = arith.constant 0 : index
    %c16_127 = arith.constant 16 : index
    %417 = vector.load %arg13[%c1_125, %c0_126, %c16_127] : memref<6x2x32xf32, #tpu.memory_space<vmem>>, vector<1x2x16xf32>
    %418 = vector.shape_cast %417 : vector<1x2x16xf32> to vector<2x16xf32>
    %419 = vector.shape_cast %413 : vector<2x16xf32> to vector<1x2x16xf32>
    tpu.vector_store %arg13[%c1_125, %c0_126, %c16_127], %419 {strides = array<i32>} : memref<6x2x32xf32, #tpu.memory_space<vmem>>, vector<1x2x16xf32>,
    %c0_128 = arith.constant 0 : index
    %c4_129 = arith.constant 4 : index
    %c0_130 = arith.constant 0 : index
    %420 = vector.load %arg17[%c0_128, %c4_129, %c0_130] : memref<2x6x32xf32, #tpu.memory_space<vmem>>, vector<2x1x16xf32>
    %421 = vector.shape_cast %420 : vector<2x1x16xf32> to vector<2x16xf32>
    %422 = vector.shape_cast %381 : vector<2x16xf32> to vector<2x1x16xf32>
    tpu.vector_store %arg17[%c0_128, %c4_129, %c0_130], %422 {strides = array<i32>} : memref<2x6x32xf32, #tpu.memory_space<vmem>>, vector<2x1x16xf32>,
    %c0_131 = arith.constant 0 : index
    %c1_132 = arith.constant 1 : index
    %c16_133 = arith.constant 16 : index
    %423 = vector.load %arg17[%c0_131, %c1_132, %c16_133] : memref<2x6x32xf32, #tpu.memory_space<vmem>>, vector<2x1x16xf32>
    %424 = vector.shape_cast %423 : vector<2x1x16xf32> to vector<2x16xf32>
    %425 = vector.shape_cast %413 : vector<2x16xf32> to vector<2x1x16xf32>
    tpu.vector_store %arg17[%c0_131, %c1_132, %c16_133], %425 {strides = array<i32>} : memref<2x6x32xf32, #tpu.memory_space<vmem>>, vector<2x1x16xf32>,
    %426 = vector.extract_strided_slice %22 {offsets = [5, 0, 0], sizes = [1, 2, 48], strides = [1, 1, 1]} : vector<6x2x48xf32> to vector<1x2x48xf32>
    %427 = vector.shape_cast %426 : vector<1x2x48xf32> to vector<2x48xf32>
    %428 = arith.truncf %381 : vector<2x16xf32> to vector<2x16xbf16>
    %cst_134 = arith.constant dense<0.000000e+00> : vector<2x48xf32>
    %429 = tpu.matmul %428, %34, %cst_134 {dimension_numbers = #tpu.dot_dimension_numbers<[1], [0], [0], [1], [0, 0, 1, 1], [], []>} : vector<2x16xbf16>, vector<16x48xbf16>, vector<2x48xf32> -> vector<2x48xf32>
    %430 = vector.extract_strided_slice %427 {offsets = [0, 0], sizes = [2, 16], strides = [1, 1]} : vector<2x48xf32> to vector<2x16xf32>
    %431 = vector.extract_strided_slice %429 {offsets = [0, 0], sizes = [2, 16], strides = [1, 1]} : vector<2x48xf32> to vector<2x16xf32>
    %432 = arith.addf %430, %431 : vector<2x16xf32>
    %433 = arith.negf %432 : vector<2x16xf32>
    %434 = math.exp %433 : vector<2x16xf32>
    %cst_135 = arith.constant 1.000000e+00 : f32
    %435 = vector.broadcast %cst_135 : f32 to vector<2x16xf32>
    %436 = arith.addf %435, %434 : vector<2x16xf32>
    %437 = arith.divf %435, %436 : vector<2x16xf32>
    %438 = vector.extract_strided_slice %427 {offsets = [0, 16], sizes = [2, 16], strides = [1, 1]} : vector<2x48xf32> to vector<2x16xf32>
    %439 = vector.extract_strided_slice %429 {offsets = [0, 16], sizes = [2, 16], strides = [1, 1]} : vector<2x48xf32> to vector<2x16xf32>
    %440 = arith.addf %438, %439 : vector<2x16xf32>
    %441 = arith.negf %440 : vector<2x16xf32>
    %442 = math.exp %441 : vector<2x16xf32>
    %cst_136 = arith.constant 1.000000e+00 : f32
    %443 = vector.broadcast %cst_136 : f32 to vector<2x16xf32>
    %444 = arith.addf %443, %442 : vector<2x16xf32>
    %445 = arith.divf %443, %444 : vector<2x16xf32>
    %446 = vector.extract_strided_slice %427 {offsets = [0, 32], sizes = [2, 16], strides = [1, 1]} : vector<2x48xf32> to vector<2x16xf32>
    %447 = vector.extract_strided_slice %429 {offsets = [0, 32], sizes = [2, 16], strides = [1, 1]} : vector<2x48xf32> to vector<2x16xf32>
    %448 = vector.broadcast %39 : vector<1x16xf32> to vector<2x16xf32>
    %449 = arith.addf %447, %448 : vector<2x16xf32>
    %450 = arith.mulf %437, %449 : vector<2x16xf32>
    %451 = arith.addf %446, %450 : vector<2x16xf32>
    %452 = math.tanh %451 : vector<2x16xf32>
    %cst_137 = arith.constant 1.000000e+00 : f32
    %453 = vector.broadcast %cst_137 : f32 to vector<2x16xf32>
    %454 = arith.subf %453, %445 : vector<2x16xf32>
    %455 = arith.mulf %454, %452 : vector<2x16xf32>
    %456 = arith.mulf %445, %381 : vector<2x16xf32>
    %457 = arith.addf %455, %456 : vector<2x16xf32>
    %458 = vector.extract_strided_slice %31 {offsets = [0, 0, 0], sizes = [1, 2, 48], strides = [1, 1, 1]} : vector<6x2x48xf32> to vector<1x2x48xf32>
    %459 = vector.shape_cast %458 : vector<1x2x48xf32> to vector<2x48xf32>
    %460 = arith.truncf %413 : vector<2x16xf32> to vector<2x16xbf16>
    %cst_138 = arith.constant dense<0.000000e+00> : vector<2x48xf32>
    %461 = tpu.matmul %460, %37, %cst_138 {dimension_numbers = #tpu.dot_dimension_numbers<[1], [0], [0], [1], [0, 0, 1, 1], [], []>} : vector<2x16xbf16>, vector<16x48xbf16>, vector<2x48xf32> -> vector<2x48xf32>
    %462 = vector.extract_strided_slice %459 {offsets = [0, 0], sizes = [2, 16], strides = [1, 1]} : vector<2x48xf32> to vector<2x16xf32>
    %463 = vector.extract_strided_slice %461 {offsets = [0, 0], sizes = [2, 16], strides = [1, 1]} : vector<2x48xf32> to vector<2x16xf32>
    %464 = arith.addf %462, %463 : vector<2x16xf32>
    %465 = arith.negf %464 : vector<2x16xf32>
    %466 = math.exp %465 : vector<2x16xf32>
    %cst_139 = arith.constant 1.000000e+00 : f32
    %467 = vector.broadcast %cst_139 : f32 to vector<2x16xf32>
    %468 = arith.addf %467, %466 : vector<2x16xf32>
    %469 = arith.divf %467, %468 : vector<2x16xf32>
    %470 = vector.extract_strided_slice %459 {offsets = [0, 16], sizes = [2, 16], strides = [1, 1]} : vector<2x48xf32> to vector<2x16xf32>
    %471 = vector.extract_strided_slice %461 {offsets = [0, 16], sizes = [2, 16], strides = [1, 1]} : vector<2x48xf32> to vector<2x16xf32>
    %472 = arith.addf %470, %471 : vector<2x16xf32>
    %473 = arith.negf %472 : vector<2x16xf32>
    %474 = math.exp %473 : vector<2x16xf32>
    %cst_140 = arith.constant 1.000000e+00 : f32
    %475 = vector.broadcast %cst_140 : f32 to vector<2x16xf32>
    %476 = arith.addf %475, %474 : vector<2x16xf32>
    %477 = arith.divf %475, %476 : vector<2x16xf32>
    %478 = vector.extract_strided_slice %459 {offsets = [0, 32], sizes = [2, 16], strides = [1, 1]} : vector<2x48xf32> to vector<2x16xf32>
    %479 = vector.extract_strided_slice %461 {offsets = [0, 32], sizes = [2, 16], strides = [1, 1]} : vector<2x48xf32> to vector<2x16xf32>
    %480 = vector.broadcast %41 : vector<1x16xf32> to vector<2x16xf32>
    %481 = arith.addf %479, %480 : vector<2x16xf32>
    %482 = arith.mulf %469, %481 : vector<2x16xf32>
    %483 = arith.addf %478, %482 : vector<2x16xf32>
    %484 = math.tanh %483 : vector<2x16xf32>
    %cst_141 = arith.constant 1.000000e+00 : f32
    %485 = vector.broadcast %cst_141 : f32 to vector<2x16xf32>
    %486 = arith.subf %485, %477 : vector<2x16xf32>
    %487 = arith.mulf %486, %484 : vector<2x16xf32>
    %488 = arith.mulf %477, %413 : vector<2x16xf32>
    %489 = arith.addf %487, %488 : vector<2x16xf32>
    %c5_142 = arith.constant 5 : index
    %c0_143 = arith.constant 0 : index
    %c0_144 = arith.constant 0 : index
    %490 = vector.load %arg13[%c5_142, %c0_143, %c0_144] : memref<6x2x32xf32, #tpu.memory_space<vmem>>, vector<1x2x16xf32>
    %491 = vector.shape_cast %490 : vector<1x2x16xf32> to vector<2x16xf32>
    %492 = vector.shape_cast %457 : vector<2x16xf32> to vector<1x2x16xf32>
    tpu.vector_store %arg13[%c5_142, %c0_143, %c0_144], %492 {strides = array<i32>} : memref<6x2x32xf32, #tpu.memory_space<vmem>>, vector<1x2x16xf32>,
    %c0_145 = arith.constant 0 : index
    %c0_146 = arith.constant 0 : index
    %c16_147 = arith.constant 16 : index
    %493 = vector.load %arg13[%c0_145, %c0_146, %c16_147] : memref<6x2x32xf32, #tpu.memory_space<vmem>>, vector<1x2x16xf32>
    %494 = vector.shape_cast %493 : vector<1x2x16xf32> to vector<2x16xf32>
    %495 = vector.shape_cast %489 : vector<2x16xf32> to vector<1x2x16xf32>
    tpu.vector_store %arg13[%c0_145, %c0_146, %c16_147], %495 {strides = array<i32>} : memref<6x2x32xf32, #tpu.memory_space<vmem>>, vector<1x2x16xf32>,
    %c0_148 = arith.constant 0 : index
    %c5_149 = arith.constant 5 : index
    %c0_150 = arith.constant 0 : index
    %496 = vector.load %arg17[%c0_148, %c5_149, %c0_150] : memref<2x6x32xf32, #tpu.memory_space<vmem>>, vector<2x1x16xf32>
    %497 = vector.shape_cast %496 : vector<2x1x16xf32> to vector<2x16xf32>
    %498 = vector.shape_cast %457 : vector<2x16xf32> to vector<2x1x16xf32>
    tpu.vector_store %arg17[%c0_148, %c5_149, %c0_150], %498 {strides = array<i32>} : memref<2x6x32xf32, #tpu.memory_space<vmem>>, vector<2x1x16xf32>,
    %c0_151 = arith.constant 0 : index
    %c0_152 = arith.constant 0 : index
    %c16_153 = arith.constant 16 : index
    %499 = vector.load %arg17[%c0_151, %c0_152, %c16_153] : memref<2x6x32xf32, #tpu.memory_space<vmem>>, vector<2x1x16xf32>
    %500 = vector.shape_cast %499 : vector<2x1x16xf32> to vector<2x16xf32>
    %501 = vector.shape_cast %489 : vector<2x16xf32> to vector<2x1x16xf32>
    tpu.vector_store %arg17[%c0_151, %c0_152, %c16_153], %501 {strides = array<i32>} : memref<2x6x32xf32, #tpu.memory_space<vmem>>, vector<2x1x16xf32>,
    %c0_154 = arith.constant 0 : index
    %c0_155 = arith.constant 0 : index
    %c0_156 = arith.constant 0 : index
    %502 = vector.load %arg17[%c0_154, %c0_155, %c0_156] : memref<2x6x32xf32, #tpu.memory_space<vmem>>, vector<2x6x32xf32>
    %503 = arith.truncf %502 : vector<2x6x32xf32> to vector<2x6x32xbf16>
    %504 = vector.shape_cast %503 : vector<2x6x32xbf16> to vector<12x32xbf16>
    %c0_157 = arith.constant 0 : index
    %c0_158 = arith.constant 0 : index
    %505 = vector.load %arg8[%c0_157, %c0_158] : memref<32x32xf32, #tpu.memory_space<vmem>>, vector<32x32xf32>
    %506 = arith.truncf %505 : vector<32x32xf32> to vector<32x32xbf16>
    %cst_159 = arith.constant dense<0.000000e+00> : vector<12x32xf32>
    %507 = tpu.matmul %504, %506, %cst_159 {dimension_numbers = #tpu.dot_dimension_numbers<[1], [0], [0], [1], [0, 0, 1, 1], [], []>} : vector<12x32xbf16>, vector<32x32xbf16>, vector<12x32xf32> -> vector<12x32xf32>
    %c0_160 = arith.constant 0 : index
    %c0_161 = arith.constant 0 : index
    %508 = vector.load %arg9[%c0_160, %c0_161] : memref<1x32xf32, #tpu.memory_space<vmem>>, vector<1x32xf32>
    %509 = vector.broadcast %508 : vector<1x32xf32> to vector<12x32xf32>
    %510 = arith.addf %507, %509 : vector<12x32xf32>
    %511 = math.tanh %510 : vector<12x32xf32>
    %512 = vector.shape_cast %511 : vector<12x32xf32> to vector<2x6x32xf32>
    %c0_162 = arith.constant 0 : index
    %c0_163 = arith.constant 0 : index
    %513 = vector.load %arg10[%c0_162, %c0_163] : memref<1x32xf32, #tpu.memory_space<vmem>>, vector<1x32xf32>
    %514 = vector.shape_cast %513 : vector<1x32xf32> to vector<1x1x32xf32>
    %515 = vector.broadcast %514 : vector<1x1x32xf32> to vector<2x6x32xf32>
    %516 = arith.mulf %512, %515 : vector<2x6x32xf32>
    %cst_164 = arith.constant dense<0.000000e+00> : vector<2x6xf32>
    %517 = vector.multi_reduction <add>, %516, %cst_164 [2] : vector<2x6x32xf32> to vector<2x6xf32>
    %cst_165 = arith.constant dense<0xFF800000> : vector<2xf32>
    %518 = vector.multi_reduction <maximumf>, %517, %cst_165 [1] : vector<2x6xf32> to vector<2xf32>
    %519 = vector.shape_cast %518 : vector<2xf32> to vector<2x1xf32>
    %520 = vector.broadcast %519 : vector<2x1xf32> to vector<2x6xf32>
    %521 = arith.subf %517, %520 : vector<2x6xf32>
    %522 = math.exp %521 : vector<2x6xf32>
    %cst_166 = arith.constant dense<0.000000e+00> : vector<2xf32>
    %523 = vector.multi_reduction <add>, %522, %cst_166 [1] : vector<2x6xf32> to vector<2xf32>
    %524 = vector.shape_cast %523 : vector<2xf32> to vector<2x1xf32>
    %525 = tpu.reciprocal %524 {approx = true} : vector<2x1xf32> -> vector<2x1xf32>
    %526 = vector.broadcast %525 : vector<2x1xf32> to vector<2x6xf32>
    %527 = arith.mulf %522, %526 : vector<2x6xf32>
    %c0_167 = arith.constant 0 : index
    %c0_168 = arith.constant 0 : index
    %528 = vector.load %arg14[%c0_167, %c0_168] : memref<2x6xf32, #tpu.memory_space<vmem>>, vector<2x6xf32>
    tpu.vector_store %arg14[%c0_167, %c0_168], %527 {strides = array<i32>} : memref<2x6xf32, #tpu.memory_space<vmem>>, vector<2x6xf32>,
    %529 = vector.shape_cast %527 : vector<2x6xf32> to vector<2x6x1xf32>
    %530 = vector.broadcast %529 : vector<2x6x1xf32> to vector<2x6x32xf32>
    %531 = arith.mulf %530, %502 : vector<2x6x32xf32>
    %cst_169 = arith.constant dense<0.000000e+00> : vector<2x32xf32>
    %532 = vector.multi_reduction <add>, %531, %cst_169 [1] : vector<2x6x32xf32> to vector<2x32xf32>
    %c0_170 = arith.constant 0 : index
    %c0_171 = arith.constant 0 : index
    %533 = vector.load %arg15[%c0_170, %c0_171] : memref<2x32xf32, #tpu.memory_space<vmem>>, vector<2x32xf32>
    tpu.vector_store %arg15[%c0_170, %c0_171], %532 {strides = array<i32>} : memref<2x32xf32, #tpu.memory_space<vmem>>, vector<2x32xf32>,
    %534 = arith.truncf %532 : vector<2x32xf32> to vector<2x32xbf16>
    %c0_172 = arith.constant 0 : index
    %c0_173 = arith.constant 0 : index
    %535 = vector.load %arg11[%c0_172, %c0_173] : memref<32x5xf32, #tpu.memory_space<vmem>>, vector<32x5xf32>
    %536 = arith.truncf %535 : vector<32x5xf32> to vector<32x5xbf16>
    %cst_174 = arith.constant dense<0.000000e+00> : vector<2x5xf32>
    %537 = tpu.matmul %534, %536, %cst_174 {dimension_numbers = #tpu.dot_dimension_numbers<[1], [0], [0], [1], [0, 0, 1, 1], [], []>} : vector<2x32xbf16>, vector<32x5xbf16>, vector<2x5xf32> -> vector<2x5xf32>
    %c0_175 = arith.constant 0 : index
    %c0_176 = arith.constant 0 : index
    %538 = vector.load %arg12[%c0_175, %c0_176] : memref<1x5xf32, #tpu.memory_space<vmem>>, vector<1x5xf32>
    %539 = vector.broadcast %538 : vector<1x5xf32> to vector<2x5xf32>
    %540 = arith.addf %537, %539 : vector<2x5xf32>
    %cst_177 = arith.constant dense<0xFF800000> : vector<2xf32>
    %541 = vector.multi_reduction <maximumf>, %540, %cst_177 [1] : vector<2x5xf32> to vector<2xf32>
    %542 = vector.shape_cast %541 : vector<2xf32> to vector<2x1xf32>
    %543 = vector.broadcast %542 : vector<2x1xf32> to vector<2x5xf32>
    %544 = arith.subf %540, %543 : vector<2x5xf32>
    %545 = math.exp %544 : vector<2x5xf32>
    %cst_178 = arith.constant dense<0.000000e+00> : vector<2xf32>
    %546 = vector.multi_reduction <add>, %545, %cst_178 [1] : vector<2x5xf32> to vector<2xf32>
    %547 = vector.shape_cast %546 : vector<2xf32> to vector<2x1xf32>
    %548 = tpu.reciprocal %547 {approx = true} : vector<2x1xf32> -> vector<2x1xf32>
    %549 = vector.broadcast %548 : vector<2x1xf32> to vector<2x5xf32>
    %550 = arith.mulf %545, %549 : vector<2x5xf32>
    %c0_179 = arith.constant 0 : index
    %c0_180 = arith.constant 0 : index
    %551 = vector.load %arg16[%c0_179, %c0_180] : memref<2x5xf32, #tpu.memory_space<vmem>>, vector<2x5xf32>
    tpu.vector_store %arg16[%c0_179, %c0_180], %550 {strides = array<i32>} : memref<2x5xf32, #tpu.memory_space<vmem>>, vector<2x5xf32>,
    return
  }
}

</mosaic_0001>

<bundles_post_ra>
// kernel: _lambda_.1
= control target key start
LH: loop header
LB: loop body
LE: loop exit
PB: predicated region body
PF: predicated region fallthrough
CT: control target
= control target key end

     0   :  { %s3360_s0 = inlined_call_operand.vmem [shape: f32[6,2,12,48], index: 0, kind: input, shape index: {}]   ;;  %s3361_s1 = inlined_call_operand.vmem [shape: f32[2,2,16], index: 1, kind: input, shape index: {}]   ;;  %s3362_s2 = inlined_call_operand.vmem [shape: f32[48,8], index: 2, kind: input, shape index: {}]   ;;  %s3363_s3 = inlined_call_operand.vmem [shape: f32[1,8], index: 3, kind: input, shape index: {}]   ;;  %s3364_s4 = inlined_call_operand.vmem [shape: f32[2,8,48], index: 4, kind: input, shape index: {}]   ;;  %s3365_s5 = inlined_call_operand.vmem [shape: f32[2,16,48], index: 5, kind: input, shape index: {}]   ;;  %s3366_s6 = inlined_call_operand.vmem [shape: f32[2,1,48], index: 6, kind: input, shape index: {}]   ;;  %s3367_s7 = inlined_call_operand.vmem [shape: f32[2,1,16], index: 7, kind: input, shape index: {}]   ;;  %s3368_s8 = inlined_call_operand.vmem [shape: f32[32,32], index: 8, kind: input, shape index: {}]   ;;  %s3369_s9 = inlined_call_operand.vmem [shape: f32[1,32], index: 9, kind: input, shape index: {}]   ;;  %s3370_s10 = inlined_call_operand.vmem [shape: f32[1,32], index: 10, kind: input, shape index: {}]   ;;  %s3371_s11 = inlined_call_operand.vmem [shape: f32[32,5], index: 11, kind: input, shape index: {}]   ;;  %s3372_s12 = inlined_call_operand.vmem [shape: f32[1,5], index: 12, kind: input, shape index: {}]   ;;  %s3373_s13 = inlined_call_operand.hbm [shape: f32[6,2,32], index: 13, kind: output, shape index: {0}]   ;;  %s3374_s14 = inlined_call_operand.hbm [shape: f32[2,6], index: 14, kind: output, shape index: {1}]   ;;  %s3375_s15 = inlined_call_operand.hbm [shape: f32[2,32], index: 15, kind: output, shape index: {2}]   ;;  %s3376_s16 = inlined_call_operand.hbm [shape: f32[2,5], index: 16, kind: output, shape index: {3}]  }
   0x1   :  { %3379 = sst [smem:[#allocation13_spill]] %s3360_s0 }
   0x2   :  { %22 = vsyncpa [#allocation4], 0 }
   0x3   :  { %23 = vsyncpa [#allocation6], 0  ;;  %v262_v0 = vld [vmem:[%s3362_s2 + $0x20] sm:$0xff]  ;;  %v263_v1 = vld [vmem:[%s3362_s2 + $0x28] sm:$0xff]  ;;  %s3380_s18 = sld [smem:[#allocation13_spill]]  ;;  %vm148_vm0 = vcmask 1041408  }
   0x4   :  { %v260_v2 = vld [vmem:[%s3362_s2 + $0x10] sm:$0xff]  ;;  %v266_v3 = vpack.c.bf16 %v263_v1, %v262_v0  ;;  %v261_v4 = vld [vmem:[%s3362_s2 + $0x18] sm:$0xff]  ;;  %v258_v6 = vld [vmem:[%s3362_s2] sm:$0xff]  ;;  %vm152_vm1 = vcmask 1043458  }
   0x5   :  { %v265_v5 = vpack.c.bf16 %v261_v4, %v260_v2  ;;  %v259_v10 = vld [vmem:[%s3362_s2 + $0x8] sm:$0xff] }
   0x6   :  { %359 = vmatpush.bf16.msra.mxu0 %v266_v3  ;;  %2176 = vmatpush.bf16.msra.mxu3 %v266_v3  ;;  %v264_v27 = vpack.c.bf16 %v259_v10, %v258_v6 }
   0x7   :  { %2175 = vmatpush.bf16.msra.mxu2 %v266_v3 }
   0x9   :  { %v52_v7 = vld [vmem:[%s3380_s18] sm:$0xff]  ;;  %v53_v8 = vld [vmem:[%s3380_s18 + $0x8] sm:$0xf]  ;;  %v54_v9 = vld [vmem:[%s3380_s18 + $0x10] sm:$0xff] }
   0xa   :  { %v76_v11 = vpack.c.bf16 %v52_v7, %v52_v7  ;;  %v77_v12 = vpack.c.bf16 %v53_v8, %v53_v8  ;;  %v78_v13 = vpack.c.bf16 %v54_v9, %v54_v9  ;;  %v55_v14 = vld [vmem:[%s3380_s18 + $0x18] sm:$0xf]  ;;  %v56_v15 = vld [vmem:[%s3380_s18 + $0x20] sm:$0xff]  ;;  %v57_v18 = vld [vmem:[%s3380_s18 + $0x28] sm:$0xf]  ;;  %360 = vmatpush.bf16.msra.mxu0 %v265_v5  ;;  %2178 = vmatpush.bf16.msra.mxu3 %v265_v5 }
   0xb   :  { %v79_v16 = vpack.c.bf16 %v55_v14, %v55_v14  ;;  %v80_v17 = vpack.c.bf16 %v56_v15, %v56_v15  ;;  %v58_v19 = vld [vmem:[%s3380_s18 + $0x30] sm:$0xff]  ;;  %v59_v25 = vld [vmem:[%s3380_s18 + $0x38] sm:$0xf]  ;;  %v81_v34 = vpack.c.bf16 %v57_v18, %v57_v18  ;;  %2177 = vmatpush.bf16.msra.mxu2 %v265_v5 }
   0xc   :  { %v124_v20 = vrot.slane %v76_v11, 2  ;;  %v125_v21 = vrot.slane %v77_v12, 2  ;;  %v126_v22 = vrot.slane %v78_v13, 2  ;;  %v82_v26 = vpack.c.bf16 %v58_v19, %v58_v19 }
   0xd   :  { %v127_v23 = vrot.slane %v79_v16, 2  ;;  %v128_v24 = vrot.slane %v80_v17, 2  ;;  %v83_v41 = vpack.c.bf16 %v59_v25, %v59_v25 }
   0xe   :  { %v151_v28 = vsel %vm148_vm0, %v76_v11, %v124_v20  ;;  %v153_v29 = vsel %vm152_vm1, %v76_v11, %v124_v20  ;;  %v158_v30 = vsel %vm148_vm0, %v77_v12, %v125_v21  ;;  %v161_v32 = vsel %vm148_vm0, %v78_v13, %v126_v22  ;;  %361 = vmatpush.bf16.msra.mxu0 %v264_v27 }
   0xf   :  { %v155_v31 = vrot.slane %v153_v29, 2  ;;  %271 = vst [vmem:[#allocation1] ss:$4 sm:$0xff] %v151_v28  ;;  %v162_v33 = vsel %vm152_vm1, %v78_v13, %v126_v22  ;;  %v171_v36 = vsel %vm152_vm1, %v80_v17, %v128_v24  ;;  %v167_v37 = vsel %vm148_vm0, %v79_v16, %v127_v23 }
  0x10   :  { %276 = vst [vmem:[#allocation1 + $0x2] ss:$4 sm:$0xff] %v158_v30  ;;  %v164_v35 = vrot.slane %v162_v33, 2  ;;  %v130_v38 = vrot.slane %v82_v26, 2  ;;  %v170_v39 = vsel %vm148_vm0, %v80_v17, %v128_v24  ;;  %v173_v40 = vrot.slane %v171_v36, 2 }
  0x11   :  { %274 = vst [vmem:[#allocation1 + $0x1] ss:$4 sm:$0xff] %v155_v31 }
  0x12   :  { %278 = vst [vmem:[#allocation1 + $0x3] ss:$4 sm:$0xff] %v161_v32 }
  0x13   :  { %24 = vsyncpa [#allocation9], 0  ;;  %281 = vst [vmem:[#allocation1 + $0x20] ss:$4 sm:$0xff] %v164_v35  ;;  %v129_v42 = vrot.slane %v81_v34, 2  ;;  %2180 = vmatpush.bf16.msra.mxu3 %v264_v27  ;;  %2179 = vmatpush.bf16.msra.mxu2 %v264_v27  ;;  %v180_v43 = vsel %vm152_vm1, %v82_v26, %v130_v38  ;;  %v131_v44 = vrot.slane %v83_v41, 2  ;;  %v179_v46 = vsel %vm148_vm0, %v82_v26, %v130_v38 }
  0x14   :  { %283 = vst [vmem:[#allocation1 + $0x21] ss:$4 sm:$0xff] %v167_v37  ;;  %vm335_vm2 = vcmask 392192   ;;  %v182_v47 = vrot.slane %v180_v43, 2  ;;  %v60_v50 = vld [vmem:[%s3380_s18 + $0x40] sm:$0xff]  ;;  %v62_v52 = vld [vmem:[%s3380_s18 + $0x50] sm:$0xff] }
  0x15   :  { %285 = vst [vmem:[#allocation1 + $0x22] ss:$4 sm:$0xff] %v170_v39  ;;  %v176_v45 = vsel %vm148_vm0, %v81_v34, %v129_v42  ;;  %v185_v49 = vsel %vm148_vm0, %v83_v41, %v131_v44  ;;  %v61_v51 = vld [vmem:[%s3380_s18 + $0x48] sm:$0xf]  ;;  %v63_v53 = vld [vmem:[%s3380_s18 + $0x58] sm:$0xf]  ;;  %v84_v55 = vpack.c.bf16 %v60_v50, %v60_v50  ;;  %v86_v57 = vpack.c.bf16 %v62_v52, %v62_v52 }
  0x16   :  { %288 = vst [vmem:[#allocation1 + $0x23] ss:$4 sm:$0xff] %v173_v40  ;;  %v64_v54 = vld [vmem:[%s3380_s18 + $0x60] sm:$0xff]  ;;  %v85_v56 = vpack.c.bf16 %v61_v51, %v61_v51  ;;  %v87_v58 = vpack.c.bf16 %v63_v53, %v63_v53  ;;  %v66_v16 = vld [vmem:[%s3380_s18 + $0x70] sm:$0xff]  ;;  %v65_v19 = vld [vmem:[%s3380_s18 + $0x68] sm:$0xf] }
  0x17   :  { %v88_v59 = vpack.c.bf16 %v64_v54, %v64_v54  ;;  %v132_v60 = vrot.slane %v84_v55, 2  ;;  %v68_v61 = vld [vmem:[%s3380_s18 + $0x80] sm:$0xff]  ;;  %v134_v63 = vrot.slane %v86_v57, 2  ;;  %v90_v18 = vpack.c.bf16 %v66_v16, %v66_v16  ;;  %v67_v20 = vld [vmem:[%s3380_s18 + $0x78] sm:$0xf]  ;;  %v70_v32 = vld [vmem:[%s3380_s18 + $0x90] sm:$0xff] }
  0x18   :  { %v133_v62 = vrot.slane %v85_v56, 2  ;;  %v135_v2 = vrot.slane %v87_v58, 2  ;;  %v92_v9 = vpack.c.bf16 %v68_v61, %v68_v61  ;;  %v89_v21 = vpack.c.bf16 %v65_v19, %v65_v19  ;;  %v72_v35 = vld [vmem:[%s3380_s18 + $0xa0] sm:$0xff]  ;;  %v71_v38 = vld [vmem:[%s3380_s18 + $0x98] sm:$0xf]  ;;  %s2426_s20 = smov 32  }
  0x19   :  { %v289_v48 = vld.sshfl [vmem:[#allocation1] sm:$0xff pattern:$0x73625140]  ;;  %v136_v0 = vrot.slane %v88_v59, 2  ;;  %v188_v3 = vsel %vm148_vm0, %v84_v55, %v132_v60  ;;  %v189_v4 = vsel %vm152_vm1, %v84_v55, %v132_v60  ;;  %v197_v7 = vsel %vm148_vm0, %v86_v57, %v134_v63  ;;  %v75_v52 = vld [vmem:[%s3380_s18 + $0xb8] sm:$0xf] }
  0x1a   :  { %2132 = vmatmul.msk.bf16.vlgmr.msra.gmra.mxu0 %vm335_vm2, %v289_v48  ;;  %291 = vst [vmem:[#allocation1] ss:$4 sm:$0xff] %v176_v45  ;;  %v191_v5 = vrot.slane %v189_v4, 2  ;;  %v194_v6 = vsel %vm148_vm0, %v85_v56, %v133_v62  ;;  %v198_v8 = vsel %vm152_vm1, %v86_v57, %v134_v63  ;;  %v203_v12 = vsel %vm148_vm0, %v87_v58, %v135_v2  ;;  %v69_v45 = vld [vmem:[%s3380_s18 + $0x88] sm:$0xf]  ;;  %s2429_s26 = smov 112  }
  0x1b   :  { %292 = vst [vmem:[#allocation1 + $0x1] ss:$4 sm:$0xff] %v179_v46  ;;  %v200_v10 = vrot.slane %v198_v8, 2  ;;  %v207_v11 = vsel %vm152_vm1, %v88_v59, %v136_v0  ;;  %v206_v14 = vsel %vm148_vm0, %v88_v59, %v136_v0  ;;  %v140_v17 = vrot.slane %v92_v9, 2  ;;  %v74_v59 = vld [vmem:[%s3380_s18 + $0xb0] sm:$0xff]  ;;  %s2087_s27 = sshll.u32 %s3374_s14, 4  ;;  %s2088_s27 = int_to_ptr.hbm [resolvable:$true] %s2087_s27 }
  0x1c   :  { %294 = vst [vmem:[#allocation1 + $0x2] ss:$4 sm:$0xff] %v182_v47  ;;  %v209_v15 = vrot.slane %v207_v11, 2  ;;  %v91_v22 = vpack.c.bf16 %v67_v20, %v67_v20  ;;  %v138_v23 = vrot.slane %v90_v18, 2  ;;  %v137_v24 = vrot.slane %v89_v21, 2  ;;  %s2431_s28 = smov [#allocation5]  }
  0x1d   :  { %295 = vst [vmem:[#allocation1 + $0x3] ss:$4 sm:$0xff] %v185_v49  ;;  %v290_v1 = vld.sshfl [vmem:[#allocation1 + $0x20] sm:$0xff pattern:$0x73625140]  ;;  %v225_v26 = vsel %vm152_vm1, %v92_v9, %v140_v17  ;;  %v224_v33 = vsel %vm148_vm0, %v92_v9, %v140_v17  ;;  %v94_v36 = vpack.c.bf16 %v70_v32, %v70_v32  ;;  %v96_v41 = vpack.c.bf16 %v72_v35, %v72_v35  ;;  %s2085_s29 = sshll.u32 %s2431_s28, 4  ;;  %s2086_s29 = int_to_ptr.vmem [resolvable:$true] %s2085_s29 }
  0x1e   :  { %296 = vst [vmem:[#allocation1 + $0x20] ss:$4 sm:$0xff] %v188_v3  ;;  %v216_v25 = vsel %vm152_vm1, %v90_v18, %v138_v23  ;;  %v139_v29 = vrot.slane %v91_v22, 2  ;;  %v212_v30 = vsel %vm148_vm0, %v89_v21, %v137_v24  ;;  %v215_v31 = vsel %vm148_vm0, %v90_v18, %v138_v23  ;;  %v73_v62 = vld [vmem:[%s3380_s18 + $0xa8] sm:$0xf]  ;;  %s2073_s17 = sshll.u32 %s3373_s13, 4  ;;  %s2074_s17 = int_to_ptr.hbm [resolvable:$true] %s2073_s17 }
  0x1f   :  { %299 = vst [vmem:[#allocation1 + $0x22] ss:$4 sm:$0xff] %v194_v6  ;;  %v218_v27 = vrot.slane %v216_v25, 2  ;;  %v227_v34 = vrot.slane %v225_v26, 2  ;;  %v142_v39 = vrot.slane %v94_v36, 2  ;;  %v95_v42 = vpack.c.bf16 %v71_v38, %v71_v38  ;;  %s2434_s21 = smov 2  }
  0x20   :  { %298 = vst [vmem:[#allocation1 + $0x21] ss:$4 sm:$0xff] %v191_v5  ;;  %v221_v40 = vsel %vm148_vm0, %v91_v22, %v139_v29  ;;  %v144_v44 = vrot.slane %v96_v41, 2  ;;  %v93_v48 = vpack.c.bf16 %v69_v45, %v69_v45  ;;  %v99_v55 = vpack.c.bf16 %v75_v52, %v75_v52  ;;  %s2435_s13 = smov [#allocation8]  }
  0x21   :  { %300 = vst [vmem:[#allocation1 + $0x23] ss:$4 sm:$0xff] %v197_v7  ;;  %v234_v43 = vsel %vm152_vm1, %v94_v36, %v142_v39  ;;  %v143_v46 = vrot.slane %v95_v42, 2  ;;  %v233_v53 = vsel %vm148_vm0, %v94_v36, %v142_v39  ;;  %v98_v61 = vpack.c.bf16 %v74_v59, %v74_v59  ;;  %s2107_s18 = sshll.u32 %s2435_s13, 4  ;;  %s2108_s18 = int_to_ptr.vmem [resolvable:$true] %s2107_s18 }
  0x22   :  { %v236_v47 = vrot.slane %v234_v43, 2  ;;  %v243_v49 = vsel %vm152_vm1, %v96_v41, %v144_v44  ;;  %v141_v50 = vrot.slane %v93_v48, 2  ;;  %v242_v57 = vsel %vm148_vm0, %v96_v41, %v144_v44 }
  0x23   :  { %v239_v54 = vsel %vm148_vm0, %v95_v42, %v143_v46  ;;  %v245_v58 = vrot.slane %v243_v49, 2  ;;  %v147_v60 = vrot.slane %v99_v55, 2  ;;  %v97_v63 = vpack.c.bf16 %v73_v62, %v73_v62 }
  0x24   :  { %v301_v13 = vld.sshfl [vmem:[#allocation1] sm:$0xff pattern:$0x73625140]  ;;  %v230_v56 = vsel %vm148_vm0, %v93_v48, %v141_v50  ;;  %v146_v0 = vrot.slane %v98_v61, 2  ;;  %vm736_vm3 = vcmask 1043456   ;;  %vm553_vm4 = vcmask 60416  }
  0x25   :  { %304 = vst [vmem:[#allocation1] ss:$4 sm:$0xff] %v200_v10  ;;  %v145_v2 = vrot.slane %v97_v63, 2  ;;  %v2662_v10 = vld [vmem:[%s3363_s3] ss:$0 sm:$0xff]  ;;  %vm551_vm5 = vcmask 64512  }
  0x26   :  { %305 = vst [vmem:[#allocation1 + $0x1] ss:$4 sm:$0xff] %v203_v12  ;;  %v252_v3 = vsel %vm152_vm1, %v98_v61, %v146_v0  ;;  %v251_v6 = vsel %vm148_vm0, %v98_v61, %v146_v0  ;;  %vm715_vm6 = vcmask 1041409   ;;  %vm717_vm7 = vcmask 1042434  }
  0x27   :  { %306 = vst [vmem:[#allocation1 + $0x2] ss:$4 sm:$0xff] %v206_v14  ;;  %v248_v5 = vsel %vm148_vm0, %v97_v63, %v145_v2  ;;  %v254_v7 = vrot.slane %v252_v3, 2  ;;  %v673_v3 = vld [vmem:[%s3364_s4] sm:$0xff]  ;;  %vm719_vm8 = vcmask 1043459   ;;  %vm721_vm9 = vcmask 1044484  }
  0x28   :  { %308 = vst [vmem:[#allocation1 + $0x3] ss:$4 sm:$0xff] %v209_v15  ;;  %v2614_v28 = vld.sshfl [vmem:[#allocation1 + $0x20] sm:$0xff pattern:$0x73625140]  ;;  %vm723_vm10 = vcmask 1045509  }
  0x29   :  { %309 = vst [vmem:[#allocation1 + $0x20] ss:$4 sm:$0xff] %v212_v30  ;;  %vm725_vm11 = vcmask 1046534   ;;  %vm727_vm12 = vcmask 1047559   ;;  %vm3378_vm13 = vcmask 130048  }
  0x2a   :  { %2133 = vmatmul.msk.bf16.gmra.mxu0 %vm335_vm2, %v290_v1  ;;  %310 = vst [vmem:[#allocation1 + $0x21] ss:$4 sm:$0xff] %v215_v31  ;;  %v257_v1 = vsel %vm148_vm0, %v99_v55, %v147_v60 }
  0x2b   :  { %312 = vst [vmem:[#allocation1 + $0x22] ss:$4 sm:$0xff] %v218_v27 }
  0x2c   :  { %313 = vst [vmem:[#allocation1 + $0x23] ss:$4 sm:$0xff] %v221_v40 }
  0x2f   :  { %v314_v37 = vld.sshfl [vmem:[#allocation1] sm:$0xff pattern:$0x73625140] }
  0x30   :  { %316 = vst [vmem:[#allocation1] ss:$4 sm:$0xff] %v224_v33 }
  0x31   :  { %318 = vst [vmem:[#allocation1 + $0x1] ss:$4 sm:$0xff] %v227_v34 }
  0x32   :  { %320 = vst [vmem:[#allocation1 + $0x3] ss:$4 sm:$0xff] %v233_v53 }
  0x33   :  { %v315_v51 = vld.sshfl [vmem:[#allocation1 + $0x20] sm:$0xff pattern:$0x73625140]  ;;  %319 = vst [vmem:[#allocation1 + $0x2] ss:$4 sm:$0xff] %v230_v56 }
  0x34   :  { %322 = vst [vmem:[#allocation1 + $0x20] ss:$4 sm:$0xff] %v236_v47 }
  0x35   :  { %323 = vst [vmem:[#allocation1 + $0x21] ss:$4 sm:$0xff] %v239_v54 }
  0x36   :  { %324 = vst [vmem:[#allocation1 + $0x22] ss:$4 sm:$0xff] %v242_v57 }
  0x37   :  { %326 = vst [vmem:[#allocation1 + $0x23] ss:$4 sm:$0xff] %v245_v58 }
  0x3a   :  { %2134 = vmatmul.msk.bf16.gmra.mxu0 %vm335_vm2, %v301_v13  ;;  %v327_v4 = vld.sshfl [vmem:[#allocation1] sm:$0xff pattern:$0x73625140] }
  0x3b   :  { %333 = vst [vmem:[#allocation1 + $0x3] ss:$4 sm:$0xff] %v257_v1  ;;  %2138 = vmatmul.msk.bf16.vlgmr.msra.gmra.mxu2 %vm335_vm2, %v327_v4  ;;  %v2142_v4 = vld [vmem:[%s3364_s4 + $0x8] sm:$0xff] }
  0x3c   :  { %329 = vst [vmem:[#allocation1] ss:$4 sm:$0xff] %v248_v5 }
  0x3d   :  { %330 = vst [vmem:[#allocation1 + $0x1] ss:$4 sm:$0xff] %v251_v6  ;;  %v674_v6 = vpack.c.bf16 %v673_v3, %v673_v3 }
  0x3e   :  { %v328_v8 = vld.sshfl [vmem:[#allocation1 + $0x20] sm:$0xff pattern:$0x73625140]  ;;  %332 = vst [vmem:[#allocation1 + $0x2] ss:$4 sm:$0xff] %v254_v7  ;;  %v766_v7 = vpack.c.bf16 %v2142_v4, %v2142_v4 }
  0x3f   :  { %2139 = vmatmul.msk.bf16.vlgmr.msra.gmra.mxu3 %vm335_vm2, %v328_v8 }
  0x45   :  { %v334_v9 = vld.sshfl [vmem:[#allocation1] sm:$0xff pattern:$0x73625140] }
  0x4a   :  { %2135 = vmatmul.msk.bf16.gmra.mxu0 %vm335_vm2, %v2614_v28 }
  0x4f   :  { %2140 = vmatmul.msk.bf16.gmra.mxu3 %vm335_vm2, %v334_v9 }
  0x5a   :  { %2136 = vmatmul.msk.bf16.gmra.mxu0 %vm335_vm2, %v314_v37 }
  0x6a   :  { %2137 = vmatmul.msk.bf16.gmra.mxu0 %vm335_vm2, %v315_v51 }
  0x97   :  { %v363_v11 = vpop.f32.mrf.mxu0 }
  0x98   :  { %v364_v12 = vadd.f32 %v2662_v10, %v363_v11  ;;  %v738_v11 = vsel %vm736_vm3, %v674_v6, 0 }
  0x99   :  { %747 = vmatpush.bf16.msra.mxu1 %v738_v11 }
  0x9a   :  { %2202 = vtanh.f32 %v364_v12  ;;  %v773_v12 = vsel %vm736_vm3, %v766_v7, 0 }
  0x9b   :  { %782 = vmatpush.bf16.msrb.mxu2 %v773_v12 }
  0x9f   :  { %v365_v13 = vpop.f32.mrf.mxu0 }
  0xa0   :  { %v2203_v14 = vpop.eup %2202  ;;  %v366_v15 = vadd.f32 %v2662_v10, %v365_v13 }
  0xa1   :  { %v444_v16 = vrot.slane %v2203_v14, 4  ;;  %462 = vst [vmem:[#allocation1] ss:$2 sm:$0xff] %v2203_v14 }
  0xa2   :  { %2204 = vtanh.f32 %v366_v15 }
  0xa3   :  { %464 = vst [vmem:[#allocation1 + $0x1] ss:$2 sm:$0xff] %v444_v16 }
  0xa7   :  { %v368_v17 = vpop.f32.mrf.mxu0 }
  0xa8   :  { %v2205_v18 = vpop.eup %2204  ;;  %v369_v19 = vadd.f32 %v2662_v10, %v368_v17 }
  0xa9   :  { %v445_v20 = vrot.slane %v2205_v18, 4  ;;  %466 = vst [vmem:[#allocation1 + $0x10] ss:$2 sm:$0xff] %v2205_v18 }
  0xaa   :  { %2206 = vtanh.f32 %v369_v19  ;;  %v2668_v27 = vld.sshfl [vmem:[#allocation1] sm:$0xff pattern:$0x75316420] }
  0xab   :  { %470 = vst [vmem:[#allocation1 + $0x20] ss:$2 sm:$0xff] %v445_v20 }
  0xaf   :  { %v370_v21 = vpop.f32.mrf.mxu0 }
  0xb0   :  { %v2207_v22 = vpop.eup %2206  ;;  %v371_v23 = vadd.f32 %v2662_v10, %v370_v21  ;;  %v2671_v32 = vld.sshfl [vmem:[#allocation1 + $0x10] sm:$0xff pattern:$0x75316420] }
  0xb1   :  { %v446_v24 = vrot.slane %v2207_v22, 4  ;;  %472 = vst [vmem:[#allocation1 + $0x21] ss:$2 sm:$0xff] %v2207_v22 }
  0xb2   :  { %2208 = vtanh.f32 %v371_v23 }
  0xb3   :  { %474 = vst [vmem:[#allocation1 + $0x30] ss:$2 sm:$0xff] %v446_v24 }
  0xb7   :  { %v373_v25 = vpop.f32.mrf.mxu0 }
  0xb8   :  { %v2209_v26 = vpop.eup %2208  ;;  %v374_v28 = vadd.f32 %v2662_v10, %v373_v25  ;;  %v2674_v35 = vld.sshfl [vmem:[#allocation1 + $0x20] sm:$0xff pattern:$0x75316420] }
  0xb9   :  { %v447_v29 = vrot.slane %v2209_v26, 4  ;;  %477 = vst [vmem:[#allocation1] ss:$2 sm:$0xff] %v2209_v26  ;;  %v562_v21 = vsel %vm551_vm5, %v2674_v35, -inf }
  0xba   :  { %2210 = vtanh.f32 %v374_v28  ;;  %v476_v40 = vld.sshfl [vmem:[#allocation1 + $0x30] sm:$0xff pattern:$0x75316420]  ;;  %v554_v28 = vsel %vm553_vm4, %v2671_v32, -inf }
  0xbb   :  { %478 = vst [vmem:[#allocation1 + $0x1] ss:$2 sm:$0xff] %v447_v29  ;;  %v563_v15 = vsel %vm553_vm4, %v476_v40, -inf }
  0xbc   :  { %v564_v25 = vmax.f32 %v562_v21, %v563_v15 }
  0xbe   :  { %v393_v56 = vpop.f32.mrf.mxu2 }
  0xbf   :  { %v375_v30 = vpop.f32.mrf.mxu0  ;;  %v394_v59 = vadd.f32 %v2662_v10, %v393_v56 }
  0xc0   :  { %v2211_v31 = vpop.eup %2210  ;;  %v376_v33 = vadd.f32 %v2662_v10, %v375_v30 }
  0xc1   :  { %v448_v34 = vrot.slane %v2211_v31, 4  ;;  %479 = vst [vmem:[#allocation1 + $0x10] ss:$2 sm:$0xff] %v2211_v31 }
  0xc2   :  { %2212 = vtanh.f32 %v376_v33  ;;  %v2677_v43 = vld.sshfl [vmem:[#allocation1] sm:$0xff pattern:$0x75316420]  ;;  %v398_v52 = vpop.f32.mrf.mxu3  ;;  %v565_v33 = vrot.slane %v564_v25, 4 }
  0xc3   :  { %482 = vst [vmem:[#allocation1 + $0x20] ss:$2 sm:$0xff] %v448_v34  ;;  %v399_v23 = vadd.f32 %v2662_v10, %v398_v52  ;;  %v571_v29 = vsel %vm551_vm5, %v2677_v43, -inf }
  0xc6   :  { %v395_v2 = vpop.f32.mrf.mxu2 }
  0xc7   :  { %v378_v36 = vpop.f32.mrf.mxu0  ;;  %v396_v8 = vadd.f32 %v2662_v10, %v395_v2 }
  0xc8   :  { %v2213_v37 = vpop.eup %2212  ;;  %v379_v38 = vadd.f32 %v2662_v10, %v378_v36  ;;  %v481_v48 = vld.sshfl [vmem:[#allocation1 + $0x10] sm:$0xff pattern:$0x75316420] }
  0xc9   :  { %v449_v39 = vrot.slane %v2213_v37, 4  ;;  %483 = vst [vmem:[#allocation1 + $0x21] ss:$2 sm:$0xff] %v2213_v37  ;;  %v572_v26 = vsel %vm553_vm4, %v481_v48, -inf  ;;  %v552_v37 = vsel %vm551_vm5, %v2668_v27, -inf }
  0xca   :  { %2214 = vtanh.f32 %v379_v38  ;;  %v400_v60 = vpop.f32.mrf.mxu3  ;;  %v573_v34 = vmax.f32 %v571_v29, %v572_v26 }
  0xcb   :  { %484 = vst [vmem:[#allocation1 + $0x30] ss:$2 sm:$0xff] %v449_v39  ;;  %v401_v5 = vadd.f32 %v2662_v10, %v400_v60 }
  0xcf   :  { %v380_v41 = vpop.f32.mrf.mxu0 }
  0xd0   :  { %v2215_v42 = vpop.eup %2214  ;;  %v381_v44 = vadd.f32 %v2662_v10, %v380_v41  ;;  %v2681_v51 = vld.sshfl [vmem:[#allocation1 + $0x20] sm:$0xff pattern:$0x75316420]  ;;  %v555_v41 = vmax.f32 %v552_v37, %v554_v28 }
  0xd1   :  { %v450_v45 = vrot.slane %v2215_v42, 4  ;;  %487 = vst [vmem:[#allocation1] ss:$2 sm:$0xff] %v2215_v42  ;;  %v580_v43 = vsel %vm551_vm5, %v2681_v51, -inf }
  0xd2   :  { %2216 = vtanh.f32 %v381_v44  ;;  %v486_v58 = vld.sshfl [vmem:[#allocation1 + $0x30] sm:$0xff pattern:$0x75316420]  ;;  %v403_v14 = vpop.f32.mrf.mxu3 }
  0xd3   :  { %488 = vst [vmem:[#allocation1 + $0x1] ss:$2 sm:$0xff] %v450_v45  ;;  %v404_v36 = vadd.f32 %v2662_v10, %v403_v14  ;;  %v581_v38 = vsel %vm553_vm4, %v486_v58, -inf }
  0xd4   :  { %v582_v48 = vmax.f32 %v580_v43, %v581_v38 }
  0xd7   :  { %v383_v46 = vpop.f32.mrf.mxu0 }
  0xd8   :  { %v2217_v47 = vpop.eup %2216  ;;  %v384_v49 = vadd.f32 %v2662_v10, %v383_v46  ;;  %v566_v46 = vmax.f32 %v564_v25, %v565_v33 }
  0xd9   :  { %v451_v50 = vrot.slane %v2217_v47, 4  ;;  %489 = vst [vmem:[#allocation1 + $0x10] ss:$2 sm:$0xff] %v2217_v47  ;;  %v574_v47 = vrot.slane %v573_v34, 4 }
  0xda   :  { %2218 = vtanh.f32 %v384_v49  ;;  %v2685_v63 = vld.sshfl [vmem:[#allocation1] sm:$0xff pattern:$0x75316420]  ;;  %v405_v42 = vpop.f32.mrf.mxu3  ;;  %v567_v60 = vrot.slane %v566_v46, 2 }
  0xdb   :  { %492 = vst [vmem:[#allocation1 + $0x20] ss:$2 sm:$0xff] %v451_v50  ;;  %v589_v50 = vsel %vm551_vm5, %v2685_v63, -inf }
  0xdc   :  { %v568_v11 = vmax.f32 %v566_v46, %v567_v60 }
  0xde   :  { %v569_v25 = vrot.slane %v568_v11, 1 }
  0xdf   :  { %v385_v53 = vpop.f32.mrf.mxu0 }
  0xe0   :  { %v2219_v54 = vpop.eup %2218  ;;  %v386_v55 = vadd.f32 %v2662_v10, %v385_v53  ;;  %v491_v17 = vld.sshfl [vmem:[#allocation1 + $0x10] sm:$0xff pattern:$0x75316420] }
  0xe1   :  { %v452_v57 = vrot.slane %v2219_v54, 4  ;;  %493 = vst [vmem:[#allocation1 + $0x21] ss:$2 sm:$0xff] %v2219_v54  ;;  %v590_v44 = vsel %vm553_vm4, %v491_v17, -inf  ;;  %v406_v54 = vadd.f32 %v2662_v10, %v405_v42 }
  0xe2   :  { %2220 = vtanh.f32 %v386_v55  ;;  %v591_v55 = vmax.f32 %v589_v50, %v590_v44 }
  0xe3   :  { %494 = vst [vmem:[#allocation1 + $0x30] ss:$2 sm:$0xff] %v452_v57  ;;  %2222 = vtanh.f32 %v394_v59  ;;  %v556_v59 = vrot.slane %v555_v41, 4 }
  0xe4   :  { %v592_v2 = vrot.slane %v591_v55, 4 }
  0xe6   :  { %v593_v17 = vmax.f32 %v591_v55, %v592_v2 }
  0xe7   :  { %v388_v61 = vpop.f32.mrf.mxu0 }
  0xe8   :  { %v2221_v62 = vpop.eup %2220  ;;  %v389_v0 = vadd.f32 %v2662_v10, %v388_v61  ;;  %v495_v24 = vld.sshfl [vmem:[#allocation1 + $0x20] sm:$0xff pattern:$0x75316420]  ;;  %v594_v33 = vrot.slane %v593_v17, 2 }
  0xe9   :  { %v453_v1 = vrot.slane %v2221_v62, 4  ;;  %497 = vst [vmem:[#allocation1] ss:$2 sm:$0xff] %v2221_v62  ;;  %v2223_v9 = vpop.eup %2222  ;;  %v598_v52 = vsel %vm551_vm5, %v495_v24, -inf }
  0xea   :  { %2224 = vtanh.f32 %v389_v0  ;;  %v456_v20 = vrot.slane %v2223_v9, 4  ;;  %v496_v31 = vld.sshfl [vmem:[#allocation1 + $0x30] sm:$0xff pattern:$0x75316420]  ;;  %v575_v0 = vmax.f32 %v573_v34, %v574_v47  ;;  %v799_v47 = vld [vmem:[%s3365_s5] sm:$0xff] }
  0xeb   :  { %498 = vst [vmem:[#allocation1 + $0x1] ss:$2 sm:$0xff] %v453_v1  ;;  %2226 = vtanh.f32 %v401_v5  ;;  %v599_v45 = vsel %vm553_vm4, %v496_v31, -inf  ;;  %v583_v1 = vrot.slane %v582_v48, 4 }
  0xec   :  { %2228 = vtanh.f32 %v396_v8  ;;  %v600_v56 = vmax.f32 %v598_v52, %v599_v45  ;;  %v557_v8 = vmax.f32 %v555_v41, %v556_v59  ;;  %v576_v15 = vrot.slane %v575_v0, 2  ;;  %v800_v52 = vld [vmem:[%s3365_s5 + $0x8] sm:$0xff] }
  0xed   :  { %v2734_v55 = vpack.c.bf16 %v800_v52, %v799_v47 }
  0xee   :  { %v601_v3 = vrot.slane %v600_v56, 4  ;;  %v558_v24 = vrot.slane %v557_v8, 2 }
  0xef   :  { %v390_v13 = vpop.f32.mrf.mxu0  ;;  %824 = vmatpush.bf16.msrb.mxu1 %v2734_v55  ;;  %1009 = vmatpush.bf16.msra.mxu2 %v2734_v55 }
  0xf0   :  { %v2225_v16 = vpop.eup %2224  ;;  %v391_v18 = vadd.f32 %v2662_v10, %v390_v13 }
  0xf1   :  { %v454_v19 = vrot.slane %v2225_v16, 4  ;;  %499 = vst [vmem:[#allocation1 + $0x10] ss:$2 sm:$0xff] %v2225_v16  ;;  %v2227_v30 = vpop.eup %2226  ;;  %v584_v16 = vmax.f32 %v582_v48, %v583_v1 }
  0xf2   :  { %v500_v22 = vld.sshfl [vmem:[#allocation1] sm:$0xff pattern:$0x75316420]  ;;  %2230 = vtanh.f32 %v391_v18  ;;  %v2229_v35 = vpop.eup %2228  ;;  %v459_v49 = vrot.slane %v2227_v30, 4 }
  0xf3   :  { %502 = vst [vmem:[#allocation1 + $0x20] ss:$2 sm:$0xff] %v454_v19  ;;  %2232 = vtanh.f32 %v399_v23  ;;  %v607_v57 = vsel %vm551_vm5, %v500_v22, -inf  ;;  %v457_v62 = vrot.slane %v2229_v35, 4  ;;  %v602_v19 = vmax.f32 %v600_v56, %v601_v3 }
  0xf4   :  { %507 = vst [vmem:[#allocation1] ss:$2 sm:$0xff] %v2223_v9  ;;  %2234 = vtanh.f32 %v404_v36  ;;  %v585_v31 = vrot.slane %v584_v16, 2 }
  0xf5   :  { %508 = vst [vmem:[#allocation1 + $0x1] ss:$2 sm:$0xff] %v456_v20  ;;  %2236 = vtanh.f32 %v406_v54  ;;  %v603_v36 = vrot.slane %v602_v19, 2 }
  0xf6   :  { %v586_v43 = vmax.f32 %v584_v16, %v585_v31 }
  0xf8   :  { %v2231_v39 = vpop.eup %2230  ;;  %v501_v40 = vld.sshfl [vmem:[#allocation1 + $0x10] sm:$0xff pattern:$0x75316420]  ;;  %v587_v59 = vrot.slane %v586_v43, 1 }
  0xf9   :  { %v455_v32 = vrot.slane %v2231_v39, 4  ;;  %503 = vst [vmem:[#allocation1 + $0x21] ss:$2 sm:$0xff] %v2231_v39  ;;  %v608_v27 = vsel %vm553_vm4, %v501_v40, -inf  ;;  %v2233_v53 = vpop.eup %2232 }
  0xfa   :  { %509 = vst [vmem:[#allocation1 + $0x10] ss:$2 sm:$0xff] %v2229_v35  ;;  %v609_v58 = vmax.f32 %v607_v57, %v608_v27  ;;  %v458_v61 = vrot.slane %v2233_v53, 4  ;;  %v2235_v10 = vpop.eup %2234 }
  0xfb   :  { %504 = vst [vmem:[#allocation1 + $0x30] ss:$2 sm:$0xff] %v455_v32  ;;  %v2237_v22 = vpop.eup %2236  ;;  %v460_v28 = vrot.slane %v2235_v10, 4  ;;  %v559_v32 = vmax.f32 %v557_v8, %v558_v24 }
  0xfc   :  { %v510_v51 = vld.sshfl [vmem:[#allocation1] sm:$0xff pattern:$0x75316420]  ;;  %v610_v6 = vrot.slane %v609_v58, 4  ;;  %v461_v34 = vrot.slane %v2237_v22, 4 }
  0xfd   :  { %518 = vst [vmem:[#allocation1 + $0x1] ss:$2 sm:$0xff] %v459_v49  ;;  %v625_v4 = vsel %vm551_vm5, %v510_v51, -inf  ;;  %v604_v51 = vmax.f32 %v602_v19, %v603_v36 }
  0xfe   :  { %517 = vst [vmem:[#allocation1] ss:$2 sm:$0xff] %v2227_v30  ;;  %v611_v20 = vmax.f32 %v609_v58, %v610_v6  ;;  %v577_v30 = vmax.f32 %v575_v0, %v576_v15  ;;  %v560_v58 = vrot.slane %v559_v32, 1 }
 0x100   :  { %v505_v63 = vld.sshfl [vmem:[#allocation1 + $0x20] sm:$0xff pattern:$0x75316420]  ;;  %v612_v37 = vrot.slane %v611_v20, 2  ;;  %v578_v48 = vrot.slane %v577_v30, 1 }
 0x101   :  { %v511_v5 = vld.sshfl [vmem:[#allocation1 + $0x10] sm:$0xff pattern:$0x75316420]  ;;  %512 = vst [vmem:[#allocation1 + $0x20] ss:$2 sm:$0xff] %v457_v62  ;;  %v616_v12 = vsel %vm551_vm5, %v505_v63, -inf }
 0x102   :  { %v506_v7 = vld.sshfl [vmem:[#allocation1 + $0x30] sm:$0xff pattern:$0x75316420]  ;;  %513 = vst [vmem:[#allocation1 + $0x21] ss:$2 sm:$0xff] %v2233_v53  ;;  %v626_v9 = vsel %vm553_vm4, %v511_v5, -inf  ;;  %v595_v53 = vmax.f32 %v593_v17, %v594_v33  ;;  %v613_v60 = vmax.f32 %v611_v20, %v612_v37  ;;  %v579_v2 = vmax.f32 %v577_v30, %v578_v48 }
 0x103   :  { %514 = vst [vmem:[#allocation1 + $0x30] ss:$2 sm:$0xff] %v458_v61  ;;  %v617_v13 = vsel %vm553_vm4, %v506_v7, -inf  ;;  %v627_v14 = vmax.f32 %v625_v4, %v626_v9  ;;  %v570_v61 = vmax.f32 %v568_v11, %v569_v25  ;;  %v605_v4 = vrot.slane %v604_v51, 1 }
 0x104   :  { %519 = vst [vmem:[#allocation1 + $0x10] ss:$2 sm:$0xff] %v2235_v10  ;;  %v618_v18 = vmax.f32 %v616_v12, %v617_v13  ;;  %v596_v3 = vrot.slane %v595_v53, 1  ;;  %v561_v9 = vmax.f32 %v559_v32, %v560_v58  ;;  %v588_v12 = vmax.f32 %v586_v43, %v587_v59 }
 0x105   :  { %v628_v21 = vrot.slane %v627_v14, 4  ;;  %v520_v29 = vld.sshfl [vmem:[#allocation1] sm:$0xff pattern:$0x75316420]  ;;  %v614_v13 = vrot.slane %v613_v60, 1  ;;  %v606_v19 = vmax.f32 %v604_v51, %v605_v4  ;;  %v662_v20 = vpack.c.bf16 %v570_v61, %v570_v61 }
 0x106   :  { %v619_v23 = vrot.slane %v618_v18, 4  ;;  %v643_v42 = vsel %vm551_vm5, %v520_v29, -inf  ;;  %v664_v29 = vpack.c.bf16 %v588_v12, %v588_v12 }
 0x107   :  { %v629_v26 = vmax.f32 %v627_v14, %v628_v21  ;;  %v663_v21 = vpack.c.bf16 %v579_v2, %v579_v2  ;;  %v692_v36 = vperm.slane %v662_v20, 0 }
 0x108   :  { %v620_v38 = vmax.f32 %v618_v18, %v619_v23  ;;  %v597_v18 = vmax.f32 %v595_v53, %v596_v3  ;;  %v694_v43 = vperm.slane %v664_v29, 0 }
 0x109   :  { %v515_v35 = vld.sshfl [vmem:[#allocation1 + $0x20] sm:$0xff pattern:$0x75316420]  ;;  %v630_v40 = vrot.slane %v629_v26, 2  ;;  %v693_v37 = vperm.slane %v663_v21, 0  ;;  %v704_v53 = vunpack.c.l.b16 %v692_v36 }
 0x10a   :  { %v516_v39 = vld.sshfl [vmem:[#allocation1 + $0x30] sm:$0xff pattern:$0x75316420]  ;;  %522 = vst [vmem:[#allocation1 + $0x20] ss:$2 sm:$0xff] %v460_v28  ;;  %v634_v44 = vsel %vm551_vm5, %v515_v35, -inf  ;;  %v661_v28 = vpack.c.bf16 %v561_v9, %v561_v9  ;;  %v665_v35 = vpack.c.bf16 %v597_v18, %v597_v18 }
 0x10b   :  { %524 = vst [vmem:[#allocation1 + $0x30] ss:$2 sm:$0xff] %v461_v34  ;;  %v521_v41 = vld.sshfl [vmem:[#allocation1 + $0x10] sm:$0xff pattern:$0x75316420]  ;;  %v635_v45 = vsel %vm553_vm4, %v516_v39, -inf  ;;  %v631_v54 = vmax.f32 %v629_v26, %v630_v40  ;;  %v615_v26 = vmax.f32 %v613_v60, %v614_v13  ;;  %v666_v39 = vpack.c.bf16 %v606_v19, %v606_v19 }
 0x10c   :  { %523 = vst [vmem:[#allocation1 + $0x21] ss:$2 sm:$0xff] %v2237_v22  ;;  %v644_v46 = vsel %vm553_vm4, %v521_v41, -inf  ;;  %v621_v27 = vrot.slane %v620_v38, 2  ;;  %v636_v49 = vmax.f32 %v634_v44, %v635_v45  ;;  %v2195_v44 = vld [vmem:[%s3367_s7] ss:$0 sm:$0xff]  ;;  %v706_v60 = vunpack.c.l.b16 %v694_v43 }
 0x10d   :  { %v645_v50 = vmax.f32 %v643_v42, %v644_v46  ;;  %v632_v10 = vrot.slane %v631_v54, 1  ;;  %v667_v32 = vpack.c.bf16 %v615_v26, %v615_v26  ;;  %v691_v42 = vperm.slane %v661_v28, 0  ;;  %v2145_v45 = vld [vmem:[%s3365_s5 + $0x10] sm:$0xff]  ;;  %v2146_v46 = vld [vmem:[%s3365_s5 + $0x18] sm:$0xff]  ;;  %852 = vrot.lane.b32.xlu0 %v2195_v44, %s2426_s20  ;;  %v2196_v21 = vld [vmem:[%s3367_s7 + $0x1] ss:$0 sm:$0xff] }
 0x10e   :  { %v637_v56 = vrot.slane %v636_v49, 4  ;;  %v622_v62 = vmax.f32 %v620_v38, %v621_v27  ;;  %v695_v52 = vperm.slane %v665_v35, 0  ;;  %v2198_v28 = vld [vmem:[%s3366_s6 + $0x1] ss:$0 sm:$0xff]  ;;  %s2098_s5 = sshll.u32 %s3375_s15, 4  ;;  %s2109_s15 = sshll.u32 %s3376_s16, 4  ;;  %s2099_s5 = int_to_ptr.hbm [resolvable:$true] %s2098_s5  ;;  %s2110_s15 = int_to_ptr.hbm [resolvable:$true] %s2109_s15 }
 0x10f   :  { %v646_v57 = vrot.slane %v645_v50, 4  ;;  %v633_v22 = vmax.f32 %v631_v54, %v632_v10  ;;  %v696_v54 = vperm.slane %v666_v39, 0  ;;  %v697_v58 = vperm.slane %v667_v32, 0 }
 0x110   :  { %v638_v0 = vmax.f32 %v636_v49, %v637_v56  ;;  %v623_v15 = vrot.slane %v622_v62, 1  ;;  %v2749_v49 = vpack.c.bf16 %v2146_v46, %v2145_v45  ;;  %v703_v59 = vunpack.c.l.b16 %v691_v42 }
 0x111   :  { %v647_v1 = vmax.f32 %v645_v50, %v646_v57  ;;  %v669_v40 = vpack.c.bf16 %v633_v22, %v633_v22  ;;  %v705_v57 = vunpack.c.l.b16 %v693_v37  ;;  %v708_v4 = vunpack.c.l.b16 %v696_v54  ;;  %v809_v22 = vld [vmem:[%s3361_s1] sm:$0x3] }
 0x112   :  { %v526_v63 = vld.sshfl [vmem:[#allocation1 + $0x30] sm:$0xff pattern:$0x75316420]  ;;  %v639_v6 = vrot.slane %v638_v0, 2  ;;  %v624_v30 = vmax.f32 %v622_v62, %v623_v15  ;;  %1069 = vmatpush.bf16.msrb.mxu3 %v2749_v49  ;;  %v716_v2 = vsel %vm715_vm6, %v704_v53, %v703_v59 }
 0x113   :  { %v525_v5 = vld.sshfl [vmem:[#allocation1 + $0x20] sm:$0xff pattern:$0x75316420]  ;;  %v648_v7 = vrot.slane %v647_v1, 2  ;;  %v653_v8 = vsel %vm553_vm4, %v526_v63, -inf  ;;  %v699_v56 = vperm.slane %v669_v40, 0  ;;  %v707_v63 = vunpack.c.l.b16 %v695_v52 }
 0x114   :  { %v652_v14 = vsel %vm551_vm5, %v525_v5, -inf  ;;  %v640_v11 = vmax.f32 %v638_v0, %v639_v6  ;;  %v668_v48 = vpack.c.bf16 %v624_v30, %v624_v30  ;;  %v718_v5 = vsel %vm717_vm7, %v705_v57, %v716_v2  ;;  %v2197_v30 = vld [vmem:[%s3366_s6] ss:$0 sm:$0xff]  ;;  %s2428_s6 = smov 16  }
 0x115   :  { %v649_v16 = vmax.f32 %v647_v1, %v648_v7  ;;  %v654_v17 = vmax.f32 %v652_v14, %v653_v8  ;;  %v711_v10 = vunpack.c.l.b16 %v699_v56  ;;  %v709_v6 = vunpack.c.l.b16 %v697_v58  ;;  %918 = vrot.lane.b32.xlu0 %v2196_v21, %s2426_s20 }
 0x116   :  { %v641_v23 = vrot.slane %v640_v11, 1  ;;  %1339 = vmatpush.bf16.msra.mxu3 %v2734_v55  ;;  %v698_v62 = vperm.slane %v668_v48, 0  ;;  %v720_v7 = vsel %vm719_vm8, %v706_v60, %v718_v5 }
 0x117   :  { %v650_v24 = vrot.slane %v649_v16, 1  ;;  %v655_v25 = vrot.slane %v654_v17, 4  ;;  %v722_v14 = vsel %vm721_vm9, %v707_v63, %v720_v7 }
 0x118   :  { %v642_v31 = vmax.f32 %v640_v11, %v641_v23  ;;  %v710_v9 = vunpack.c.l.b16 %v698_v62  ;;  %v724_v11 = vsel %vm723_vm10, %v708_v4, %v722_v14  ;;  %v812_v23 = vpack.c.bf16 %v809_v22, %v809_v22 }
 0x119   :  { %v656_v33 = vmax.f32 %v654_v17, %v655_v25  ;;  %v651_v34 = vmax.f32 %v649_v16, %v650_v24  ;;  %v726_v16 = vsel %vm725_vm11, %v709_v6, %v724_v11  ;;  %v2776_v24 = vld [vmem:[%s3361_s1 + $0x2] sm:$0x3]  ;;  %s2427_s1 = smov 96   ;;  %vm965_vm10 = vcmask 1042433  }
 0x11a   :  { %v670_v41 = vpack.c.bf16 %v642_v31, %v642_v31  ;;  %v728_v18 = vsel %vm727_vm12, %v710_v9, %v726_v16  ;;  %v879_v25 = vpack.c.bf16 %v2776_v24, %v2776_v24  ;;  %vm954_vm11 = vcmask 255104  }
 0x11b   :  { %v657_v38 = vrot.slane %v656_v33, 2  ;;  %v671_v50 = vpack.c.bf16 %v651_v34, %v651_v34  ;;  %vm959_vm12 = vcmask 1040384  }
 0x11c   :  { %v700_v27 = vperm.slane %v670_v41, 0 }
 0x11d   :  { %v658_v47 = vmax.f32 %v656_v33, %v657_v38  ;;  %v701_v1 = vperm.slane %v671_v50, 0 }
 0x11e   :  { %v712_v0 = vunpack.c.l.b16 %v700_v27 }
 0x11f   :  { %v659_v51 = vrot.slane %v658_v47, 1  ;;  %v713_v13 = vunpack.c.l.b16 %v701_v1 }
 0x120   :  { %v729_v12 = vsel %vm715_vm6, %v712_v0, %v711_v10 }
 0x121   :  { %v660_v61 = vmax.f32 %v658_v47, %v659_v51  ;;  %v730_v17 = vsel %vm717_vm7, %v713_v13, %v729_v12 }
 0x123   :  { %v672_v3 = vpack.c.bf16 %v660_v61, %v660_v61 }
 0x125   :  { %v702_v8 = vperm.slane %v672_v3, 0 }
 0x127   :  { %v714_v15 = vunpack.c.l.b16 %v702_v8 }
 0x129   :  { %v731_v19 = vsel %vm719_vm8, %v714_v15, %v730_v17 }
 0x12a   :  { %v732_v20 = vpack.c.b16 %v731_v19, %v728_v18 }
 0x12c   :  { %2141 = vmatmul.msk.bf16.vlgmr.msra.gmra.mxu1 %vm551_vm5, %v732_v20  ;;  %2144 = vmatmul.msk.bf16.vlgmr.msrb.gmra.mxu2 %vm551_vm5, %v732_v20 }
 0x12d   :  { %890 = vmatpush.bf16.msra.mxu1 %v2749_v49  ;;  %1234 = vmatpush.bf16.msrb.mxu2 %v2749_v49 }
 0x13c   :  { %2149 = vmatmul.msk.bf16.vlgmr.msrb.gmra.mxu1 %vm3378_vm13, %v812_v23 }
 0x13d   :  { %1174 = vmatpush.bf16.msrb.mxu1 %v2734_v55 }
 0x14c   :  { %2151 = vmatmul.msk.bf16.vlgmr.msra.gmra.mxu1 %vm3378_vm13, %v879_v25 }
 0x14d   :  { %1399 = vmatpush.bf16.msra.mxu1 %v2749_v49 }
 0x17f   :  { %v2792_v35 = vpop.permute.xlu0 %852 }
 0x187   :  { %v2796_v39 = vpop.permute.xlu0 %918 }
 0x1a9   :  { %v749_v26 = vpop.f32.mrf.mxu1 }
 0x1aa   :  { %v2801_v42 = vadd.f32 %v2197_v30, %v749_v26 }
 0x1af   :  { %v784_v29 = vpop.f32.mrf.mxu2 }
 0x1b0   :  { %v2788_v31 = vadd.f32 %v2198_v28, %v784_v29 }
 0x1b1   :  { %v751_v33 = vpop.f32.mrf.mxu1 }
 0x1b2   :  { %v2790_v34 = vadd.f32 %v2197_v30, %v751_v33 }
 0x1b7   :  { %v786_v45 = vpop.f32.mrf.mxu2 }
 0x1b8   :  { %v2804_v46 = vadd.f32 %v2198_v28, %v786_v45 }
 0x1b9   :  { %v826_v36 = vpop.f32.mrf.mxu1 }
 0x1ba   :  { %v855_v37 = vadd.f32 %v2792_v35, %v826_v36  ;;  %v830_v43 = vadd.f32 %v826_v36, %v2801_v42  ;;  %v794_v48 = vrot.slane %v2804_v46, 2 }
 0x1bc   :  { %857 = vrot.lane.b32.xlu1 %v855_v37, %s2427_s1  ;;  %v2150_v44 = vmul.f32 -1.442695, %v830_v43 }
 0x1be   :  { %2238 = vpow2.f32 %v2150_v44 }
 0x1c1   :  { %v828_v38 = vpop.f32.mrf.mxu1 }
 0x1c4   :  { %v2239_v47 = vpop.eup %2238 }
 0x1c5   :  { %v834_v50 = vadd.f32 1.0, %v2239_v47 }
 0x1c7   :  { %2240 = vrcp.f32 %v834_v50  ;;  %v846_v61 = vand.u32 2147483648, %v834_v50  ;;  %vm840_vm15 = vweird.f32 %v834_v50  ;;  %v844_v62 = vand.u32 2147483647, %v834_v50 }
 0x1c9   :  { %v892_v40 = vpop.f32.mrf.mxu1  ;;  %v847_v63 = vor.u32 1.1754944e-38, %v846_v61  ;;  %vm845_vm2 = vcmp.eq.f32.partialorder %v844_v62, 8.507059e+37 }
 0x1ca   :  { %v921_v41 = vadd.f32 %v2796_v39, %v892_v40  ;;  %v896_v27 = vadd.f32 %v892_v40, %v794_v48 }
 0x1cc   :  { %923 = vrot.lane.b32.xlu1 %v921_v41, %s2427_s1  ;;  %v2152_v52 = vmul.f32 -1.442695, %v896_v27 }
 0x1cd   :  { %v2241_v53 = vpop.eup %2240 }
 0x1ce   :  { %2242 = vpow2.f32 %v2152_v52  ;;  %v836_v54 = vmul.f32 %v2241_v53, %v834_v50  ;;  %vm841_vm14 = vweird.f32 %v2241_v53 }
 0x1cf   :  { %vm842_vm1 = vmor %vm840_vm15, %vm841_vm14  ;;  %vm992_vm14 = vcmask 254080  }
 0x1d0   :  { %v837_v57 = vsub.f32 1.0, %v836_v54 }
 0x1d1   :  { %v894_v32 = vpop.f32.mrf.mxu1 }
 0x1d2   :  { %v838_v58 = vmul.f32 %v2241_v53, %v837_v57 }
 0x1d4   :  { %874 = vrot.lane.b32.xlu1 %v809_v22, %s2428_s6  ;;  %v2243_v51 = vpop.eup %2242  ;;  %v839_v59 = vadd.f32 %v2241_v53, %v838_v58 }
 0x1d5   :  { %v900_v56 = vadd.f32 1.0, %v2243_v51 }
 0x1d6   :  { %v843_v0 = vsel %vm842_vm1, %v2241_v53, %v839_v59 }
 0x1d7   :  { %2244 = vrcp.f32 %v900_v56  ;;  %v848_v3 = vsel %vm845_vm2, %v847_v63, %v843_v0  ;;  %v912_v7 = vand.u32 2147483648, %v900_v56  ;;  %vm906_vm4 = vweird.f32 %v900_v56 }
 0x1d8   :  { %v910_v8 = vand.u32 2147483647, %v900_v56  ;;  %v867_v22 = vsub.f32 1.0, %v848_v3 }
 0x1d9   :  { %v913_v12 = vor.u32 1.1754944e-38, %v912_v7 }
 0x1da   :  { %vm911_vm9 = vcmp.eq.f32.partialorder %v910_v8, 8.507059e+37 }
 0x1dd   :  { %v2245_v60 = vpop.eup %2244 }
 0x1de   :  { %v902_v1 = vmul.f32 %v2245_v60, %v900_v56  ;;  %vm907_vm3 = vweird.f32 %v2245_v60 }
 0x1df   :  { %vm908_vm5 = vmor %vm906_vm4, %vm907_vm3 }
 0x1e0   :  { %v903_v10 = vsub.f32 1.0, %v902_v1 }
 0x1e2   :  { %v904_v5 = vmul.f32 %v2245_v60, %v903_v10 }
 0x1e4   :  { %v905_v6 = vadd.f32 %v2245_v60, %v904_v5  ;;  %v756_v5 = vrot.slane %v2801_v42, 2 }
 0x1e6   :  { %v909_v9 = vsel %vm908_vm5, %v2245_v60, %v905_v6 }
 0x1e7   :  { %v914_v14 = vsel %vm911_vm9, %v913_v12, %v909_v9 }
 0x1e8   :  { %v933_v37 = vsub.f32 1.0, %v914_v14 }
 0x22e   :  { %v858_v2 = vpop.permute.xlu1 %857 }
 0x22f   :  { %v860_v4 = vmul.f32 %v858_v2, %v848_v3 }
 0x231   :  { %862 = vrot.lane.b32.xlu2 %v860_v4, %s2426_s20 }
 0x23e   :  { %v924_v13 = vpop.permute.xlu1 %923 }
 0x23f   :  { %v926_v15 = vmul.f32 %v924_v13, %v914_v14 }
 0x241   :  { %928 = vrot.lane.b32.xlu2 %v926_v15, %s2426_s20 }
 0x246   :  { %v875_v21 = vpop.permute.xlu1 %874 }
 0x247   :  { %v877_v25 = vmul.f32 %v875_v21, %v848_v3 }
 0x28b   :  { %v863_v11 = vpop.permute.xlu2 %862 }
 0x28c   :  { %v865_v16 = vadd.f32 %v863_v11, %v2801_v42 }
 0x28e   :  { %2246 = vtanh.f32 %v865_v16 }
 0x294   :  { %v2247_v17 = vpop.eup %2246 }
 0x295   :  { %869 = vrot.lane.b32.xlu0 %v2247_v17, %s2429_s26 }
 0x29b   :  { %v929_v18 = vpop.permute.xlu2 %928 }
 0x29c   :  { %v931_v19 = vadd.f32 %v929_v18, %v794_v48 }
 0x29d   :  { %940 = vrot.lane.b32.xlu0 %v2776_v24, %s2428_s6 }
 0x29e   :  { %2248 = vtanh.f32 %v931_v19 }
 0x2a4   :  { %v2249_v20 = vpop.eup %2248 }
 0x2a5   :  { %935 = vrot.lane.b32.xlu2 %v2249_v20, %s2429_s26 }
 0x2ff   :  { %v936_v36 = vpop.permute.xlu2 %935 }
 0x300   :  { %v938_v43 = vmul.f32 %v936_v36, %v933_v37 }
 0x307   :  { %v870_v23 = vpop.permute.xlu0 %869 }
 0x308   :  { %v872_v26 = vmul.f32 %v870_v23, %v867_v22 }
 0x30a   :  { %v2814_v28 = vadd.f32 %v877_v25, %v872_v26 }
 0x30c   :  { %946 = vst [vmem:[#allocation1] ss:$4 sm:$0xff] %v2814_v28  ;;  %v995_v29 = vpack.c.bf16 %v2814_v28, %v2814_v28  ;;  %v956_v30 = vrot.slane %v2814_v28, 1  ;;  %v957_v24 = vrot.slane %v2814_v28, 2  ;;  %v958_v33 = vrot.slane %v2814_v28, 3 }
 0x30e   :  { %997 = vrot.lane.b32.xlu1 %v995_v29, %s2429_s26  ;;  %v963_v38 = vsel %vm715_vm6, %v2814_v28, %v956_v30  ;;  %v964_v40 = vsel %vm719_vm8, %v957_v24, %v958_v33 }
 0x30f   :  { %v941_v41 = vpop.permute.xlu0 %940  ;;  %v2833_v32 = vsel %vm965_vm10, %v963_v38, %v964_v40 }
 0x310   :  { %v943_v44 = vmul.f32 %v941_v41, %v914_v14 }
 0x312   :  { %v2835_v45 = vadd.f32 %v943_v44, %v938_v43 }
 0x314   :  { %v1055_v47 = vpack.c.bf16 %v2835_v45, %v2835_v45  ;;  %v980_v48 = vrot.slane %v2835_v45, 1  ;;  %v981_v27 = vrot.slane %v2835_v45, 2  ;;  %v982_v50 = vrot.slane %v2835_v45, 3  ;;  %955 = vst.msk [vmem:[#allocation3 + $0xa] sm:$0x3] %vm954_vm11, %v2835_v45 }
 0x316   :  { %1057 = vrot.lane.b32.xlu2 %v1055_v47, %s2429_s26  ;;  %v983_v52 = vsel %vm959_vm12, %v2835_v45, %v980_v48  ;;  %v984_v53 = vsel %vm717_vm7, %v981_v27, %v982_v50  ;;  %v986_v51 = vsel %vm715_vm6, %v2835_v45, %v980_v48  ;;  %v987_v54 = vsel %vm719_vm8, %v981_v27, %v982_v50 }
 0x317   :  { %v985_v56 = vsel %vm148_vm0, %v983_v52, %v984_v53  ;;  %v988_v57 = vsel %vm965_vm10, %v986_v51, %v987_v54 }
 0x318   :  { %993 = vst.msk [vmem:[#allocation2 + $0x5] sm:$0x1] %vm992_vm14, %v985_v56  ;;  %v989_v58 = vrot.slane %v988_v57, 1 }
 0x31a   :  { %994 = vst.msk [vmem:[#allocation2 + $0xd] sm:$0x1] %vm992_vm14, %v989_v58 }
 0x370   :  { %v1058_v59 = vpop.permute.xlu2 %1057 }
 0x371   :  { %2155 = vmatmul.msk.bf16.vlgmr.msrb.gmra.mxu3 %vm3378_vm13, %v1058_v59 }
 0x372   :  { %1562 = vmatpush.bf16.msrb.mxu3 %v2749_v49 }
 0x380   :  { %v998_v60 = vpop.permute.xlu1 %997 }
 0x381   :  { %2153 = vmatmul.msk.bf16.vlgmr.msra.gmra.mxu2 %vm3378_vm13, %v998_v60 }
 0x382   :  { %1502 = vmatpush.bf16.msra.mxu2 %v2734_v55 }
 0x3f4   :  { %v1071_v61 = vpop.f32.mrf.mxu3 }
 0x3f5   :  { %v1095_v62 = vadd.f32 %v1071_v61, %v2796_v39  ;;  %v1075_v3 = vadd.f32 %v1071_v61, %v2804_v46 }
 0x3f7   :  { %1097 = vrot.lane.b32.xlu1 %v1095_v62, %s2427_s1  ;;  %v2156_v4 = vmul.f32 -1.442695, %v1075_v3 }
 0x3f9   :  { %2250 = vpow2.f32 %v2156_v4 }
 0x3fc   :  { %v1073_v0 = vpop.f32.mrf.mxu3 }
 0x3ff   :  { %v2251_v10 = vpop.eup %2250 }
 0x400   :  { %v1079_v7 = vadd.f32 1.0, %v2251_v10 }
 0x402   :  { %2252 = vrcp.f32 %v1079_v7  ;;  %v1091_v18 = vand.u32 2147483648, %v1079_v7  ;;  %vm1085_vm1 = vweird.f32 %v1079_v7  ;;  %v1089_v19 = vand.u32 2147483647, %v1079_v7 }
 0x404   :  { %v1011_v1 = vpop.f32.mrf.mxu2  ;;  %v1092_v22 = vor.u32 1.1754944e-38, %v1091_v18  ;;  %vm1090_vm3 = vcmp.eq.f32.partialorder %v1089_v19, 8.507059e+37 }
 0x405   :  { %v1035_v63 = vadd.f32 %v1011_v1, %v2792_v35  ;;  %v1015_v6 = vadd.f32 %v1011_v1, %v756_v5 }
 0x407   :  { %1037 = vrot.lane.b32.xlu0 %v1035_v63, %s2427_s1  ;;  %v2154_v8 = vmul.f32 -1.442695, %v1015_v6 }
 0x408   :  { %v2253_v9 = vpop.eup %2252 }
 0x409   :  { %2254 = vpow2.f32 %v2154_v8  ;;  %v1081_v13 = vmul.f32 %v2253_v9, %v1079_v7  ;;  %vm1086_vm15 = vweird.f32 %v2253_v9 }
 0x40a   :  { %vm1087_vm2 = vmor %vm1085_vm1, %vm1086_vm15 }
 0x40b   :  { %v1082_v15 = vsub.f32 1.0, %v1081_v13 }
 0x40c   :  { %v1013_v2 = vpop.f32.mrf.mxu2 }
 0x40d   :  { %v1083_v11 = vmul.f32 %v2253_v9, %v1082_v15 }
 0x40f   :  { %v2255_v12 = vpop.eup %2254  ;;  %v1084_v16 = vadd.f32 %v2253_v9, %v1083_v11 }
 0x410   :  { %v1019_v14 = vadd.f32 1.0, %v2255_v12  ;;  %v2894_v12 = vld.sshfl [vmem:[#allocation1] sm:$0xff pattern:$0x73625140] }
 0x411   :  { %v1088_v20 = vsel %vm1087_vm2, %v2253_v9, %v1084_v16 }
 0x412   :  { %2256 = vrcp.f32 %v1019_v14  ;;  %v1093_v25 = vsel %vm1090_vm3, %v1092_v22, %v1088_v20  ;;  %v1031_v38 = vand.u32 2147483648, %v1019_v14  ;;  %vm1025_vm5 = vweird.f32 %v1019_v14 }
 0x413   :  { %v1029_v40 = vand.u32 2147483647, %v1019_v14  ;;  %v1107_v56 = vsub.f32 1.0, %v1093_v25  ;;  %v1113_v58 = vmul.f32 %v1093_v25, %v2835_v45 }
 0x414   :  { %v1032_v43 = vor.u32 1.1754944e-38, %v1031_v38  ;;  %v793_v38 = vrot.slane %v2788_v31, 6 }
 0x415   :  { %vm1030_vm15 = vcmp.eq.f32.partialorder %v1029_v40, 8.507059e+37 }
 0x418   :  { %v2257_v17 = vpop.eup %2256 }
 0x419   :  { %v1021_v21 = vmul.f32 %v2257_v17, %v1019_v14  ;;  %vm1026_vm4 = vweird.f32 %v2257_v17 }
 0x41a   :  { %vm1027_vm9 = vmor %vm1025_vm5, %vm1026_vm4 }
 0x41b   :  { %v1022_v29 = vsub.f32 1.0, %v1021_v21 }
 0x41d   :  { %v1023_v36 = vmul.f32 %v2257_v17, %v1022_v29 }
 0x41f   :  { %v1024_v37 = vadd.f32 %v2257_v17, %v1023_v36  ;;  %v757_v36 = vrot.slane %v2801_v42, 4 }
 0x421   :  { %v1028_v41 = vsel %vm1027_vm9, %v2257_v17, %v1024_v37 }
 0x422   :  { %v1033_v47 = vsel %vm1030_vm15, %v1032_v43, %v1028_v41 }
 0x423   :  { %v1053_v7 = vmul.f32 %v1033_v47, %v2814_v28 }
 0x469   :  { %v1098_v23 = vpop.permute.xlu1 %1097 }
 0x46a   :  { %v1100_v26 = vmul.f32 %v1098_v23, %v1093_v25 }
 0x46c   :  { %1102 = vrot.lane.b32.xlu0 %v1100_v26, %s2426_s20 }
 0x479   :  { %v1038_v44 = vpop.permute.xlu0 %1037 }
 0x47a   :  { %v1040_v48 = vmul.f32 %v1038_v44, %v1033_v47 }
 0x47c   :  { %1042 = vrot.lane.b32.xlu2 %v1040_v48, %s2426_s20 }
 0x4d6   :  { %v1043_v27 = vpop.permute.xlu2 %1042 }
 0x4d7   :  { %v1045_v50 = vadd.f32 %v1043_v27, %v756_v5  ;;  %v1047_v5 = vsub.f32 1.0, %v1033_v47 }
 0x4d9   :  { %2258 = vtanh.f32 %v1045_v50 }
 0x4de   :  { %v1103_v52 = vpop.permute.xlu0 %1102 }
 0x4df   :  { %v2259_v53 = vpop.eup %2258  ;;  %v1105_v51 = vadd.f32 %v1103_v52, %v2804_v46 }
 0x4e0   :  { %1049 = vrot.lane.b32.xlu1 %v2259_v53, %s2429_s26 }
 0x4e1   :  { %2260 = vtanh.f32 %v1105_v51 }
 0x4e7   :  { %v2261_v54 = vpop.eup %2260 }
 0x4e8   :  { %1109 = vrot.lane.b32.xlu2 %v2261_v54, %s2429_s26 }
 0x542   :  { %v1110_v57 = vpop.permute.xlu2 %1109 }
 0x543   :  { %v1112_v59 = vmul.f32 %v1110_v57, %v1107_v56 }
 0x545   :  { %v2871_v60 = vadd.f32 %v1113_v58, %v1112_v59 }
 0x547   :  { %v1220_v61 = vpack.c.bf16 %v2871_v60, %v2871_v60  ;;  %v1146_v62 = vrot.slane %v2871_v60, 1  ;;  %v1147_v46 = vrot.slane %v2871_v60, 2  ;;  %v1148_v0 = vrot.slane %v2871_v60, 3  ;;  %1124 = vst.msk [vmem:[#allocation3 + $0x8] sm:$0x3] %vm954_vm11, %v2871_v60 }
 0x549   :  { %1222 = vrot.lane.b32.xlu1 %v1220_v61, %s2429_s26  ;;  %v1152_v45 = vsel %vm715_vm6, %v2871_v60, %v1146_v62  ;;  %v1153_v1 = vsel %vm719_vm8, %v1147_v46, %v1148_v0  ;;  %v1149_v63 = vsel %vm959_vm12, %v2871_v60, %v1146_v62  ;;  %v1150_v2 = vsel %vm717_vm7, %v1147_v46, %v1148_v0 }
 0x54a   :  { %v1154_v3 = vsel %vm965_vm10, %v1152_v45, %v1153_v1  ;;  %v1151_v4 = vsel %vm148_vm0, %v1149_v63, %v1150_v2 }
 0x54b   :  { %v1155_v10 = vrot.slane %v1154_v3, 1  ;;  %1158 = vst.msk [vmem:[#allocation2 + $0x4] sm:$0x1] %vm992_vm14, %v1151_v4 }
 0x54d   :  { %1159 = vst.msk [vmem:[#allocation2 + $0xc] sm:$0x1] %vm992_vm14, %v1155_v10 }
 0x552   :  { %v1050_v6 = vpop.permute.xlu1 %1049 }
 0x553   :  { %v1052_v8 = vmul.f32 %v1050_v6, %v1047_v5 }
 0x555   :  { %v2892_v9 = vadd.f32 %v1053_v7, %v1052_v8 }
 0x557   :  { %1116 = vst [vmem:[#allocation1] ss:$4 sm:$0xff] %v2892_v9  ;;  %v1160_v13 = vpack.c.bf16 %v2892_v9, %v2892_v9  ;;  %v1125_v14 = vrot.slane %v2892_v9, 1  ;;  %v1126_v15 = vrot.slane %v2892_v9, 2  ;;  %v1127_v11 = vrot.slane %v2892_v9, 3 }
 0x559   :  { %1162 = vrot.lane.b32.xlu0 %v1160_v13, %s2429_s26  ;;  %v1131_v16 = vsel %vm715_vm6, %v2892_v9, %v1125_v14  ;;  %v1132_v17 = vsel %vm719_vm8, %v1126_v15, %v1127_v11 }
 0x55a   :  { %v2913_v18 = vsel %vm965_vm10, %v1131_v16, %v1132_v17 }
 0x5bb   :  { %v1223_v19 = vpop.permute.xlu1 %1222 }
 0x5bc   :  { %2159 = vmatmul.msk.bf16.vlgmr.msrb.gmra.mxu2 %vm3378_vm13, %v1223_v19 }
 0x5bd   :  { %1725 = vmatpush.bf16.msrb.mxu2 %v2749_v49 }
 0x5cb   :  { %v1163_v20 = vpop.permute.xlu0 %1162 }
 0x5cc   :  { %2157 = vmatmul.msk.bf16.vlgmr.msrb.gmra.mxu1 %vm3378_vm13, %v1163_v20 }
 0x5cd   :  { %1665 = vmatpush.bf16.msrb.mxu1 %v2734_v55 }
 0x63f   :  { %v1236_v21 = vpop.f32.mrf.mxu2 }
 0x640   :  { %v1260_v22 = vadd.f32 %v1236_v21, %v2796_v39  ;;  %v1240_v40 = vadd.f32 %v1236_v21, %v793_v38 }
 0x642   :  { %1262 = vrot.lane.b32.xlu1 %v1260_v22, %s2427_s1  ;;  %v2160_v43 = vmul.f32 -1.442695, %v1240_v40 }
 0x647   :  { %v1238_v23 = vpop.f32.mrf.mxu2 }
 0x649   :  { %v1176_v25 = vpop.f32.mrf.mxu1 }
 0x64a   :  { %v1200_v26 = vadd.f32 %v1176_v25, %v2792_v35  ;;  %v1180_v49 = vadd.f32 %v1176_v25, %v757_v36 }
 0x64c   :  { %1202 = vrot.lane.b32.xlu2 %v1200_v26, %s2427_s1  ;;  %v2158_v37 = vmul.f32 -1.442695, %v1180_v49 }
 0x64e   :  { %2262 = vpow2.f32 %v2158_v37 }
 0x651   :  { %v1178_v29 = vpop.f32.mrf.mxu1 }
 0x654   :  { %v2263_v55 = vpop.eup %2262 }
 0x655   :  { %v1184_v41 = vadd.f32 1.0, %v2263_v55 }
 0x657   :  { %2264 = vrcp.f32 %v1184_v41  ;;  %v1196_v54 = vand.u32 2147483648, %v1184_v41  ;;  %vm1190_vm2 = vweird.f32 %v1184_v41  ;;  %v1194_v56 = vand.u32 2147483647, %v1184_v41 }
 0x658   :  { %2266 = vpow2.f32 %v2160_v43 }
 0x659   :  { %v1197_v59 = vor.u32 1.1754944e-38, %v1196_v54  ;;  %vm1195_vm4 = vcmp.eq.f32.partialorder %v1194_v56, 8.507059e+37 }
 0x65d   :  { %v2265_v44 = vpop.eup %2264 }
 0x65e   :  { %v2267_v47 = vpop.eup %2266  ;;  %v1186_v48 = vmul.f32 %v2265_v44, %v1184_v41  ;;  %vm1191_vm1 = vweird.f32 %v2265_v44 }
 0x65f   :  { %v1244_v27 = vadd.f32 1.0, %v2267_v47  ;;  %vm1192_vm3 = vmor %vm1190_vm2, %vm1191_vm1 }
 0x660   :  { %v1187_v50 = vsub.f32 1.0, %v1186_v48 }
 0x661   :  { %2268 = vrcp.f32 %v1244_v27  ;;  %v1256_v63 = vand.u32 2147483648, %v1244_v27  ;;  %vm1250_vm9 = vweird.f32 %v1244_v27  ;;  %v1254_v2 = vand.u32 2147483647, %v1244_v27 }
 0x662   :  { %v1188_v52 = vmul.f32 %v2265_v44, %v1187_v50 }
 0x663   :  { %v1257_v4 = vor.u32 1.1754944e-38, %v1256_v63  ;;  %vm1255_vm13 = vcmp.eq.f32.partialorder %v1254_v2, 8.507059e+37 }
 0x664   :  { %v1189_v51 = vadd.f32 %v2265_v44, %v1188_v52  ;;  %v2953_v52 = vld.sshfl [vmem:[#allocation1] sm:$0xff pattern:$0x73625140] }
 0x666   :  { %v1193_v58 = vsel %vm1192_vm3, %v2265_v44, %v1189_v51 }
 0x667   :  { %v2269_v53 = vpop.eup %2268  ;;  %v1198_v62 = vsel %vm1195_vm4, %v1197_v59, %v1193_v58 }
 0x668   :  { %v1246_v57 = vmul.f32 %v2269_v53, %v1244_v27  ;;  %vm1251_vm5 = vweird.f32 %v2269_v53  ;;  %v1212_v43 = vsub.f32 1.0, %v1198_v62  ;;  %v1218_v48 = vmul.f32 %v1198_v62, %v2892_v9 }
 0x669   :  { %vm1252_vm15 = vmor %vm1250_vm9, %vm1251_vm5 }
 0x66a   :  { %v1247_v61 = vsub.f32 1.0, %v1246_v57 }
 0x66c   :  { %v1248_v45 = vmul.f32 %v2269_v53, %v1247_v61 }
 0x66e   :  { %v1249_v1 = vadd.f32 %v2269_v53, %v1248_v45 }
 0x670   :  { %v1253_v3 = vsel %vm1252_vm15, %v2269_v53, %v1249_v1 }
 0x671   :  { %v1258_v5 = vsel %vm1255_vm13, %v1257_v4, %v1253_v3  ;;  %vm3381_vm13 = vcmask 130048   ;;  %v792_v3 = vrot.slane %v2788_v31, 4 }
 0x672   :  { %v1272_v20 = vsub.f32 1.0, %v1258_v5  ;;  %v1278_v22 = vmul.f32 %v1258_v5, %v2871_v60  ;;  %vm3382_vm1 = vmmov %vm3381_vm13 }
 0x6a6   :  { %v1203_v46 = vpop.permute.xlu2 %1202 }
 0x6a7   :  { %v1205_v0 = vmul.f32 %v1203_v46, %v1198_v62 }
 0x6a9   :  { %1207 = vrot.lane.b32.xlu0 %v1205_v0, %s2426_s20 }
 0x6b4   :  { %v1263_v10 = vpop.permute.xlu1 %1262 }
 0x6b5   :  { %v1265_v6 = vmul.f32 %v1263_v10, %v1258_v5 }
 0x6b7   :  { %1267 = vrot.lane.b32.xlu2 %v1265_v6, %s2426_s20  ;;  %v758_v6 = vrot.slane %v2801_v42, 6 }
 0x711   :  { %v1268_v7 = vpop.permute.xlu2 %1267 }
 0x712   :  { %v1270_v8 = vadd.f32 %v1268_v7, %v793_v38 }
 0x714   :  { %2270 = vtanh.f32 %v1270_v8 }
 0x71a   :  { %v2271_v13 = vpop.eup %2270 }
 0x71b   :  { %v1208_v16 = vpop.permute.xlu0 %1207  ;;  %1274 = vrot.lane.b32.xlu1 %v2271_v13, %s2429_s26 }
 0x71c   :  { %v1210_v17 = vadd.f32 %v1208_v16, %v757_v36 }
 0x71e   :  { %2272 = vtanh.f32 %v1210_v17 }
 0x724   :  { %v2273_v19 = vpop.eup %2272 }
 0x725   :  { %1214 = vrot.lane.b32.xlu0 %v2273_v19, %s2429_s26 }
 0x78d   :  { %v1275_v21 = vpop.permute.xlu1 %1274 }
 0x78e   :  { %v1277_v23 = vmul.f32 %v1275_v21, %v1272_v20 }
 0x790   :  { %v2930_v25 = vadd.f32 %v1278_v22, %v1277_v23 }
 0x792   :  { %v1385_v26 = vpack.c.bf16 %v2930_v25, %v2930_v25  ;;  %v1311_v29 = vrot.slane %v2930_v25, 1  ;;  %v1312_v49 = vrot.slane %v2930_v25, 2  ;;  %v1313_v36 = vrot.slane %v2930_v25, 3  ;;  %1289 = vst.msk [vmem:[#allocation3 + $0x6] sm:$0x3] %vm954_vm11, %v2930_v25 }
 0x794   :  { %1387 = vrot.lane.b32.xlu0 %v1385_v26, %s2429_s26  ;;  %v1314_v60 = vsel %vm959_vm12, %v2930_v25, %v1311_v29  ;;  %v1315_v37 = vsel %vm717_vm7, %v1312_v49, %v1313_v36  ;;  %v1317_v38 = vsel %vm715_vm6, %v2930_v25, %v1311_v29  ;;  %v1318_v55 = vsel %vm719_vm8, %v1312_v49, %v1313_v36 }
 0x795   :  { %v1316_v40 = vsel %vm148_vm0, %v1314_v60, %v1315_v37  ;;  %v1319_v41 = vsel %vm965_vm10, %v1317_v38, %v1318_v55 }
 0x796   :  { %1323 = vst.msk [vmem:[#allocation2 + $0x3] sm:$0x1] %vm992_vm14, %v1316_v40  ;;  %v1320_v44 = vrot.slane %v1319_v41, 1 }
 0x797   :  { %v1215_v47 = vpop.permute.xlu0 %1214 }
 0x798   :  { %v1217_v27 = vmul.f32 %v1215_v47, %v1212_v43  ;;  %1324 = vst.msk [vmem:[#allocation2 + $0xb] sm:$0x1] %vm992_vm14, %v1320_v44 }
 0x79a   :  { %v2951_v50 = vadd.f32 %v1218_v48, %v1217_v27 }
 0x79c   :  { %1281 = vst [vmem:[#allocation1] ss:$4 sm:$0xff] %v2951_v50  ;;  %v1325_v53 = vpack.c.bf16 %v2951_v50, %v2951_v50  ;;  %v1290_v51 = vrot.slane %v2951_v50, 1  ;;  %v1291_v54 = vrot.slane %v2951_v50, 2  ;;  %v1292_v56 = vrot.slane %v2951_v50, 3 }
 0x79e   :  { %1327 = vrot.lane.b32.xlu2 %v1325_v53, %s2429_s26  ;;  %v1293_v57 = vsel %vm959_vm12, %v2951_v50, %v1290_v51  ;;  %v1294_v58 = vsel %vm717_vm7, %v1291_v54, %v1292_v56 }
 0x79f   :  { %v2972_v59 = vsel %vm148_vm0, %v1293_v57, %v1294_v58 }
 0x7f8   :  { %v1328_v61 = vpop.permute.xlu2 %1327 }
 0x7f9   :  { %2161 = vmatmul.msk.bf16.vlgmr.msra.gmra.mxu3 %vm3381_vm13, %v1328_v61 }
 0x806   :  { %v1388_v62 = vpop.permute.xlu0 %1387 }
 0x807   :  { %2163 = vmatmul.msk.bf16.vlgmr.msra.gmra.mxu1 %vm3382_vm1, %v1388_v62 }
 0x87c   :  { %v1341_v46 = vpop.f32.mrf.mxu3 }
 0x87d   :  { %v1365_v0 = vadd.f32 %v1341_v46, %v2792_v35  ;;  %v1345_v7 = vadd.f32 %v1341_v46, %v758_v6 }
 0x87f   :  { %1367 = vrot.lane.b32.xlu1 %v1365_v0, %s2427_s1  ;;  %v2162_v13 = vmul.f32 -1.442695, %v1345_v7  ;;  %v2989_v7 = vld.sshfl [vmem:[#allocation1] sm:$0xff pattern:$0x73625140] }
 0x884   :  { %v1343_v45 = vpop.f32.mrf.mxu3  ;;  %v1401_v1 = vpop.f32.mrf.mxu1 }
 0x885   :  { %v1425_v63 = vadd.f32 %v1401_v1, %v2796_v39  ;;  %v1405_v4 = vadd.f32 %v1401_v1, %v792_v3 }
 0x887   :  { %1427 = vrot.lane.b32.xlu2 %v1425_v63, %s2427_s1  ;;  %v2164_v10 = vmul.f32 -1.442695, %v1405_v4 }
 0x889   :  { %2274 = vpow2.f32 %v2164_v10 }
 0x88c   :  { %v1403_v2 = vpop.f32.mrf.mxu1 }
 0x88f   :  { %v2275_v5 = vpop.eup %2274 }
 0x890   :  { %v1409_v8 = vadd.f32 1.0, %v2275_v5 }
 0x892   :  { %2276 = vrcp.f32 %v1409_v8  ;;  %v1421_v29 = vand.u32 2147483648, %v1409_v8  ;;  %vm1415_vm3 = vweird.f32 %v1409_v8  ;;  %v1419_v49 = vand.u32 2147483647, %v1409_v8 }
 0x893   :  { %2278 = vpow2.f32 %v2162_v13 }
 0x894   :  { %v1422_v60 = vor.u32 1.1754944e-38, %v1421_v29  ;;  %vm1420_vm5 = vcmp.eq.f32.partialorder %v1419_v49, 8.507059e+37 }
 0x898   :  { %v2277_v16 = vpop.eup %2276 }
 0x899   :  { %v2279_v17 = vpop.eup %2278  ;;  %v1411_v19 = vmul.f32 %v2277_v16, %v1409_v8  ;;  %vm1416_vm2 = vweird.f32 %v2277_v16 }
 0x89a   :  { %v1349_v20 = vadd.f32 1.0, %v2279_v17  ;;  %vm1417_vm4 = vmor %vm1415_vm3, %vm1416_vm2  ;;  %vm3383_vm2 = vcmask 130048  }
 0x89b   :  { %v1412_v21 = vsub.f32 1.0, %v1411_v19  ;;  %vm3384_vm3 = vmmov %vm3383_vm2 }
 0x89c   :  { %2280 = vrcp.f32 %v1349_v20  ;;  %v1361_v44 = vand.u32 2147483648, %v1349_v20  ;;  %vm1355_vm15 = vweird.f32 %v1349_v20  ;;  %v1359_v47 = vand.u32 2147483647, %v1349_v20 }
 0x89d   :  { %v1413_v22 = vmul.f32 %v2277_v16, %v1412_v21 }
 0x89e   :  { %v1362_v27 = vor.u32 1.1754944e-38, %v1361_v44  ;;  %vm1360_vm1 = vcmp.eq.f32.partialorder %v1359_v47, 8.507059e+37 }
 0x89f   :  { %v1414_v23 = vadd.f32 %v2277_v16, %v1413_v22 }
 0x8a1   :  { %v1418_v42 = vsel %vm1417_vm4, %v2277_v16, %v1414_v23 }
 0x8a2   :  { %v2281_v26 = vpop.eup %2280  ;;  %v1423_v37 = vsel %vm1420_vm5, %v1422_v60, %v1418_v42 }
 0x8a3   :  { %v1351_v36 = vmul.f32 %v2281_v26, %v1349_v20  ;;  %vm1356_vm9 = vweird.f32 %v2281_v26  ;;  %v1437_v16 = vsub.f32 1.0, %v1423_v37  ;;  %v1443_v22 = vmul.f32 %v1423_v37, %v2930_v25 }
 0x8a4   :  { %vm1357_vm13 = vmor %vm1355_vm15, %vm1356_vm9 }
 0x8a5   :  { %v1352_v40 = vsub.f32 1.0, %v1351_v36 }
 0x8a7   :  { %v1353_v41 = vmul.f32 %v2281_v26, %v1352_v40 }
 0x8a9   :  { %v1354_v43 = vadd.f32 %v2281_v26, %v1353_v41 }
 0x8ab   :  { %v1358_v48 = vsel %vm1357_vm13, %v2281_v26, %v1354_v43 }
 0x8ac   :  { %v1363_v57 = vsel %vm1360_vm1, %v1362_v27, %v1358_v48  ;;  %v791_v27 = vrot.slane %v2788_v31, 2 }
 0x8ad   :  { %v1377_v63 = vsub.f32 1.0, %v1363_v57  ;;  %v1383_v4 = vmul.f32 %v1363_v57, %v2951_v50 }
 0x8e1   :  { %v1428_v38 = vpop.permute.xlu2 %1427 }
 0x8e2   :  { %v1430_v55 = vmul.f32 %v1428_v38, %v1423_v37 }
 0x8e4   :  { %1432 = vrot.lane.b32.xlu1 %v1430_v55, %s2426_s20 }
 0x8f1   :  { %v1368_v53 = vpop.permute.xlu1 %1367 }
 0x8f2   :  { %v1370_v58 = vmul.f32 %v1368_v53, %v1363_v57 }
 0x8f4   :  { %1372 = vrot.lane.b32.xlu0 %v1370_v58, %s2426_s20 }
 0x956   :  { %v1433_v61 = vpop.permute.xlu1 %1432 }
 0x957   :  { %v1435_v62 = vadd.f32 %v1433_v61, %v792_v3 }
 0x959   :  { %2282 = vtanh.f32 %v1435_v62 }
 0x95f   :  { %v2283_v46 = vpop.eup %2282 }
 0x960   :  { %1439 = vrot.lane.b32.xlu0 %v2283_v46, %s2429_s26 }
 0x966   :  { %v1373_v0 = vpop.permute.xlu0 %1372 }
 0x967   :  { %v1375_v45 = vadd.f32 %v1373_v0, %v758_v6 }
 0x969   :  { %2284 = vtanh.f32 %v1375_v45 }
 0x96f   :  { %v2285_v1 = vpop.eup %2284 }
 0x970   :  { %1379 = vrot.lane.b32.xlu2 %v2285_v1, %s2429_s26 }
 0x9ca   :  { %v1380_v2 = vpop.permute.xlu2 %1379 }
 0x9cb   :  { %v1382_v10 = vmul.f32 %v1380_v2, %v1377_v63 }
 0x9cd   :  { %v2987_v5 = vadd.f32 %v1383_v4, %v1382_v10 }
 0x9cf   :  { %1446 = vst [vmem:[#allocation1] ss:$4 sm:$0xff] %v2987_v5  ;;  %v1488_v3 = vpack.c.bf16 %v2987_v5, %v2987_v5  ;;  %v1453_v6 = vrot.slane %v2987_v5, 1  ;;  %v1454_v8 = vrot.slane %v2987_v5, 2  ;;  %v1455_v13 = vrot.slane %v2987_v5, 3 }
 0x9d1   :  { %1490 = vrot.lane.b32.xlu1 %v1488_v3, %s2429_s26  ;;  %v1459_v17 = vsel %vm715_vm6, %v2987_v5, %v1453_v6  ;;  %v1460_v19 = vsel %vm719_vm8, %v1454_v8, %v1455_v13 }
 0x9d2   :  { %v1440_v20 = vpop.permute.xlu0 %1439  ;;  %v3008_v21 = vsel %vm965_vm10, %v1459_v17, %v1460_v19 }
 0x9d3   :  { %v1442_v23 = vmul.f32 %v1440_v20, %v1437_v16 }
 0x9d5   :  { %v3011_v26 = vadd.f32 %v1443_v22, %v1442_v23 }
 0x9d7   :  { %v1548_v29 = vpack.c.bf16 %v3011_v26, %v3011_v26  ;;  %v1474_v49 = vrot.slane %v3011_v26, 1  ;;  %v1475_v42 = vrot.slane %v3011_v26, 2  ;;  %v1476_v36 = vrot.slane %v3011_v26, 3 }
 0x9d9   :  { %1550 = vrot.lane.b32.xlu2 %v1548_v29, %s2429_s26  ;;  %v1477_v60 = vsel %vm959_vm12, %v3011_v26, %v1474_v49  ;;  %v1478_v25 = vsel %vm717_vm7, %v1475_v42, %v1476_v36 }
 0x9da   :  { %v3029_v37 = vsel %vm148_vm0, %v1477_v60, %v1478_v25 }
 0xa33   :  { %v1551_v38 = vpop.permute.xlu2 %1550 }
 0xa34   :  { %2167 = vmatmul.msk.bf16.vlgmr.msrb.gmra.mxu3 %vm3383_vm2, %v1551_v38 }
 0xa43   :  { %v1491_v55 = vpop.permute.xlu1 %1490 }
 0xa44   :  { %2165 = vmatmul.msk.bf16.vlgmr.msra.gmra.mxu2 %vm3384_vm3, %v1491_v55 }
 0xab7   :  { %v1564_v40 = vpop.f32.mrf.mxu3 }
 0xab8   :  { %v1588_v41 = vadd.f32 %v1564_v40, %v2796_v39  ;;  %v1568_v53 = vadd.f32 %v1564_v40, %v791_v27 }
 0xaba   :  { %1590 = vrot.lane.b32.xlu1 %v1588_v41, %s2427_s1  ;;  %v2168_v57 = vmul.f32 -1.442695, %v1568_v53 }
 0xabc   :  { %2286 = vpow2.f32 %v2168_v57 }
 0xabf   :  { %v1566_v43 = vpop.f32.mrf.mxu3 }
 0xac2   :  { %v2287_v58 = vpop.eup %2286 }
 0xac3   :  { %v1572_v62 = vadd.f32 1.0, %v2287_v58 }
 0xac5   :  { %2288 = vrcp.f32 %v1572_v62  ;;  %v1584_v16 = vand.u32 2147483648, %v1572_v62  ;;  %vm1578_vm5 = vweird.f32 %v1572_v62  ;;  %v1582_v17 = vand.u32 2147483647, %v1572_v62 }
 0xac7   :  { %v1504_v44 = vpop.f32.mrf.mxu2  ;;  %v1585_v22 = vor.u32 1.1754944e-38, %v1584_v16  ;;  %vm1583_vm15 = vcmp.eq.f32.partialorder %v1582_v17, 8.507059e+37 }
 0xac8   :  { %v1528_v47 = vadd.f32 %v1504_v44, %v2792_v35  ;;  %v1508_v61 = vadd.f32 %v1504_v44, %v2790_v34 }
 0xaca   :  { %1530 = vrot.lane.b32.xlu0 %v1528_v47, %s2427_s1  ;;  %v2166_v46 = vmul.f32 -1.442695, %v1508_v61 }
 0xacb   :  { %v2289_v0 = vpop.eup %2288 }
 0xacc   :  { %2290 = vpow2.f32 %v2166_v46  ;;  %v1574_v1 = vmul.f32 %v2289_v0, %v1572_v62  ;;  %vm1579_vm4 = vweird.f32 %v2289_v0 }
 0xacd   :  { %vm1580_vm9 = vmor %vm1578_vm5, %vm1579_vm4  ;;  %vm3385_vm4 = vcmask 130048  }
 0xace   :  { %v1575_v2 = vsub.f32 1.0, %v1574_v1  ;;  %vm3386_vm5 = vmmov %vm3385_vm4 }
 0xacf   :  { %v1506_v48 = vpop.f32.mrf.mxu2 }
 0xad0   :  { %v1576_v4 = vmul.f32 %v2289_v0, %v1575_v2 }
 0xad2   :  { %v2291_v45 = vpop.eup %2290  ;;  %v1577_v10 = vadd.f32 %v2289_v0, %v1576_v4 }
 0xad3   :  { %v1512_v63 = vadd.f32 1.0, %v2291_v45 }
 0xad4   :  { %v1581_v19 = vsel %vm1580_vm9, %v2289_v0, %v1577_v10 }
 0xad5   :  { %2292 = vrcp.f32 %v1512_v63  ;;  %v1586_v29 = vsel %vm1583_vm15, %v1585_v22, %v1581_v19  ;;  %v1524_v40 = vand.u32 2147483648, %v1512_v63  ;;  %vm1518_vm1 = vweird.f32 %v1512_v63 }
 0xad6   :  { %v1522_v41 = vand.u32 2147483647, %v1512_v63  ;;  %v1600_v45 = vsub.f32 1.0, %v1586_v29 }
 0xad7   :  { %v1525_v44 = vor.u32 1.1754944e-38, %v1524_v40 }
 0xad8   :  { %vm1523_vm3 = vcmp.eq.f32.partialorder %v1522_v41, 8.507059e+37 }
 0xadb   :  { %v2293_v3 = vpop.eup %2292 }
 0xadc   :  { %v1514_v20 = vmul.f32 %v2293_v3, %v1512_v63  ;;  %vm1519_vm13 = vweird.f32 %v2293_v3  ;;  %v1606_v63 = vmul.f32 %v1586_v29, %v3011_v26 }
 0xadd   :  { %vm1520_vm2 = vmor %vm1518_vm1, %vm1519_vm13 }
 0xade   :  { %v1515_v25 = vsub.f32 1.0, %v1514_v20 }
 0xae0   :  { %v1516_v38 = vmul.f32 %v2293_v3, %v1515_v25 }
 0xae2   :  { %v1517_v55 = vadd.f32 %v2293_v3, %v1516_v38  ;;  %v3068_v38 = vld.sshfl [vmem:[#allocation1] sm:$0xff pattern:$0x73625140] }
 0xae4   :  { %v1521_v43 = vsel %vm1520_vm2, %v2293_v3, %v1517_v55 }
 0xae5   :  { %v1526_v48 = vsel %vm1523_vm3, %v1525_v44, %v1521_v43 }
 0xae6   :  { %v1540_v22 = vsub.f32 1.0, %v1526_v48 }
 0xb2c   :  { %v1591_v23 = vpop.permute.xlu1 %1590 }
 0xb2d   :  { %v1593_v60 = vmul.f32 %v1591_v23, %v1586_v29  ;;  %v1546_v29 = vmul.f32 %v1526_v48, %v2987_v5 }
 0xb2f   :  { %1595 = vrot.lane.b32.xlu0 %v1593_v60, %s2426_s20 }
 0xb3c   :  { %v1531_v47 = vpop.permute.xlu0 %1530 }
 0xb3d   :  { %v1533_v53 = vmul.f32 %v1531_v47, %v1526_v48 }
 0xb3f   :  { %1535 = vrot.lane.b32.xlu2 %v1533_v53, %s2426_s20 }
 0xb99   :  { %v1536_v57 = vpop.permute.xlu2 %1535 }
 0xb9a   :  { %v1538_v58 = vadd.f32 %v1536_v57, %v2790_v34 }
 0xb9c   :  { %2294 = vtanh.f32 %v1538_v58 }
 0xba1   :  { %v1596_v61 = vpop.permute.xlu0 %1595 }
 0xba2   :  { %v2295_v62 = vpop.eup %2294  ;;  %v1598_v46 = vadd.f32 %v1596_v61, %v791_v27 }
 0xba3   :  { %1542 = vrot.lane.b32.xlu1 %v2295_v62, %s2429_s26  ;;  %v1128_v62 = vsel %vm959_vm12, %v2892_v9, %v1125_v14 }
 0xba4   :  { %2296 = vtanh.f32 %v1598_v46  ;;  %v1129_v46 = vsel %vm717_vm7, %v1126_v15, %v1127_v11 }
 0xbaa   :  { %v2297_v0 = vpop.eup %2296 }
 0xbab   :  { %1602 = vrot.lane.b32.xlu2 %v2297_v0, %s2429_s26  ;;  %v1130_v0 = vsel %vm148_vm0, %v1128_v62, %v1129_v46 }
 0xc05   :  { %v1603_v1 = vpop.permute.xlu2 %1602 }
 0xc06   :  { %v1605_v2 = vmul.f32 %v1603_v1, %v1600_v45  ;;  %v1297_v45 = vsel %vm719_vm8, %v1291_v54, %v1292_v56  ;;  %v1135_v1 = vperm.slane %v1130_v0, 0 }
 0xc08   :  { %v3045_v4 = vadd.f32 %v1606_v63, %v1605_v2 }
 0xc0a   :  { %v1711_v10 = vpack.c.bf16 %v3045_v4, %v3045_v4  ;;  %v1637_v3 = vrot.slane %v3045_v4, 1  ;;  %v1638_v27 = vrot.slane %v3045_v4, 2  ;;  %v1639_v16 = vrot.slane %v3045_v4, 3 }
 0xc0c   :  { %1713 = vrot.lane.b32.xlu1 %v1711_v10, %s2429_s26  ;;  %v1643_v17 = vsel %vm715_vm6, %v3045_v4, %v1637_v3  ;;  %v1644_v19 = vsel %vm719_vm8, %v1638_v27, %v1639_v16 }
 0xc0d   :  { %v3063_v20 = vsel %vm965_vm10, %v1643_v17, %v1644_v19 }
 0xc15   :  { %v1543_v23 = vpop.permute.xlu1 %1542 }
 0xc16   :  { %v1545_v60 = vmul.f32 %v1543_v23, %v1540_v22 }
 0xc18   :  { %v3066_v25 = vadd.f32 %v1546_v29, %v1545_v60 }
 0xc1a   :  { %1609 = vst [vmem:[#allocation1] ss:$4 sm:$0xff] %v3066_v25  ;;  %v1651_v55 = vpack.c.bf16 %v3066_v25, %v3066_v25  ;;  %v1616_v40 = vrot.slane %v3066_v25, 1  ;;  %v1617_v41 = vrot.slane %v3066_v25, 2  ;;  %v1618_v43 = vrot.slane %v3066_v25, 3 }
 0xc1c   :  { %1653 = vrot.lane.b32.xlu0 %v1651_v55, %s2429_s26  ;;  %v1619_v44 = vsel %vm959_vm12, %v3066_v25, %v1616_v40  ;;  %v1620_v47 = vsel %vm717_vm7, %v1617_v41, %v1618_v43 }
 0xc1d   :  { %v3087_v48 = vsel %vm148_vm0, %v1619_v44, %v1620_v47 }
 0xc7e   :  { %v1714_v53 = vpop.permute.xlu1 %1713 }
 0xc7f   :  { %2171 = vmatmul.msk.bf16.vlgmr.msrb.gmra.mxu2 %vm3385_vm4, %v1714_v53 }
 0xc8e   :  { %v1654_v57 = vpop.permute.xlu0 %1653 }
 0xc8f   :  { %2169 = vmatmul.msk.bf16.vlgmr.msrb.gmra.mxu1 %vm3386_vm5, %v1654_v57 }
 0xd02   :  { %v1727_v58 = vpop.f32.mrf.mxu2 }
 0xd03   :  { %v1751_v61 = vadd.f32 %v1727_v58, %v2796_v39  ;;  %v1296_v39 = vsel %vm715_vm6, %v2951_v50, %v1290_v51  ;;  %v759_v50 = vrot.slane %v2790_v34, 2  ;;  %v1731_v17 = vadd.f32 %v1727_v58, %v2788_v31 }
 0xd04   :  { %v1298_v9 = vsel %vm965_vm10, %v1296_v39, %v1297_v45 }
 0xd05   :  { %1753 = vrot.lane.b32.xlu1 %v1751_v61, %s2427_s1  ;;  %v1299_v11 = vrot.slane %v1298_v9, 1  ;;  %v2172_v19 = vmul.f32 -1.442695, %v1731_v17  ;;  %v961_v17 = vsel %vm717_vm7, %v957_v24, %v958_v33  ;;  %v1480_v33 = vsel %vm715_vm6, %v3011_v26, %v1474_v49 }
 0xd06   :  { %v1456_v49 = vsel %vm959_vm12, %v2987_v5, %v1453_v6 }
 0xd07   :  { %v1301_v2 = vperm.slane %v1299_v11, 0 }
 0xd0a   :  { %v1729_v14 = vpop.f32.mrf.mxu2 }
 0xd0c   :  { %v1667_v63 = vpop.f32.mrf.mxu1 }
 0xd0d   :  { %v1691_v15 = vadd.f32 %v1667_v63, %v2792_v35  ;;  %1137 = vrot.lane.b32.xlu1 %v1135_v1, %s2429_s26  ;;  %v1671_v54 = vadd.f32 %v1667_v63, %v759_v50 }
 0xd0f   :  { %1693 = vrot.lane.b32.xlu2 %v1691_v15, %s2427_s1  ;;  %v2170_v56 = vmul.f32 -1.442695, %v1671_v54 }
 0xd11   :  { %2298 = vpow2.f32 %v2170_v56 }
 0xd14   :  { %v1669_v51 = vpop.f32.mrf.mxu1 }
 0xd15   :  { %1304 = vrot.lane.b32.xlu1 %v1301_v2, %s2429_s26 }
 0xd17   :  { %v2299_v10 = vpop.eup %2298 }
 0xd18   :  { %v1675_v35 = vadd.f32 1.0, %v2299_v10  ;;  %v960_v10 = vsel %vm959_vm12, %v2814_v28, %v956_v30 }
 0xd19   :  { %v962_v30 = vsel %vm148_vm0, %v960_v10, %v961_v17 }
 0xd1a   :  { %2300 = vrcp.f32 %v1675_v35  ;;  %v1687_v57 = vand.u32 2147483648, %v1675_v35  ;;  %vm1681_vm15 = vweird.f32 %v1675_v35  ;;  %v1685_v61 = vand.u32 2147483647, %v1675_v35 }
 0xd1b   :  { %2302 = vpow2.f32 %v2172_v19  ;;  %v1641_v19 = vsel %vm717_vm7, %v1638_v27, %v1639_v16  ;;  %v968_v24 = vperm.slane %v962_v30, 0  ;;  %v1134_v16 = vrot.slane %v2913_v18, 1 }
 0xd1c   :  { %v1688_v46 = vor.u32 1.1754944e-38, %v1687_v57  ;;  %vm1686_vm1 = vcmp.eq.f32.partialorder %v1685_v61, 8.507059e+37  ;;  %v1457_v18 = vsel %vm717_vm7, %v1454_v8, %v1455_v13 }
 0xd20   :  { %v2301_v22 = vpop.eup %2300 }
 0xd21   :  { %v2303_v23 = vpop.eup %2302  ;;  %v1677_v29 = vmul.f32 %v2301_v22, %v1675_v35  ;;  %vm1682_vm9 = vweird.f32 %v2301_v22  ;;  %v1640_v35 = vsel %vm959_vm12, %v3045_v4, %v1637_v3  ;;  %v1481_v3 = vsel %vm719_vm8, %v1475_v42, %v1476_v36 }
 0xd22   :  { %v1735_v60 = vadd.f32 1.0, %v2303_v23  ;;  %vm1683_vm13 = vmor %vm1681_vm15, %vm1682_vm9  ;;  %vm976_vm9 = vcmask 122880   ;;  %v1642_v28 = vsel %vm148_vm0, %v1640_v35, %v1641_v19  ;;  %v1482_v27 = vsel %vm965_vm10, %v1480_v33, %v1481_v3 }
 0xd23   :  { %v1678_v55 = vsub.f32 1.0, %v1677_v29  ;;  %v1483_v23 = vrot.slane %v1482_v27, 1  ;;  %v1458_v42 = vsel %vm148_vm0, %v1456_v49, %v1457_v18  ;;  %v1622_v36 = vsel %vm715_vm6, %v3066_v25, %v1616_v40 }
 0xd24   :  { %2304 = vrcp.f32 %v1735_v60  ;;  %v1747_v9 = vand.u32 2147483648, %v1735_v60  ;;  %vm1741_vm3 = vweird.f32 %v1735_v60  ;;  %v1745_v15 = vand.u32 2147483647, %v1735_v60 }
 0xd25   :  { %v1679_v44 = vmul.f32 %v2301_v22, %v1678_v55  ;;  %v1623_v55 = vsel %vm719_vm8, %v1617_v41, %v1618_v43  ;;  %v1463_v6 = vperm.slane %v1458_v42, 0  ;;  %v1646_v43 = vrot.slane %v3063_v20, 1 }
 0xd26   :  { %v1748_v2 = vor.u32 1.1754944e-38, %v1747_v9  ;;  %vm1746_vm5 = vcmp.eq.f32.partialorder %v1745_v15, 8.507059e+37 }
 0xd27   :  { %v1680_v53 = vadd.f32 %v2301_v22, %v1679_v44  ;;  %v1624_v44 = vsel %vm965_vm10, %v1622_v36, %v1623_v55 }
 0xd28   :  { %v1625_v5 = vrot.slane %v1624_v44, 1  ;;  %v1842_v44 = vld [vmem:[%s3368_s8 + $0x10] sm:$0xff] }
 0xd29   :  { %v1684_v58 = vsel %vm1683_vm13, %v2301_v22, %v1680_v53 }
 0xd2a   :  { %v2305_v47 = vpop.eup %2304  ;;  %v3121_v39 = vsel %vm1686_vm1, %v1688_v46, %v1684_v58  ;;  %v1627_v8 = vperm.slane %v1625_v5, 0  ;;  %v967_v58 = vrot.slane %v2833_v32, 1  ;;  %v1843_v5 = vld [vmem:[%s3368_s8 + $0x18] sm:$0xff] }
 0xd2b   :  { %v1737_v62 = vmul.f32 %v2305_v47, %v1735_v60  ;;  %vm1742_vm2 = vweird.f32 %v2305_v47  ;;  %v1136_v60 = vperm.slane %v1134_v16, 0  ;;  %v1709_v10 = vmul.f32 %v3121_v39, %v3066_v25 }
 0xd2c   :  { %vm1743_vm4 = vmor %vm1741_vm3, %vm1742_vm2  ;;  %v969_v34 = vperm.slane %v967_v58, 0 }
 0xd2d   :  { %v1738_v0 = vsub.f32 1.0, %v1737_v62  ;;  %v1626_v62 = vperm.slane %v3087_v48, 0  ;;  %v1300_v48 = vperm.slane %v2972_v59, 0 }
 0xd2f   :  { %v1739_v1 = vmul.f32 %v2305_v47, %v1738_v0 }
 0xd31   :  { %v1740_v63 = vadd.f32 %v2305_v47, %v1739_v1 }
 0xd33   :  { %v1744_v11 = vsel %vm1743_vm4, %v2305_v47, %v1740_v63 }
 0xd34   :  { %v3125_v54 = vsel %vm1746_vm5, %v1748_v2, %v1744_v11 }
 0xd35   :  { %v1763_v32 = vsub.f32 1.0, %v3125_v54 }
 0xd69   :  { %v1694_v45 = vpop.permute.xlu2 %1693 }
 0xd6a   :  { %v1696_v14 = vmul.f32 %v1694_v45, %v3121_v39 }
 0xd6c   :  { %1698 = vrot.lane.b32.xlu0 %v1696_v14, %s2426_s20  ;;  %v1769_v14 = vmul.f32 %v3125_v54, %v3045_v4 }
 0xd77   :  { %v1754_v51 = vpop.permute.xlu1 %1753 }
 0xd78   :  { %v1756_v56 = vmul.f32 %v1754_v51, %v3125_v54  ;;  %v1703_v54 = vsub.f32 1.0, %v3121_v39 }
 0xd7a   :  { %1758 = vrot.lane.b32.xlu2 %v1756_v56, %s2426_s20 }
 0xd7f   :  { %v1138_v22 = vpop.permute.xlu1 %1137 }
 0xd80   :  { %1143 = vst.msk [vmem:[#allocation2 + $0x1] sm:$0x1] %vm976_vm9, %v1138_v22  ;;  %v3227_v22 = vld.sshfl [vmem:[#allocation1] sm:$0xff pattern:$0x73625140] }
 0xd81   :  { %1649 = vst.msk [vmem:[#allocation2 + $0x1] sm:$0x1] %vm992_vm14, %v1642_v28 }
 0xd82   :  { %970 = vrot.lane.b32.xlu2 %v968_v24, %s2429_s26 }
 0xd87   :  { %v1305_v29 = vpop.permute.xlu1 %1304 }
 0xd88   :  { %1309 = vst.msk [vmem:[#allocation2 + $0xa] sm:$0x1] %vm976_vm9, %v1305_v29 }
 0xd89   :  { %1487 = vst.msk [vmem:[#allocation2 + $0xa] sm:$0x1] %vm992_vm14, %v1483_v23 }
 0xd8a   :  { %1139 = vrot.lane.b32.xlu2 %v1136_v60, %s2429_s26 }
 0xd92   :  { %1465 = vrot.lane.b32.xlu2 %v1463_v6, %s2429_s26 }
 0xd9a   :  { %1630 = vrot.lane.b32.xlu2 %v1627_v8, %s2429_s26  ;;  %v1845_v8 = vpack.c.bf16 %v1843_v5, %v1842_v44 }
 0xd9c   :  { %1875 = vmatpush.bf16.msra.mxu3 %v1845_v8  ;;  %v2430_v8 = vmov 0  }
 0xd9d   :  { %2192 = vset.pattern.permute.xlu0 %v2430_v8  ;;  %2191 = vset.pattern.permute.xlu2 %v2430_v8 }
 0xd9e   :  { %2193 = vset.pattern.permute.xlu1 %v2430_v8 }
 0xdd4   :  { %v1759_v13 = vpop.permute.xlu2 %1758 }
 0xdd5   :  { %v1761_v47 = vadd.f32 %v1759_v13, %v2788_v31  ;;  %v1840_v13 = vld [vmem:[%s3368_s8] sm:$0xff] }
 0xdd7   :  { %2306 = vtanh.f32 %v1761_v47 }
 0xddc   :  { %v971_v40 = vpop.permute.xlu2 %970 }
 0xddd   :  { %v2307_v53 = vpop.eup %2306  ;;  %977 = vst.msk [vmem:[#allocation2] sm:$0x1] %vm976_vm9, %v971_v40 }
 0xdde   :  { %v1699_v57 = vpop.permute.xlu0 %1698  ;;  %1765 = vrot.lane.b32.xlu1 %v2307_v53, %s2429_s26 }
 0xddf   :  { %v1701_v41 = vadd.f32 %v1699_v57, %v759_v50  ;;  %v1462_v50 = vrot.slane %v3008_v21, 1 }
 0xde1   :  { %2308 = vtanh.f32 %v1701_v41  ;;  %v1464_v0 = vperm.slane %v1462_v50, 0 }
 0xde4   :  { %v1140_v61 = vpop.permute.xlu2 %1139 }
 0xde5   :  { %1144 = vst.msk [vmem:[#allocation2 + $0x9] sm:$0x1] %vm976_vm9, %v1140_v61 }
 0xde6   :  { %1650 = vst.msk [vmem:[#allocation2 + $0x9] sm:$0x1] %vm992_vm14, %v1646_v43  ;;  %1628 = vrot.lane.b32.xlu1 %v1626_v62, %s2429_s26 }
 0xde7   :  { %v2309_v31 = vpop.eup %2308 }
 0xde8   :  { %1705 = vrot.lane.b32.xlu0 %v2309_v31, %s2429_s26 }
 0xdec   :  { %v1466_v46 = vpop.permute.xlu2 %1465 }
 0xded   :  { %1471 = vst.msk [vmem:[#allocation2 + $0x3] sm:$0x1] %vm976_vm9, %v1466_v46 }
 0xdf0   :  { %972 = vrot.lane.b32.xlu0 %v969_v34, %s2429_s26 }
 0xdf4   :  { %v1631_v20 = vpop.permute.xlu2 %1630 }
 0xdf5   :  { %1635 = vst.msk [vmem:[#allocation2 + $0xc] sm:$0x1] %vm976_vm9, %v1631_v20 }
 0xdf8   :  { %1302 = vrot.lane.b32.xlu0 %v1300_v48, %s2429_s26 }
 0xe00   :  { %1467 = vrot.lane.b32.xlu0 %v1464_v0, %s2429_s26 }
 0xe50   :  { %v1766_v45 = vpop.permute.xlu1 %1765 }
 0xe51   :  { %v1768_v1 = vmul.f32 %v1766_v45, %v1763_v32 }
 0xe53   :  { %v3210_v63 = vadd.f32 %v1769_v14, %v1768_v1 }
 0xe55   :  { %v1800_v9 = vrot.slane %v3210_v63, 1  ;;  %v1801_v59 = vrot.slane %v3210_v63, 2  ;;  %v1802_v15 = vrot.slane %v3210_v63, 3 }
 0xe57   :  { %v1803_v21 = vsel %vm959_vm12, %v3210_v63, %v1800_v9  ;;  %v1804_v11 = vsel %vm717_vm7, %v1801_v59, %v1802_v15  ;;  %v1806_v35 = vsel %vm715_vm6, %v3210_v63, %v1800_v9  ;;  %v1807_v19 = vsel %vm719_vm8, %v1801_v59, %v1802_v15  ;;  %v2199_v59 = vld [vmem:[%s3369_s9] ss:$0 sm:$0xff] }
 0xe58   :  { %v1629_v2 = vpop.permute.xlu1 %1628  ;;  %v1805_v51 = vsel %vm148_vm0, %v1803_v21, %v1804_v11  ;;  %v1808_v28 = vsel %vm965_vm10, %v1806_v35, %v1807_v19  ;;  %v2200_v11 = vld [vmem:[%s3370_s10] ss:$0 sm:$0xff] }
 0xe59   :  { %1634 = vst.msk [vmem:[#allocation2 + $0x4] sm:$0x1] %vm976_vm9, %v1629_v2  ;;  %v1809_v29 = vrot.slane %v1808_v28, 1 }
 0xe5a   :  { %v1706_v56 = vpop.permute.xlu0 %1705  ;;  %1812 = vst.msk [vmem:[#allocation2] sm:$0x1] %vm992_vm14, %v1805_v51  ;;  %v1899_v51 = vrot.slane %v2200_v11, 2 }
 0xe5b   :  { %v1708_v17 = vmul.f32 %v1706_v56, %v1703_v54  ;;  %v1900_v54 = vrot.slane %v2200_v11, 4 }
 0xe5d   :  { %v1710_v30 = vadd.f32 %v1709_v10, %v1708_v17 }
 0xe5f   :  { %1772 = vst [vmem:[#allocation1] ss:$4 sm:$0xff] %v1710_v30  ;;  %v1779_v24 = vrot.slane %v1710_v30, 1  ;;  %v1780_v33 = vrot.slane %v1710_v30, 2  ;;  %v1781_v3 = vrot.slane %v1710_v30, 3 }
 0xe61   :  { %v1782_v27 = vsel %vm959_vm12, %v1710_v30, %v1779_v24  ;;  %v1783_v16 = vsel %vm717_vm7, %v1780_v33, %v1781_v3  ;;  %v1785_v25 = vsel %vm715_vm6, %v1710_v30, %v1779_v24  ;;  %v1786_v39 = vsel %vm719_vm8, %v1780_v33, %v1781_v3 }
 0xe62   :  { %v973_v23 = vpop.permute.xlu0 %972  ;;  %v1784_v60 = vsel %vm148_vm0, %v1782_v27, %v1783_v16  ;;  %v1787_v49 = vsel %vm965_vm10, %v1785_v25, %v1786_v39  ;;  %vm1866_vm0 = vcmask 261120   ;;  %vm1945_vm8 = vcmask 41984  }
 0xe63   :  { %978 = vst.msk [vmem:[#allocation2 + $0x8] sm:$0x1] %vm976_vm9, %v973_v23  ;;  %v1789_v18 = vperm.slane %v1784_v60, 0  ;;  %v1788_v42 = vrot.slane %v1787_v49, 1  ;;  %v1939_v49 = vlaneseq  ;;  %vm951_vm10 = vcmask 123904  }
 0xe64   :  { %1813 = vst.msk [vmem:[#allocation2 + $0x8] sm:$0x1] %vm992_vm14, %v1809_v29 }
 0xe65   :  { %1791 = vrot.lane.b32.xlu0 %v1789_v18, %s2429_s26  ;;  %v1790_v36 = vperm.slane %v1788_v42, 0  ;;  %v3283_v18 = vand.u32 127, %v1939_v49 }
 0xe66   :  { %v3266_v31 = vld.sshfl [vmem:[#allocation1] sm:$0xff pattern:$0x73625140] }
 0xe67   :  { %1793 = vrot.lane.b32.xlu1 %v1790_v36, %s2429_s26 }
 0xe6a   :  { %v1303_v55 = vpop.permute.xlu0 %1302 }
 0xe6b   :  { %1308 = vst.msk [vmem:[#allocation2 + $0x2] sm:$0x1] %vm976_vm9, %v1303_v55 }
 0xe6c   :  { %1486 = vst.msk [vmem:[#allocation2 + $0x2] sm:$0x1] %vm992_vm14, %v3029_v37  ;;  %v1841_v37 = vld [vmem:[%s3368_s8 + $0x8] sm:$0xff] }
 0xe6d   :  { %v1844_v47 = vpack.c.bf16 %v1841_v37, %v1840_v13 }
 0xe6f   :  { %1876 = vmatpush.bf16.msra.mxu3 %v1844_v47 }
 0xe72   :  { %v1468_v6 = vpop.permute.xlu0 %1467 }
 0xe73   :  { %1472 = vst.msk [vmem:[#allocation2 + $0xb] sm:$0x1] %vm976_vm9, %v1468_v6 }
 0xed7   :  { %v1792_v40 = vpop.permute.xlu0 %1791 }
 0xed8   :  { %1797 = vst.msk [vmem:[#allocation2 + $0x5] sm:$0x1] %vm976_vm9, %v1792_v40 }
 0xed9   :  { %v1794_v53 = vpop.permute.xlu1 %1793 }
 0xeda   :  { %1798 = vst.msk [vmem:[#allocation2 + $0xd] sm:$0x1] %vm976_vm9, %v1794_v53 }
 0xedf   :  { %v3258_v57 = vld [vmem:[#allocation2] sm:$0x3f] }
 0xee0   :  { %v1816_v41 = vpack.c.bf16 %v3258_v57, %v3258_v57 }
 0xee1   :  { %v3262_v43 = vld [vmem:[#allocation2 + $0x8] sm:$0x3f] }
 0xee2   :  { %v1820_v61 = vrot.slane %v1816_v41, 3  ;;  %v1817_v62 = vpack.c.bf16 %v3262_v43, %v3262_v43 }
 0xee4   :  { %v1824_v58 = vsel %vm959_vm12, %v1816_v41, %v1820_v61  ;;  %v1825_v46 = vsel %vm715_vm6, %v1816_v41, %v1820_v61  ;;  %v1828_v34 = vsel %vm717_vm7, %v1816_v41, %v1820_v61  ;;  %v1821_v20 = vrot.slane %v1817_v62, 3 }
 0xee5   :  { %v1827_v48 = vrot.slane %v1825_v46, 1  ;;  %v1830_v50 = vrot.slane %v1828_v34, 2  ;;  %1850 = vst [vmem:[#allocation1] ss:$9 sm:$0xff] %v1824_v58 }
 0xee6   :  { %v1833_v0 = vsel %vm959_vm12, %v1817_v62, %v1821_v20  ;;  %v1834_v32 = vsel %vm715_vm6, %v1817_v62, %v1821_v20  ;;  %v1837_v45 = vsel %vm717_vm7, %v1817_v62, %v1821_v20  ;;  %vm1930_vm7 = vcmask 259072  }
 0xee7   :  { %1853 = vst [vmem:[#allocation1 + $0x1] ss:$9 sm:$0xff] %v1827_v48  ;;  %v1836_v14 = vrot.slane %v1834_v32, 1  ;;  %v1839_v1 = vrot.slane %v1837_v45, 2  ;;  %vm2054_vm12 = vcmask 33792  }
 0xee8   :  { %1856 = vst [vmem:[#allocation1 + $0x2] ss:$9 sm:$0xff] %v1830_v50 }
 0xee9   :  { %1858 = vst [vmem:[#allocation1 + $0x3] ss:$9 sm:$0xff] %v1833_v0 }
 0xeea   :  { %1861 = vst [vmem:[#allocation1 + $0x4] ss:$9 sm:$0xff] %v1836_v14 }
 0xeeb   :  { %1864 = vst [vmem:[#allocation1 + $0x5] ss:$9 sm:$0xff] %v1839_v1 }
 0xef2   :  { %v1865_v9 = vld [vmem:[#allocation1] sm:$0xff] }
 0xef3   :  { %2173 = vmatmul.msk.bf16.vlgmr.msra.gmra.mxu3 %vm1866_vm0, %v1865_v9 }
 0xf76   :  { %v1878_v15 = vpop.f32.mrf.mxu3 }
 0xf77   :  { %v1879_v21 = vadd.f32 %v2199_v59, %v1878_v15 }
 0xf79   :  { %2310 = vtanh.f32 %v1879_v21 }
 0xf7e   :  { %v1880_v2 = vpop.f32.mrf.mxu3 }
 0xf7f   :  { %v2311_v56 = vpop.eup %2310  ;;  %v1881_v10 = vadd.f32 %v2199_v59, %v1880_v2  ;;  %v2025_v59 = vld [vmem:[%s3371_s11 + $0x18] sm:$0xff]  ;;  %v2023_v2 = vld [vmem:[%s3371_s11 + $0x8] sm:$0xff] }
 0xf80   :  { %v1887_v17 = vrot.slane %v2311_v56, 2  ;;  %v1888_v35 = vrot.slane %v2311_v56, 4  ;;  %v1889_v19 = vrot.slane %v2311_v56, 6  ;;  %v1903_v30 = vmul.f32 %v2311_v56, %v2200_v11 }
 0xf81   :  { %2312 = vtanh.f32 %v1881_v10 }
 0xf82   :  { %v1904_v28 = vmul.f32 %v1899_v51, %v1887_v17  ;;  %v1905_v24 = vmul.f32 %v1900_v54, %v1888_v35  ;;  %v1906_v33 = vmul.f32 %v2200_v11, %v1889_v19  ;;  %1915 = vst [vmem:[#allocation1] ss:$4 sm:$0xff] %v1903_v30  ;;  %v2022_v11 = vld [vmem:[%s3371_s11] sm:$0xff] }
 0xf84   :  { %1917 = vst [vmem:[#allocation1 + $0x1] ss:$4 sm:$0xff] %v1904_v28 }
 0xf85   :  { %1919 = vst [vmem:[#allocation1 + $0x2] ss:$4 sm:$0xff] %v1905_v24 }
 0xf86   :  { %1922 = vst [vmem:[#allocation1 + $0x20] ss:$4 sm:$0xff] %v1906_v33 }
 0xf87   :  { %v2313_v3 = vpop.eup %2312 }
 0xf88   :  { %v1890_v27 = vrot.slane %v2313_v3, 2  ;;  %v1907_v16 = vmul.f32 %v2313_v3, %v1899_v51 }
 0xf8a   :  { %v1908_v25 = vmul.f32 %v1900_v54, %v1890_v27  ;;  %1924 = vst [vmem:[#allocation1 + $0x21] ss:$4 sm:$0xff] %v1907_v16  ;;  %v2026_v54 = vpack.c.bf16 %v2023_v2, %v2022_v11 }
 0xf8c   :  { %1926 = vst [vmem:[#allocation1 + $0x22] ss:$4 sm:$0xff] %v1908_v25  ;;  %v1920_v39 = vld.sshfl [vmem:[#allocation1] sm:$0xff pattern:$0x73625140] }
 0xf8d   :  { %v1931_v23 = vsel %vm1930_vm7, %v1920_v39, 0.0 }
 0xf8e   :  { %1932 = vadd.xlane.f32.xlu2 %v1931_v23 }
 0xf93   :  { %v1927_v29 = vld.sshfl [vmem:[#allocation1 + $0x20] sm:$0xff pattern:$0x73625140] }
 0xf94   :  { %v1934_v60 = vsel %vm1930_vm7, %v1927_v29, 0.0 }
 0xf95   :  { %1935 = vadd.xlane.f32.xlu0 %v1934_v60 }
0x1001   :  { %v1933_v42 = vpop.xlane.xlu2 %1932 }
0x1002   :  { %v1941_v55 = vperm.slane %v1933_v42, %v3283_v18 }
0x1008   :  { %v1936_v36 = vpop.xlane.xlu0 %1935 }
0x1009   :  { %v1942_v6 = vperm.slane %v1936_v36, %v3283_v18 }
0x100b   :  { %v1943_v44 = vsel %vm715_vm6, %v1942_v6, %v1941_v55 }
0x100c   :  { %v1946_v5 = vsel %vm1945_vm8, %v1943_v44, -inf  ;;  %v2201_v44 = vld [vmem:[%s3372_s12] ss:$0 sm:$0xff]  ;;  %s2432_s12 = smov [#allocation3]  }
0x100d   :  { %1947 = vmax.xlane.f32.xlu1 %v1946_v5  ;;  %s2071_s30 = sshll.u32 %s2432_s12, 4  ;;  %s2072_s30 = int_to_ptr.vmem [resolvable:$true] %s2071_s30 }
0x1080   :  { %v1948_v13 = vpop.xlane.xlu1 %1947 }
0x1081   :  { %v1950_v37 = vperm.slane %v1948_v13, 0  ;;  %v1951_v47 = vperm.slane %v1948_v13, 1 }
0x1083   :  { %v1954_v40 = vsub.f32 %v1933_v42, %v1950_v37  ;;  %v1955_v53 = vsub.f32 %v1936_v36, %v1951_v47 }
0x1085   :  { %v1956_v41 = vmul.f32 1.442695, %v1954_v40  ;;  %v1958_v61 = vmul.f32 1.442695, %v1955_v53 }
0x1087   :  { %2314 = vpow2.f32 %v1956_v41 }
0x1088   :  { %2316 = vpow2.f32 %v1958_v61 }
0x108d   :  { %v2315_v62 = vpop.eup %2314 }
0x108e   :  { %v2317_v58 = vpop.eup %2316  ;;  %1963 = vperm.xlu2 %2191, %v2315_v62  }
0x108f   :  { %1966 = vperm.xlu0 %2192, %v2317_v58  }
0x1097   :  { %948 = vrot.lane.b32.xlu0 %v2894_v12, %s2429_s26 }
0x109f   :  { %1118 = vrot.lane.b32.xlu0 %v2953_v52, %s2429_s26 }
0x10a7   :  { %1283 = vrot.lane.b32.xlu0 %v2989_v7, %s2429_s26 }
0x10af   :  { %1448 = vrot.lane.b32.xlu0 %v3068_v38, %s2429_s26 }
0x10b7   :  { %1774 = vrot.lane.b32.xlu0 %v3266_v31, %s2429_s26 }
0x10e8   :  { %v1964_v46 = vpop.permute.xlu2 %1963 }
0x10e9   :  { %v1968_v20 = vperm.slane %v1964_v46, %v3283_v18 }
0x1101   :  { %v1967_v34 = vpop.permute.xlu0 %1966 }
0x1102   :  { %v1969_v48 = vperm.slane %v1967_v34, %v3283_v18 }
0x1104   :  { %v1970_v12 = vsel %vm715_vm6, %v1969_v48, %v1968_v20 }
0x1105   :  { %v1972_v50 = vsel %vm1945_vm8, %v1970_v12, 0.0 }
0x1106   :  { %1973 = vadd.xlane.f32.xlu1 %v1972_v50 }
0x1109   :  { %v949_v52 = vpop.permute.xlu0 %948 }
0x110a   :  { %952 = vst.msk [vmem:[#allocation3] sm:$0x3] %vm951_vm10, %v949_v52 }
0x110b   :  { %1778 = vst.msk [vmem:[#allocation3] sm:$0x3] %vm954_vm11, %v3210_v63 }
0x1111   :  { %v1119_v7 = vpop.permute.xlu0 %1118 }
0x1112   :  { %1122 = vst.msk [vmem:[#allocation3 + $0x2] sm:$0x3] %vm951_vm10, %v1119_v7 }
0x1113   :  { %1615 = vst.msk [vmem:[#allocation3 + $0x2] sm:$0x3] %vm954_vm11, %v3045_v4 }
0x1119   :  { %v1284_v38 = vpop.permute.xlu0 %1283 }
0x111a   :  { %1287 = vst.msk [vmem:[#allocation3 + $0x4] sm:$0x3] %vm951_vm10, %v1284_v38 }
0x111b   :  { %1452 = vst.msk [vmem:[#allocation3 + $0x4] sm:$0x3] %vm954_vm11, %v3011_v26  ;;  %v2024_v26 = vld [vmem:[%s3371_s11 + $0x10] sm:$0xff]  ;;  %vm2018_vm11 = vcmask 254976  }
0x111c   :  { %v2027_v21 = vpack.c.bf16 %v2025_v59, %v2024_v26 }
0x111e   :  { %2047 = vmatpush.bf16.msra.mxu1 %v2027_v21 }
0x1121   :  { %v1449_v31 = vpop.permute.xlu0 %1448 }
0x1122   :  { %1451 = vst.msk [vmem:[#allocation3 + $0x6] sm:$0x3] %vm951_vm10, %v1449_v31  ;;  %2048 = vmatpush.bf16.msra.mxu1 %v2026_v54 }
0x1129   :  { %v1775_v0 = vpop.permute.xlu0 %1774 }
0x112a   :  { %1777 = vst.msk [vmem:[#allocation3 + $0xa] sm:$0x3] %vm951_vm10, %v1775_v0 }
0x1179   :  { %v1974_v32 = vpop.xlane.xlu1 %1973 }
0x117a   :  { %2318 = vrcp.f32 %v1974_v32 }
0x1180   :  { %v2319_v63 = vpop.eup %2318 }
0x1181   :  { %v1978_v45 = vperm.slane %v2319_v63, 1  ;;  %v1977_v14 = vperm.slane %v2319_v63, 0 }
0x1183   :  { %v1982_v1 = vmul.f32 %v2317_v58, %v1978_v45  ;;  %v1981_v9 = vmul.f32 %v2315_v62, %v1977_v14 }
0x1185   :  { %1989 = vperm.xlu2 %2191, %v1982_v1   ;;  %1986 = vperm.xlu1 %2193, %v1981_v9  }
0x11df   :  { %v1990_v4 = vpop.permute.xlu2 %1989 }
0x11e0   :  { %v1999_v15 = vmul.f32 %v1990_v4, %v3262_v43  ;;  %v1992_v43 = vperm.slane %v1990_v4, %v3283_v18 }
0x11e2   :  { %v2007_v51 = vsel %vm1930_vm7, %v1999_v15, 0.0 }
0x11e3   :  { %v2008_v56 = vrot.slane %v2007_v51, 4 }
0x11e5   :  { %v2009_v10 = vadd.f32 %v2008_v56, %v2007_v51 }
0x11e7   :  { %v2010_v17 = vrot.slane %v2009_v10, 2 }
0x11e9   :  { %v2011_v28 = vadd.f32 %v2010_v17, %v2009_v10 }
0x11eb   :  { %v2012_v27 = vrot.slane %v2011_v28, 1 }
0x11ed   :  { %v2013_v39 = vadd.f32 %v2012_v27, %v2011_v28 }
0x11ef   :  { %v2021_v60 = vpack.c.bf16 %v2013_v39, %v2013_v39 }
0x11f1   :  { %v2035_v42 = vunpack.c.l.b16 %v2021_v60 }
0x11f7   :  { %v1987_v35 = vpop.permute.xlu1 %1986 }
0x11f8   :  { %v1991_v19 = vperm.slane %v1987_v35, %v3283_v18  ;;  %v1998_v30 = vmul.f32 %v1987_v35, %v3258_v57 }
0x11fa   :  { %v2000_v24 = vsel %vm1930_vm7, %v1998_v30, 0.0  ;;  %v1993_v33 = vsel %vm715_vm6, %v1992_v43, %v1991_v19 }
0x11fb   :  { %v2001_v3 = vrot.slane %v2000_v24, 4  ;;  %1995 = vst.msk [vmem:[#allocation5] sm:$0x3] %vm1945_vm8, %v1993_v33 }
0x11fc   :  { %2090 = dma.vmem_to_hbm [thread:$0]  %s2086_s29, 32, %s2088_s27, [#allocation6]  }
0x11fd   :  { %v2002_v16 = vadd.f32 %v2001_v3, %v2000_v24 }
0x11ff   :  { %v2003_v25 = vrot.slane %v2002_v16, 2 }
0x1201   :  { %v2004_v23 = vadd.f32 %v2003_v25, %v2002_v16 }
0x1203   :  { %v2005_v29 = vrot.slane %v2004_v23, 1 }
0x1205   :  { %v2006_v49 = vadd.f32 %v2005_v29, %v2004_v23 }
0x1207   :  { %v2020_v18 = vpack.c.bf16 %v2006_v49, %v2006_v49  ;;  %v2016_v57 = vsel %vm715_vm6, %v2013_v39, %v2006_v49 }
0x1208   :  { %2019 = vst.msk [vmem:[#allocation7] sm:$0x3] %vm2018_vm11, %v2016_v57 }
0x1209   :  { %v2034_v36 = vunpack.c.l.b16 %v2020_v18 }
0x120b   :  { %v2036_v55 = vsel %vm715_vm6, %v2035_v42, %v2034_v36 }
0x120c   :  { %v2037_v6 = vpack.c.b16 %v2036_v55, %v2036_v55 }
0x120e   :  { %2174 = vmatmul.msk.bf16.vlgmr.msra.gmra.mxu1 %vm1866_vm0, %v2037_v6 }
0x128b   :  { %v2050_v5 = vpop.f32.mrf.mxu1 }
0x128c   :  { %v2051_v8 = vadd.f32 %v2201_v44, %v2050_v5 }
0x128e   :  { %v2055_v13 = vsel %vm2054_vm12, %v2051_v8, -inf }
0x128f   :  { %2056 = vmax.xlane.f32.xlu2 %v2055_v13 }
0x1293   :  { %v2052_v37 = vpop.f32.mrf.mxu1 }
0x12a7   :  { %1611 = vrot.lane.b32.xlu2 %v3227_v22, %s2429_s26  ;;  %s2433_s26 = smov [#allocation7]  }
0x12a8   :  { %s2096_s19 = sshll.u32 %s2433_s26, 4  ;;  %s2097_s19 = int_to_ptr.vmem [resolvable:$true] %s2096_s19 }
0x12a9   :  { %2101 = dma.vmem_to_hbm [thread:$0]  %s2097_s19, 32, %s2099_s5, [#allocation6]  }
0x1302   :  { %v2057_v47 = vpop.xlane.xlu2 %2056 }
0x1303   :  { %v2058_v40 = vsub.f32 %v2051_v8, %v2057_v47 }
0x1305   :  { %v2059_v53 = vmul.f32 1.442695, %v2058_v40 }
0x1307   :  { %2320 = vpow2.f32 %v2059_v53 }
0x130a   :  { %v1612_v22 = vpop.permute.xlu2 %1611 }
0x130b   :  { %1614 = vst.msk [vmem:[#allocation3 + $0x8] sm:$0x3] %vm951_vm10, %v1612_v22 }
0x130c   :  { %2079 = dma.vmem_to_hbm [thread:$0]  %s2072_s30, 192, %s2074_s17, [#allocation4], %s2426_s20, %s2426_s20, %s2434_s21  }
0x130d   :  { %v2321_v41 = vpop.eup %2320 }
0x130e   :  { %v2061_v61 = vsel %vm2054_vm12, %v2321_v41, 0.0 }
0x130f   :  { %2062 = vadd.xlane.f32.xlu1 %v2061_v61 }
0x1382   :  { %v2063_v62 = vpop.xlane.xlu1 %2062 }
0x1383   :  { %2322 = vrcp.f32 %v2063_v62 }
0x1389   :  { %v2323_v58 = vpop.eup %2322 }
0x138a   :  { %v2065_v46 = vmul.f32 %v2323_v58, %v2321_v41 }
0x138c   :  { %2066 = vst.msk [vmem:[#allocation8] sm:$0x3] %vm2054_vm12, %v2065_v46 }
0x138d   :  { %2112 = dma.vmem_to_hbm [thread:$0]  %s2108_s18, 32, %s2110_s15, [#allocation9]  }
0x138e   :  { %2420 = dma.done.wait [#allocation4], 192  }
0x138f   :  { %2421 = vsyncadd [#allocation4], 4294967104 }
0x1390   :  { %2422 = dma.done.wait [#allocation6], 64  }
0x1391   :  { %2423 = vsyncadd [#allocation6], 4294967232 }
0x1392   :  { %2424 = dma.done.wait [#allocation9], 32  }
0x1393   :  { %2425 = vsyncadd [#allocation9], 4294967264 }
0x1394   :  { %2129 = vsyncpa [#allocation4], 1 }
0x1395   :  { %2130 = vsyncpa [#allocation6], 1 }
0x1396   :  { %2131 = vsyncpa [#allocation9], 1 }

</bundles_post_ra>
